<compile_context>
chip_gen: v7x
topology: tpu7x:2x2x1
jax: 0.10.0
libtpu: 0.0.40
codegen_flags: <defaults>
</compile_context>

<pallas_src>
import functools

import jax
import jax.numpy as jnp
from jax.experimental import pallas as pl
from jax.experimental.pallas import tpu as pltpu  # noqa: F401  (TPU backend assumed)

EPS = 1e-5  # PyTorch BatchNorm2d default eps


def _full_spec(arr):
    # Whole array as a single block (block_shape == full dims, so no (8,128) constraint).
    return pl.BlockSpec(arr.shape, lambda: (0,) * arr.ndim)


# ---------------------------------------------------------------------------
# Kernels
# ---------------------------------------------------------------------------
def _conv_bn_relu_pool_kernel(p00_ref, p01_ref, p10_ref, p11_ref,
                              w_ref, b_ref, g_ref, beta_ref, o_ref):
    """Fused Conv3x3 (im2col matmul) + bias + BatchNorm(batch stats) + ReLU + MaxPool2x2.

    p??_ref : [P, 9*Cin] im2col patches for the four 2x2 pooling phases, P = N*Ho*Wo.
    w_ref   : [9*Cin, Cout]   b/g/beta_ref : [1, Cout]   o_ref : [P, Cout]
    """
    w = w_ref[...]
    b = b_ref[...]
    y00 = jnp.dot(p00_ref[...], w, preferred_element_type=jnp.float32) + b
    y01 = jnp.dot(p01_ref[...], w, preferred_element_type=jnp.float32) + b
    y10 = jnp.dot(p10_ref[...], w, preferred_element_type=jnp.float32) + b
    y11 = jnp.dot(p11_ref[...], w, preferred_element_type=jnp.float32) + b

    # Batch statistics over ALL pre-pool positions (N*H*W) per channel.
    n = 4.0 * y00.shape[0]
    s = (jnp.sum(y00, axis=0, keepdims=True) + jnp.sum(y01, axis=0, keepdims=True)
         + jnp.sum(y10, axis=0, keepdims=True) + jnp.sum(y11, axis=0, keepdims=True))
    ss = (jnp.sum(y00 * y00, axis=0, keepdims=True)
          + jnp.sum(y01 * y01, axis=0, keepdims=True)
          + jnp.sum(y10 * y10, axis=0, keepdims=True)
          + jnp.sum(y11 * y11, axis=0, keepdims=True))
    mean = s / n
    var = ss / n - mean * mean              # biased variance, matches training-mode BatchNorm
    inv = jax.lax.rsqrt(var + EPS)
    scale = g_ref[...] * inv
    shift = beta_ref[...] - mean * scale

    # `scale` may be negative -> apply per phase BEFORE the max.  `shift` (and ReLU) commute
    # with max, so they are applied once on the pooled result.
    z = jnp.maximum(jnp.maximum(y00 * scale, y01 * scale),
                    jnp.maximum(y10 * scale, y11 * scale))
    o_ref[...] = jnp.maximum(z + shift, 0.0).astype(o_ref.dtype)


def _conv_bn_relu_kernel(p_ref, w_ref, b_ref, g_ref, beta_ref, o_ref):
    """Fused Conv3x3 (im2col matmul) + bias + BatchNorm(batch stats) + ReLU (no pooling)."""
    y = jnp.dot(p_ref[...], w_ref[...], preferred_element_type=jnp.float32) + b_ref[...]
    n = float(y.shape[0])
    mean = jnp.sum(y, axis=0, keepdims=True) / n
    var = jnp.sum(y * y, axis=0, keepdims=True) / n - mean * mean
    inv = jax.lax.rsqrt(var + EPS)
    scale = g_ref[...] * inv
    shift = beta_ref[...] - mean * scale
    o_ref[...] = jnp.maximum(y * scale + shift, 0.0).astype(o_ref.dtype)


# ---------------------------------------------------------------------------
# Wrapper (layout ops in XLA, compute in Pallas)
# ---------------------------------------------------------------------------
def _extract_patches(x_nhwc):
    """3x3, padding=1 im2col.  [N,H,W,C] -> [N,H,W,9*C], col order (dy, dx, cin)."""
    n, h, w, _ = x_nhwc.shape
    xp = jnp.pad(x_nhwc, ((0, 0), (1, 1), (1, 1), (0, 0)))
    cols = []
    for dy in range(3):
        for dx in range(3):
            cols.append(xp[:, dy:dy + h, dx:dx + w, :])
    return jnp.concatenate(cols, axis=-1)


def _pool_phases(patches):
    """Split [N,H,W,K] patches into the four 2x2-pool phases, each [N*Ho*Wo, K]."""
    n, h, w, k = patches.shape
    ho, wo = h // 2, w // 2
    p = patches[:, :ho * 2, :wo * 2, :]
    phases = []
    for a in range(2):
        for b in range(2):
            phases.append(p[:, a::2, b::2, :].reshape(n * ho * wo, k))
    return phases, ho, wo


def conv_block(x_nhwc, p, pool):
    n, h, w, cin = x_nhwc.shape
    cout = p["w"].shape[-1]
    k = 9 * cin
    w_flat = p["w"].reshape(k, cout)                      # HWIO -> [(dy*3+dx)*Cin+cin, cout]
    b = p["b"].reshape(1, cout)
    g = p["gamma"].reshape(1, cout)
    beta = p["beta"].reshape(1, cout)
    patches = _extract_patches(x_nhwc)                    # [N,H,W,9*Cin]

    if pool:
        phases, ho, wo = _pool_phases(patches)
        operands = (*phases, w_flat, b, g, beta)
        out2d = pl.pallas_call(
            _conv_bn_relu_pool_kernel,
            out_shape=jax.ShapeDtypeStruct((n * ho * wo, cout), x_nhwc.dtype),
            grid=(),
            in_specs=[_full_spec(a) for a in operands],
            out_specs=pl.BlockSpec((n * ho * wo, cout), lambda: (0, 0)),
        )(*operands)
        return out2d.reshape(n, ho, wo, cout)
    else:
        rows = n * h * w
        patches2d = patches.reshape(rows, k)
        operands = (patches2d, w_flat, b, g, beta)
        out2d = pl.pallas_call(
            _conv_bn_relu_kernel,
            out_shape=jax.ShapeDtypeStruct((rows, cout), x_nhwc.dtype),
            grid=(),
            in_specs=[_full_spec(a) for a in operands],
            out_specs=pl.BlockSpec((rows, cout), lambda: (0, 0)),
        )(*operands)
        return out2d.reshape(n, h, w, cout)


def convnet_s_forward(x_nchw, params, depth=4, flatten=True):
    """ConvNetS forward: take channel 0, run `depth` ConvBlocks (pool for i<4), flatten."""
    out = x_nchw[:, 0:1, :, :]                            # x[:, 0:1, :, :]
    out = jnp.transpose(out, (0, 2, 3, 1))                # NCHW -> NHWC
    for i in range(depth):
        out = conv_block(out, params[i], pool=(i < 4))
    if flatten:
        out = out.reshape(out.shape[0], -1)
    return out


# ---------------------------------------------------------------------------
# Init (mirrors init_layer: conv weight ~ N(0, sqrt(2/(k*k*cout))), BN weight=1-ish, bias=0-ish)
# ---------------------------------------------------------------------------
def init_convnet_s(key, depth=4, dtype=jnp.float32):
    params = []
    for i in range(depth):
        cin = 1 if i == 0 else 64
        cout = 64
        key, kw, kb, kg, kbe = jax.random.split(key, 5)
        fan = 3 * 3 * cout
        w = jax.random.normal(kw, (3, 3, cin, cout), dtype) * (2.0 / fan) ** 0.5  # HWIO
        bound = 1.0 / (9 * cin) ** 0.5
        b = jax.random.uniform(kb, (cout,), dtype, minval=-bound, maxval=bound)
        # init_layer sets BN weight=1, bias=0; small perturbation to exercise the affine path.
        gamma = 1.0 + 0.1 * jax.random.normal(kg, (cout,), dtype)
        beta = 0.1 * jax.random.normal(kbe, (cout,), dtype)
        params.append(dict(w=w, b=b, gamma=gamma, beta=beta))
    return params


# ---------------------------------------------------------------------------
# Pure-JAX reference (for correctness check)
# ---------------------------------------------------------------------------
def convnet_s_reference(x_nchw, params, depth=4, flatten=True):
    out = x_nchw[:, 0:1, :, :]
    out = jnp.transpose(out, (0, 2, 3, 1))
    for i in range(depth):
        p = params[i]
        out = jax.lax.conv_general_dilated(
            out, p["w"], window_strides=(1, 1), padding=((1, 1), (1, 1)),
            dimension_numbers=("NHWC", "HWIO", "NHWC"))
        out = out + p["b"].reshape(1, 1, 1, -1)
        mean = jnp.mean(out, axis=(0, 1, 2), keepdims=True)
        var = jnp.mean((out - mean) ** 2, axis=(0, 1, 2), keepdims=True)
        out = (out - mean) * jax.lax.rsqrt(var + EPS)
        out = out * p["gamma"].reshape(1, 1, 1, -1) + p["beta"].reshape(1, 1, 1, -1)
        out = jnp.maximum(out, 0.0)
        if i < 4:
            out = jax.lax.reduce_window(out, -jnp.inf, jax.lax.max,
                                        (1, 2, 2, 1), (1, 2, 2, 1), "VALID")
    if flatten:
        out = out.reshape(out.shape[0], -1)
    return out


if __name__ == "__main__":
    key = jax.random.PRNGKey(0)
    depth = 4
    batch, channels, H, W = 2, 3, 16, 16          # 16 -> 8 -> 4 -> 2 -> 1 after 4 pools

    kx, kp = jax.random.split(key)
    x = jax.random.normal(kx, (batch, channels, H, W), jnp.float32)
    params = init_convnet_s(kp, depth=depth)

    fwd = jax.jit(functools.partial(convnet_s_forward, depth=depth, flatten=True))
    out = fwd(x, params)
    out = jax.block_until_ready(out)

    ref = convnet_s_reference(x, params, depth=depth, flatten=True)
    assert out.shape == (batch, 64), out.shape
    max_err = float(jnp.max(jnp.abs(out - ref)))
    assert max_err < 1e-3, f"max abs error {max_err}"

    print("KERNEL_OK")
</pallas_src>

<mosaic_0001>
module attributes {stable_mosaic.version = 11 : i64} {
  func.func @_conv_bn_relu_pool_kernel(%arg0: memref<128x9xf32, #tpu.memory_space<vmem>>, %arg1: memref<128x9xf32, #tpu.memory_space<vmem>>, %arg2: memref<128x9xf32, #tpu.memory_space<vmem>>, %arg3: memref<128x9xf32, #tpu.memory_space<vmem>>, %arg4: memref<9x64xf32, #tpu.memory_space<vmem>>, %arg5: memref<1x64xf32, #tpu.memory_space<vmem>>, %arg6: memref<1x64xf32, #tpu.memory_space<vmem>>, %arg7: memref<1x64xf32, #tpu.memory_space<vmem>>, %arg8: memref<128x64xf32, #tpu.memory_space<vmem>>) attributes {dimension_semantics = [], scalar_prefetch = 0 : i64, scratch_operands = 0 : i64, tpu.core_type = #tpu.core_type<tc>} {
    %c0 = arith.constant 0 : index
    %c0_0 = arith.constant 0 : index
    %0 = vector.load %arg4[%c0, %c0_0] : memref<9x64xf32, #tpu.memory_space<vmem>>, vector<9x64xf32>
    %c0_1 = arith.constant 0 : index
    %c0_2 = arith.constant 0 : index
    %1 = vector.load %arg5[%c0_1, %c0_2] : memref<1x64xf32, #tpu.memory_space<vmem>>, vector<1x64xf32>
    %c0_3 = arith.constant 0 : index
    %c0_4 = arith.constant 0 : index
    %2 = vector.load %arg0[%c0_3, %c0_4] : memref<128x9xf32, #tpu.memory_space<vmem>>, vector<128x9xf32>
    %cst = arith.constant dense<0.000000e+00> : vector<128x64xf32>
    %3 = tpu.matmul %2, %0, %cst {dimension_numbers = #tpu.dot_dimension_numbers<[1], [0], [0], [1], [0, 0, 1, 1], [], []>} : vector<128x9xf32>, vector<9x64xf32>, vector<128x64xf32> -> vector<128x64xf32>
    %4 = vector.broadcast %1 : vector<1x64xf32> to vector<128x64xf32>
    %5 = arith.addf %3, %4 : vector<128x64xf32>
    %c0_5 = arith.constant 0 : index
    %c0_6 = arith.constant 0 : index
    %6 = vector.load %arg1[%c0_5, %c0_6] : memref<128x9xf32, #tpu.memory_space<vmem>>, vector<128x9xf32>
    %cst_7 = arith.constant dense<0.000000e+00> : vector<128x64xf32>
    %7 = tpu.matmul %6, %0, %cst_7 {dimension_numbers = #tpu.dot_dimension_numbers<[1], [0], [0], [1], [0, 0, 1, 1], [], []>} : vector<128x9xf32>, vector<9x64xf32>, vector<128x64xf32> -> vector<128x64xf32>
    %8 = vector.broadcast %1 : vector<1x64xf32> to vector<128x64xf32>
    %9 = arith.addf %7, %8 : vector<128x64xf32>
    %c0_8 = arith.constant 0 : index
    %c0_9 = arith.constant 0 : index
    %10 = vector.load %arg2[%c0_8, %c0_9] : memref<128x9xf32, #tpu.memory_space<vmem>>, vector<128x9xf32>
    %cst_10 = arith.constant dense<0.000000e+00> : vector<128x64xf32>
    %11 = tpu.matmul %10, %0, %cst_10 {dimension_numbers = #tpu.dot_dimension_numbers<[1], [0], [0], [1], [0, 0, 1, 1], [], []>} : vector<128x9xf32>, vector<9x64xf32>, vector<128x64xf32> -> vector<128x64xf32>
    %12 = vector.broadcast %1 : vector<1x64xf32> to vector<128x64xf32>
    %13 = arith.addf %11, %12 : vector<128x64xf32>
    %c0_11 = arith.constant 0 : index
    %c0_12 = arith.constant 0 : index
    %14 = vector.load %arg3[%c0_11, %c0_12] : memref<128x9xf32, #tpu.memory_space<vmem>>, vector<128x9xf32>
    %cst_13 = arith.constant dense<0.000000e+00> : vector<128x64xf32>
    %15 = tpu.matmul %14, %0, %cst_13 {dimension_numbers = #tpu.dot_dimension_numbers<[1], [0], [0], [1], [0, 0, 1, 1], [], []>} : vector<128x9xf32>, vector<9x64xf32>, vector<128x64xf32> -> vector<128x64xf32>
    %16 = vector.broadcast %1 : vector<1x64xf32> to vector<128x64xf32>
    %17 = arith.addf %15, %16 : vector<128x64xf32>
    %cst_14 = arith.constant dense<0.000000e+00> : vector<64xf32>
    %18 = vector.multi_reduction <add>, %5, %cst_14 [0] : vector<128x64xf32> to vector<64xf32>
    %19 = vector.shape_cast %18 : vector<64xf32> to vector<1x64xf32>
    %cst_15 = arith.constant dense<0.000000e+00> : vector<64xf32>
    %20 = vector.multi_reduction <add>, %9, %cst_15 [0] : vector<128x64xf32> to vector<64xf32>
    %21 = vector.shape_cast %20 : vector<64xf32> to vector<1x64xf32>
    %22 = arith.addf %19, %21 : vector<1x64xf32>
    %cst_16 = arith.constant dense<0.000000e+00> : vector<64xf32>
    %23 = vector.multi_reduction <add>, %13, %cst_16 [0] : vector<128x64xf32> to vector<64xf32>
    %24 = vector.shape_cast %23 : vector<64xf32> to vector<1x64xf32>
    %25 = arith.addf %22, %24 : vector<1x64xf32>
    %cst_17 = arith.constant dense<0.000000e+00> : vector<64xf32>
    %26 = vector.multi_reduction <add>, %17, %cst_17 [0] : vector<128x64xf32> to vector<64xf32>
    %27 = vector.shape_cast %26 : vector<64xf32> to vector<1x64xf32>
    %28 = arith.addf %25, %27 : vector<1x64xf32>
    %29 = arith.mulf %5, %5 : vector<128x64xf32>
    %cst_18 = arith.constant dense<0.000000e+00> : vector<64xf32>
    %30 = vector.multi_reduction <add>, %29, %cst_18 [0] : vector<128x64xf32> to vector<64xf32>
    %31 = vector.shape_cast %30 : vector<64xf32> to vector<1x64xf32>
    %32 = arith.mulf %9, %9 : vector<128x64xf32>
    %cst_19 = arith.constant dense<0.000000e+00> : vector<64xf32>
    %33 = vector.multi_reduction <add>, %32, %cst_19 [0] : vector<128x64xf32> to vector<64xf32>
    %34 = vector.shape_cast %33 : vector<64xf32> to vector<1x64xf32>
    %35 = arith.addf %31, %34 : vector<1x64xf32>
    %36 = arith.mulf %13, %13 : vector<128x64xf32>
    %cst_20 = arith.constant dense<0.000000e+00> : vector<64xf32>
    %37 = vector.multi_reduction <add>, %36, %cst_20 [0] : vector<128x64xf32> to vector<64xf32>
    %38 = vector.shape_cast %37 : vector<64xf32> to vector<1x64xf32>
    %39 = arith.addf %35, %38 : vector<1x64xf32>
    %40 = arith.mulf %17, %17 : vector<128x64xf32>
    %cst_21 = arith.constant dense<0.000000e+00> : vector<64xf32>
    %41 = vector.multi_reduction <add>, %40, %cst_21 [0] : vector<128x64xf32> to vector<64xf32>
    %42 = vector.shape_cast %41 : vector<64xf32> to vector<1x64xf32>
    %43 = arith.addf %39, %42 : vector<1x64xf32>
    %cst_22 = arith.constant 5.120000e+02 : f32
    %44 = vector.broadcast %cst_22 : f32 to vector<1x64xf32>
    %45 = arith.divf %28, %44 : vector<1x64xf32>
    %cst_23 = arith.constant 5.120000e+02 : f32
    %46 = vector.broadcast %cst_23 : f32 to vector<1x64xf32>
    %47 = arith.divf %43, %46 : vector<1x64xf32>
    %48 = arith.mulf %45, %45 : vector<1x64xf32>
    %49 = arith.subf %47, %48 : vector<1x64xf32>
    %cst_24 = arith.constant 9.99999974E-6 : f32
    %50 = vector.broadcast %cst_24 : f32 to vector<1x64xf32>
    %51 = arith.addf %49, %50 : vector<1x64xf32>
    %52 = math.rsqrt %51 : vector<1x64xf32>
    %c0_25 = arith.constant 0 : index
    %c0_26 = arith.constant 0 : index
    %53 = vector.load %arg6[%c0_25, %c0_26] : memref<1x64xf32, #tpu.memory_space<vmem>>, vector<1x64xf32>
    %54 = arith.mulf %53, %52 : vector<1x64xf32>
    %c0_27 = arith.constant 0 : index
    %c0_28 = arith.constant 0 : index
    %55 = vector.load %arg7[%c0_27, %c0_28] : memref<1x64xf32, #tpu.memory_space<vmem>>, vector<1x64xf32>
    %56 = arith.mulf %45, %54 : vector<1x64xf32>
    %57 = arith.subf %55, %56 : vector<1x64xf32>
    %58 = vector.broadcast %54 : vector<1x64xf32> to vector<128x64xf32>
    %59 = arith.mulf %5, %58 : vector<128x64xf32>
    %60 = vector.broadcast %54 : vector<1x64xf32> to vector<128x64xf32>
    %61 = arith.mulf %9, %60 : vector<128x64xf32>
    %62 = arith.maximumf %59, %61 : vector<128x64xf32>
    %63 = vector.broadcast %54 : vector<1x64xf32> to vector<128x64xf32>
    %64 = arith.mulf %13, %63 : vector<128x64xf32>
    %65 = vector.broadcast %54 : vector<1x64xf32> to vector<128x64xf32>
    %66 = arith.mulf %17, %65 : vector<128x64xf32>
    %67 = arith.maximumf %64, %66 : vector<128x64xf32>
    %68 = arith.maximumf %62, %67 : vector<128x64xf32>
    %69 = vector.broadcast %57 : vector<1x64xf32> to vector<128x64xf32>
    %70 = arith.addf %68, %69 : vector<128x64xf32>
    %cst_29 = arith.constant 0.000000e+00 : f32
    %71 = vector.broadcast %cst_29 : f32 to vector<128x64xf32>
    %72 = arith.maximumf %70, %71 : vector<128x64xf32>
    %c0_30 = arith.constant 0 : index
    %c0_31 = arith.constant 0 : index
    %73 = vector.load %arg8[%c0_30, %c0_31] : memref<128x64xf32, #tpu.memory_space<vmem>>, vector<128x64xf32>
    tpu.vector_store %arg8[%c0_30, %c0_31], %72 {strides = array<i32>} : memref<128x64xf32, #tpu.memory_space<vmem>>, vector<128x64xf32>,
    return
  }
}

module attributes {stable_mosaic.version = 11 : i64} {
  func.func @_conv_bn_relu_pool_kernel(%arg0: memref<32x576xf32, #tpu.memory_space<vmem>>, %arg1: memref<32x576xf32, #tpu.memory_space<vmem>>, %arg2: memref<32x576xf32, #tpu.memory_space<vmem>>, %arg3: memref<32x576xf32, #tpu.memory_space<vmem>>, %arg4: memref<576x64xf32, #tpu.memory_space<vmem>>, %arg5: memref<1x64xf32, #tpu.memory_space<vmem>>, %arg6: memref<1x64xf32, #tpu.memory_space<vmem>>, %arg7: memref<1x64xf32, #tpu.memory_space<vmem>>, %arg8: memref<32x64xf32, #tpu.memory_space<vmem>>) attributes {dimension_semantics = [], scalar_prefetch = 0 : i64, scratch_operands = 0 : i64, tpu.core_type = #tpu.core_type<tc>} {
    %c0 = arith.constant 0 : index
    %c0_0 = arith.constant 0 : index
    %0 = vector.load %arg4[%c0, %c0_0] : memref<576x64xf32, #tpu.memory_space<vmem>>, vector<576x64xf32>
    %c0_1 = arith.constant 0 : index
    %c0_2 = arith.constant 0 : index
    %1 = vector.load %arg5[%c0_1, %c0_2] : memref<1x64xf32, #tpu.memory_space<vmem>>, vector<1x64xf32>
    %c0_3 = arith.constant 0 : index
    %c0_4 = arith.constant 0 : index
    %2 = vector.load %arg0[%c0_3, %c0_4] : memref<32x576xf32, #tpu.memory_space<vmem>>, vector<32x576xf32>
    %cst = arith.constant dense<0.000000e+00> : vector<32x64xf32>
    %3 = tpu.matmul %2, %0, %cst {dimension_numbers = #tpu.dot_dimension_numbers<[1], [0], [0], [1], [0, 0, 1, 1], [], []>} : vector<32x576xf32>, vector<576x64xf32>, vector<32x64xf32> -> vector<32x64xf32>
    %4 = vector.broadcast %1 : vector<1x64xf32> to vector<32x64xf32>
    %5 = arith.addf %3, %4 : vector<32x64xf32>
    %c0_5 = arith.constant 0 : index
    %c0_6 = arith.constant 0 : index
    %6 = vector.load %arg1[%c0_5, %c0_6] : memref<32x576xf32, #tpu.memory_space<vmem>>, vector<32x576xf32>
    %cst_7 = arith.constant dense<0.000000e+00> : vector<32x64xf32>
    %7 = tpu.matmul %6, %0, %cst_7 {dimension_numbers = #tpu.dot_dimension_numbers<[1], [0], [0], [1], [0, 0, 1, 1], [], []>} : vector<32x576xf32>, vector<576x64xf32>, vector<32x64xf32> -> vector<32x64xf32>
    %8 = vector.broadcast %1 : vector<1x64xf32> to vector<32x64xf32>
    %9 = arith.addf %7, %8 : vector<32x64xf32>
    %c0_8 = arith.constant 0 : index
    %c0_9 = arith.constant 0 : index
    %10 = vector.load %arg2[%c0_8, %c0_9] : memref<32x576xf32, #tpu.memory_space<vmem>>, vector<32x576xf32>
    %cst_10 = arith.constant dense<0.000000e+00> : vector<32x64xf32>
    %11 = tpu.matmul %10, %0, %cst_10 {dimension_numbers = #tpu.dot_dimension_numbers<[1], [0], [0], [1], [0, 0, 1, 1], [], []>} : vector<32x576xf32>, vector<576x64xf32>, vector<32x64xf32> -> vector<32x64xf32>
    %12 = vector.broadcast %1 : vector<1x64xf32> to vector<32x64xf32>
    %13 = arith.addf %11, %12 : vector<32x64xf32>
    %c0_11 = arith.constant 0 : index
    %c0_12 = arith.constant 0 : index
    %14 = vector.load %arg3[%c0_11, %c0_12] : memref<32x576xf32, #tpu.memory_space<vmem>>, vector<32x576xf32>
    %cst_13 = arith.constant dense<0.000000e+00> : vector<32x64xf32>
    %15 = tpu.matmul %14, %0, %cst_13 {dimension_numbers = #tpu.dot_dimension_numbers<[1], [0], [0], [1], [0, 0, 1, 1], [], []>} : vector<32x576xf32>, vector<576x64xf32>, vector<32x64xf32> -> vector<32x64xf32>
    %16 = vector.broadcast %1 : vector<1x64xf32> to vector<32x64xf32>
    %17 = arith.addf %15, %16 : vector<32x64xf32>
    %cst_14 = arith.constant dense<0.000000e+00> : vector<64xf32>
    %18 = vector.multi_reduction <add>, %5, %cst_14 [0] : vector<32x64xf32> to vector<64xf32>
    %19 = vector.shape_cast %18 : vector<64xf32> to vector<1x64xf32>
    %cst_15 = arith.constant dense<0.000000e+00> : vector<64xf32>
    %20 = vector.multi_reduction <add>, %9, %cst_15 [0] : vector<32x64xf32> to vector<64xf32>
    %21 = vector.shape_cast %20 : vector<64xf32> to vector<1x64xf32>
    %22 = arith.addf %19, %21 : vector<1x64xf32>
    %cst_16 = arith.constant dense<0.000000e+00> : vector<64xf32>
    %23 = vector.multi_reduction <add>, %13, %cst_16 [0] : vector<32x64xf32> to vector<64xf32>
    %24 = vector.shape_cast %23 : vector<64xf32> to vector<1x64xf32>
    %25 = arith.addf %22, %24 : vector<1x64xf32>
    %cst_17 = arith.constant dense<0.000000e+00> : vector<64xf32>
    %26 = vector.multi_reduction <add>, %17, %cst_17 [0] : vector<32x64xf32> to vector<64xf32>
    %27 = vector.shape_cast %26 : vector<64xf32> to vector<1x64xf32>
    %28 = arith.addf %25, %27 : vector<1x64xf32>
    %29 = arith.mulf %5, %5 : vector<32x64xf32>
    %cst_18 = arith.constant dense<0.000000e+00> : vector<64xf32>
    %30 = vector.multi_reduction <add>, %29, %cst_18 [0] : vector<32x64xf32> to vector<64xf32>
    %31 = vector.shape_cast %30 : vector<64xf32> to vector<1x64xf32>
    %32 = arith.mulf %9, %9 : vector<32x64xf32>
    %cst_19 = arith.constant dense<0.000000e+00> : vector<64xf32>
    %33 = vector.multi_reduction <add>, %32, %cst_19 [0] : vector<32x64xf32> to vector<64xf32>
    %34 = vector.shape_cast %33 : vector<64xf32> to vector<1x64xf32>
    %35 = arith.addf %31, %34 : vector<1x64xf32>
    %36 = arith.mulf %13, %13 : vector<32x64xf32>
    %cst_20 = arith.constant dense<0.000000e+00> : vector<64xf32>
    %37 = vector.multi_reduction <add>, %36, %cst_20 [0] : vector<32x64xf32> to vector<64xf32>
    %38 = vector.shape_cast %37 : vector<64xf32> to vector<1x64xf32>
    %39 = arith.addf %35, %38 : vector<1x64xf32>
    %40 = arith.mulf %17, %17 : vector<32x64xf32>
    %cst_21 = arith.constant dense<0.000000e+00> : vector<64xf32>
    %41 = vector.multi_reduction <add>, %40, %cst_21 [0] : vector<32x64xf32> to vector<64xf32>
    %42 = vector.shape_cast %41 : vector<64xf32> to vector<1x64xf32>
    %43 = arith.addf %39, %42 : vector<1x64xf32>
    %cst_22 = arith.constant 1.280000e+02 : f32
    %44 = vector.broadcast %cst_22 : f32 to vector<1x64xf32>
    %45 = arith.divf %28, %44 : vector<1x64xf32>
    %cst_23 = arith.constant 1.280000e+02 : f32
    %46 = vector.broadcast %cst_23 : f32 to vector<1x64xf32>
    %47 = arith.divf %43, %46 : vector<1x64xf32>
    %48 = arith.mulf %45, %45 : vector<1x64xf32>
    %49 = arith.subf %47, %48 : vector<1x64xf32>
    %cst_24 = arith.constant 9.99999974E-6 : f32
    %50 = vector.broadcast %cst_24 : f32 to vector<1x64xf32>
    %51 = arith.addf %49, %50 : vector<1x64xf32>
    %52 = math.rsqrt %51 : vector<1x64xf32>
    %c0_25 = arith.constant 0 : index
    %c0_26 = arith.constant 0 : index
    %53 = vector.load %arg6[%c0_25, %c0_26] : memref<1x64xf32, #tpu.memory_space<vmem>>, vector<1x64xf32>
    %54 = arith.mulf %53, %52 : vector<1x64xf32>
    %c0_27 = arith.constant 0 : index
    %c0_28 = arith.constant 0 : index
    %55 = vector.load %arg7[%c0_27, %c0_28] : memref<1x64xf32, #tpu.memory_space<vmem>>, vector<1x64xf32>
    %56 = arith.mulf %45, %54 : vector<1x64xf32>
    %57 = arith.subf %55, %56 : vector<1x64xf32>
    %58 = vector.broadcast %54 : vector<1x64xf32> to vector<32x64xf32>
    %59 = arith.mulf %5, %58 : vector<32x64xf32>
    %60 = vector.broadcast %54 : vector<1x64xf32> to vector<32x64xf32>
    %61 = arith.mulf %9, %60 : vector<32x64xf32>
    %62 = arith.maximumf %59, %61 : vector<32x64xf32>
    %63 = vector.broadcast %54 : vector<1x64xf32> to vector<32x64xf32>
    %64 = arith.mulf %13, %63 : vector<32x64xf32>
    %65 = vector.broadcast %54 : vector<1x64xf32> to vector<32x64xf32>
    %66 = arith.mulf %17, %65 : vector<32x64xf32>
    %67 = arith.maximumf %64, %66 : vector<32x64xf32>
    %68 = arith.maximumf %62, %67 : vector<32x64xf32>
    %69 = vector.broadcast %57 : vector<1x64xf32> to vector<32x64xf32>
    %70 = arith.addf %68, %69 : vector<32x64xf32>
    %cst_29 = arith.constant 0.000000e+00 : f32
    %71 = vector.broadcast %cst_29 : f32 to vector<32x64xf32>
    %72 = arith.maximumf %70, %71 : vector<32x64xf32>
    %c0_30 = arith.constant 0 : index
    %c0_31 = arith.constant 0 : index
    %73 = vector.load %arg8[%c0_30, %c0_31] : memref<32x64xf32, #tpu.memory_space<vmem>>, vector<32x64xf32>
    tpu.vector_store %arg8[%c0_30, %c0_31], %72 {strides = array<i32>} : memref<32x64xf32, #tpu.memory_space<vmem>>, vector<32x64xf32>,
    return
  }
}

module attributes {stable_mosaic.version = 11 : i64} {
  func.func @_conv_bn_relu_pool_kernel(%arg0: memref<8x576xf32, #tpu.memory_space<vmem>>, %arg1: memref<8x576xf32, #tpu.memory_space<vmem>>, %arg2: memref<8x576xf32, #tpu.memory_space<vmem>>, %arg3: memref<8x576xf32, #tpu.memory_space<vmem>>, %arg4: memref<576x64xf32, #tpu.memory_space<vmem>>, %arg5: memref<1x64xf32, #tpu.memory_space<vmem>>, %arg6: memref<1x64xf32, #tpu.memory_space<vmem>>, %arg7: memref<1x64xf32, #tpu.memory_space<vmem>>, %arg8: memref<8x64xf32, #tpu.memory_space<vmem>>) attributes {dimension_semantics = [], scalar_prefetch = 0 : i64, scratch_operands = 0 : i64, tpu.core_type = #tpu.core_type<tc>} {
    %c0 = arith.constant 0 : index
    %c0_0 = arith.constant 0 : index
    %0 = vector.load %arg4[%c0, %c0_0] : memref<576x64xf32, #tpu.memory_space<vmem>>, vector<576x64xf32>
    %c0_1 = arith.constant 0 : index
    %c0_2 = arith.constant 0 : index
    %1 = vector.load %arg5[%c0_1, %c0_2] : memref<1x64xf32, #tpu.memory_space<vmem>>, vector<1x64xf32>
    %c0_3 = arith.constant 0 : index
    %c0_4 = arith.constant 0 : index
    %2 = vector.load %arg0[%c0_3, %c0_4] : memref<8x576xf32, #tpu.memory_space<vmem>>, vector<8x576xf32>
    %cst = arith.constant dense<0.000000e+00> : vector<8x64xf32>
    %3 = tpu.matmul %2, %0, %cst {dimension_numbers = #tpu.dot_dimension_numbers<[1], [0], [0], [1], [0, 0, 1, 1], [], []>} : vector<8x576xf32>, vector<576x64xf32>, vector<8x64xf32> -> vector<8x64xf32>
    %4 = vector.broadcast %1 : vector<1x64xf32> to vector<8x64xf32>
    %5 = arith.addf %3, %4 : vector<8x64xf32>
    %c0_5 = arith.constant 0 : index
    %c0_6 = arith.constant 0 : index
    %6 = vector.load %arg1[%c0_5, %c0_6] : memref<8x576xf32, #tpu.memory_space<vmem>>, vector<8x576xf32>
    %cst_7 = arith.constant dense<0.000000e+00> : vector<8x64xf32>
    %7 = tpu.matmul %6, %0, %cst_7 {dimension_numbers = #tpu.dot_dimension_numbers<[1], [0], [0], [1], [0, 0, 1, 1], [], []>} : vector<8x576xf32>, vector<576x64xf32>, vector<8x64xf32> -> vector<8x64xf32>
    %8 = vector.broadcast %1 : vector<1x64xf32> to vector<8x64xf32>
    %9 = arith.addf %7, %8 : vector<8x64xf32>
    %c0_8 = arith.constant 0 : index
    %c0_9 = arith.constant 0 : index
    %10 = vector.load %arg2[%c0_8, %c0_9] : memref<8x576xf32, #tpu.memory_space<vmem>>, vector<8x576xf32>
    %cst_10 = arith.constant dense<0.000000e+00> : vector<8x64xf32>
    %11 = tpu.matmul %10, %0, %cst_10 {dimension_numbers = #tpu.dot_dimension_numbers<[1], [0], [0], [1], [0, 0, 1, 1], [], []>} : vector<8x576xf32>, vector<576x64xf32>, vector<8x64xf32> -> vector<8x64xf32>
    %12 = vector.broadcast %1 : vector<1x64xf32> to vector<8x64xf32>
    %13 = arith.addf %11, %12 : vector<8x64xf32>
    %c0_11 = arith.constant 0 : index
    %c0_12 = arith.constant 0 : index
    %14 = vector.load %arg3[%c0_11, %c0_12] : memref<8x576xf32, #tpu.memory_space<vmem>>, vector<8x576xf32>
    %cst_13 = arith.constant dense<0.000000e+00> : vector<8x64xf32>
    %15 = tpu.matmul %14, %0, %cst_13 {dimension_numbers = #tpu.dot_dimension_numbers<[1], [0], [0], [1], [0, 0, 1, 1], [], []>} : vector<8x576xf32>, vector<576x64xf32>, vector<8x64xf32> -> vector<8x64xf32>
    %16 = vector.broadcast %1 : vector<1x64xf32> to vector<8x64xf32>
    %17 = arith.addf %15, %16 : vector<8x64xf32>
    %cst_14 = arith.constant dense<0.000000e+00> : vector<64xf32>
    %18 = vector.multi_reduction <add>, %5, %cst_14 [0] : vector<8x64xf32> to vector<64xf32>
    %19 = vector.shape_cast %18 : vector<64xf32> to vector<1x64xf32>
    %cst_15 = arith.constant dense<0.000000e+00> : vector<64xf32>
    %20 = vector.multi_reduction <add>, %9, %cst_15 [0] : vector<8x64xf32> to vector<64xf32>
    %21 = vector.shape_cast %20 : vector<64xf32> to vector<1x64xf32>
    %22 = arith.addf %19, %21 : vector<1x64xf32>
    %cst_16 = arith.constant dense<0.000000e+00> : vector<64xf32>
    %23 = vector.multi_reduction <add>, %13, %cst_16 [0] : vector<8x64xf32> to vector<64xf32>
    %24 = vector.shape_cast %23 : vector<64xf32> to vector<1x64xf32>
    %25 = arith.addf %22, %24 : vector<1x64xf32>
    %cst_17 = arith.constant dense<0.000000e+00> : vector<64xf32>
    %26 = vector.multi_reduction <add>, %17, %cst_17 [0] : vector<8x64xf32> to vector<64xf32>
    %27 = vector.shape_cast %26 : vector<64xf32> to vector<1x64xf32>
    %28 = arith.addf %25, %27 : vector<1x64xf32>
    %29 = arith.mulf %5, %5 : vector<8x64xf32>
    %cst_18 = arith.constant dense<0.000000e+00> : vector<64xf32>
    %30 = vector.multi_reduction <add>, %29, %cst_18 [0] : vector<8x64xf32> to vector<64xf32>
    %31 = vector.shape_cast %30 : vector<64xf32> to vector<1x64xf32>
    %32 = arith.mulf %9, %9 : vector<8x64xf32>
    %cst_19 = arith.constant dense<0.000000e+00> : vector<64xf32>
    %33 = vector.multi_reduction <add>, %32, %cst_19 [0] : vector<8x64xf32> to vector<64xf32>
    %34 = vector.shape_cast %33 : vector<64xf32> to vector<1x64xf32>
    %35 = arith.addf %31, %34 : vector<1x64xf32>
    %36 = arith.mulf %13, %13 : vector<8x64xf32>
    %cst_20 = arith.constant dense<0.000000e+00> : vector<64xf32>
    %37 = vector.multi_reduction <add>, %36, %cst_20 [0] : vector<8x64xf32> to vector<64xf32>
    %38 = vector.shape_cast %37 : vector<64xf32> to vector<1x64xf32>
    %39 = arith.addf %35, %38 : vector<1x64xf32>
    %40 = arith.mulf %17, %17 : vector<8x64xf32>
    %cst_21 = arith.constant dense<0.000000e+00> : vector<64xf32>
    %41 = vector.multi_reduction <add>, %40, %cst_21 [0] : vector<8x64xf32> to vector<64xf32>
    %42 = vector.shape_cast %41 : vector<64xf32> to vector<1x64xf32>
    %43 = arith.addf %39, %42 : vector<1x64xf32>
    %cst_22 = arith.constant 3.200000e+01 : f32
    %44 = vector.broadcast %cst_22 : f32 to vector<1x64xf32>
    %45 = arith.divf %28, %44 : vector<1x64xf32>
    %cst_23 = arith.constant 3.200000e+01 : f32
    %46 = vector.broadcast %cst_23 : f32 to vector<1x64xf32>
    %47 = arith.divf %43, %46 : vector<1x64xf32>
    %48 = arith.mulf %45, %45 : vector<1x64xf32>
    %49 = arith.subf %47, %48 : vector<1x64xf32>
    %cst_24 = arith.constant 9.99999974E-6 : f32
    %50 = vector.broadcast %cst_24 : f32 to vector<1x64xf32>
    %51 = arith.addf %49, %50 : vector<1x64xf32>
    %52 = math.rsqrt %51 : vector<1x64xf32>
    %c0_25 = arith.constant 0 : index
    %c0_26 = arith.constant 0 : index
    %53 = vector.load %arg6[%c0_25, %c0_26] : memref<1x64xf32, #tpu.memory_space<vmem>>, vector<1x64xf32>
    %54 = arith.mulf %53, %52 : vector<1x64xf32>
    %c0_27 = arith.constant 0 : index
    %c0_28 = arith.constant 0 : index
    %55 = vector.load %arg7[%c0_27, %c0_28] : memref<1x64xf32, #tpu.memory_space<vmem>>, vector<1x64xf32>
    %56 = arith.mulf %45, %54 : vector<1x64xf32>
    %57 = arith.subf %55, %56 : vector<1x64xf32>
    %58 = vector.broadcast %54 : vector<1x64xf32> to vector<8x64xf32>
    %59 = arith.mulf %5, %58 : vector<8x64xf32>
    %60 = vector.broadcast %54 : vector<1x64xf32> to vector<8x64xf32>
    %61 = arith.mulf %9, %60 : vector<8x64xf32>
    %62 = arith.maximumf %59, %61 : vector<8x64xf32>
    %63 = vector.broadcast %54 : vector<1x64xf32> to vector<8x64xf32>
    %64 = arith.mulf %13, %63 : vector<8x64xf32>
    %65 = vector.broadcast %54 : vector<1x64xf32> to vector<8x64xf32>
    %66 = arith.mulf %17, %65 : vector<8x64xf32>
    %67 = arith.maximumf %64, %66 : vector<8x64xf32>
    %68 = arith.maximumf %62, %67 : vector<8x64xf32>
    %69 = vector.broadcast %57 : vector<1x64xf32> to vector<8x64xf32>
    %70 = arith.addf %68, %69 : vector<8x64xf32>
    %cst_29 = arith.constant 0.000000e+00 : f32
    %71 = vector.broadcast %cst_29 : f32 to vector<8x64xf32>
    %72 = arith.maximumf %70, %71 : vector<8x64xf32>
    %c0_30 = arith.constant 0 : index
    %c0_31 = arith.constant 0 : index
    %73 = vector.load %arg8[%c0_30, %c0_31] : memref<8x64xf32, #tpu.memory_space<vmem>>, vector<8x64xf32>
    tpu.vector_store %arg8[%c0_30, %c0_31], %72 {strides = array<i32>} : memref<8x64xf32, #tpu.memory_space<vmem>>, vector<8x64xf32>,
    return
  }
}

module attributes {stable_mosaic.version = 11 : i64} {
  func.func @_conv_bn_relu_pool_kernel(%arg0: memref<2x576xf32, #tpu.memory_space<vmem>>, %arg1: memref<2x576xf32, #tpu.memory_space<vmem>>, %arg2: memref<2x576xf32, #tpu.memory_space<vmem>>, %arg3: memref<2x576xf32, #tpu.memory_space<vmem>>, %arg4: memref<576x64xf32, #tpu.memory_space<vmem>>, %arg5: memref<1x64xf32, #tpu.memory_space<vmem>>, %arg6: memref<1x64xf32, #tpu.memory_space<vmem>>, %arg7: memref<1x64xf32, #tpu.memory_space<vmem>>, %arg8: memref<2x64xf32, #tpu.memory_space<vmem>>) attributes {dimension_semantics = [], scalar_prefetch = 0 : i64, scratch_operands = 0 : i64, tpu.core_type = #tpu.core_type<tc>} {
    %c0 = arith.constant 0 : index
    %c0_0 = arith.constant 0 : index
    %0 = vector.load %arg4[%c0, %c0_0] : memref<576x64xf32, #tpu.memory_space<vmem>>, vector<576x64xf32>
    %c0_1 = arith.constant 0 : index
    %c0_2 = arith.constant 0 : index
    %1 = vector.load %arg5[%c0_1, %c0_2] : memref<1x64xf32, #tpu.memory_space<vmem>>, vector<1x64xf32>
    %c0_3 = arith.constant 0 : index
    %c0_4 = arith.constant 0 : index
    %2 = vector.load %arg0[%c0_3, %c0_4] : memref<2x576xf32, #tpu.memory_space<vmem>>, vector<2x576xf32>
    %cst = arith.constant dense<0.000000e+00> : vector<2x64xf32>
    %3 = tpu.matmul %2, %0, %cst {dimension_numbers = #tpu.dot_dimension_numbers<[1], [0], [0], [1], [0, 0, 1, 1], [], []>} : vector<2x576xf32>, vector<576x64xf32>, vector<2x64xf32> -> vector<2x64xf32>
    %4 = vector.broadcast %1 : vector<1x64xf32> to vector<2x64xf32>
    %5 = arith.addf %3, %4 : vector<2x64xf32>
    %c0_5 = arith.constant 0 : index
    %c0_6 = arith.constant 0 : index
    %6 = vector.load %arg1[%c0_5, %c0_6] : memref<2x576xf32, #tpu.memory_space<vmem>>, vector<2x576xf32>
    %cst_7 = arith.constant dense<0.000000e+00> : vector<2x64xf32>
    %7 = tpu.matmul %6, %0, %cst_7 {dimension_numbers = #tpu.dot_dimension_numbers<[1], [0], [0], [1], [0, 0, 1, 1], [], []>} : vector<2x576xf32>, vector<576x64xf32>, vector<2x64xf32> -> vector<2x64xf32>
    %8 = vector.broadcast %1 : vector<1x64xf32> to vector<2x64xf32>
    %9 = arith.addf %7, %8 : vector<2x64xf32>
    %c0_8 = arith.constant 0 : index
    %c0_9 = arith.constant 0 : index
    %10 = vector.load %arg2[%c0_8, %c0_9] : memref<2x576xf32, #tpu.memory_space<vmem>>, vector<2x576xf32>
    %cst_10 = arith.constant dense<0.000000e+00> : vector<2x64xf32>
    %11 = tpu.matmul %10, %0, %cst_10 {dimension_numbers = #tpu.dot_dimension_numbers<[1], [0], [0], [1], [0, 0, 1, 1], [], []>} : vector<2x576xf32>, vector<576x64xf32>, vector<2x64xf32> -> vector<2x64xf32>
    %12 = vector.broadcast %1 : vector<1x64xf32> to vector<2x64xf32>
    %13 = arith.addf %11, %12 : vector<2x64xf32>
    %c0_11 = arith.constant 0 : index
    %c0_12 = arith.constant 0 : index
    %14 = vector.load %arg3[%c0_11, %c0_12] : memref<2x576xf32, #tpu.memory_space<vmem>>, vector<2x576xf32>
    %cst_13 = arith.constant dense<0.000000e+00> : vector<2x64xf32>
    %15 = tpu.matmul %14, %0, %cst_13 {dimension_numbers = #tpu.dot_dimension_numbers<[1], [0], [0], [1], [0, 0, 1, 1], [], []>} : vector<2x576xf32>, vector<576x64xf32>, vector<2x64xf32> -> vector<2x64xf32>
    %16 = vector.broadcast %1 : vector<1x64xf32> to vector<2x64xf32>
    %17 = arith.addf %15, %16 : vector<2x64xf32>
    %cst_14 = arith.constant dense<0.000000e+00> : vector<64xf32>
    %18 = vector.multi_reduction <add>, %5, %cst_14 [0] : vector<2x64xf32> to vector<64xf32>
    %19 = vector.shape_cast %18 : vector<64xf32> to vector<1x64xf32>
    %cst_15 = arith.constant dense<0.000000e+00> : vector<64xf32>
    %20 = vector.multi_reduction <add>, %9, %cst_15 [0] : vector<2x64xf32> to vector<64xf32>
    %21 = vector.shape_cast %20 : vector<64xf32> to vector<1x64xf32>
    %22 = arith.addf %19, %21 : vector<1x64xf32>
    %cst_16 = arith.constant dense<0.000000e+00> : vector<64xf32>
    %23 = vector.multi_reduction <add>, %13, %cst_16 [0] : vector<2x64xf32> to vector<64xf32>
    %24 = vector.shape_cast %23 : vector<64xf32> to vector<1x64xf32>
    %25 = arith.addf %22, %24 : vector<1x64xf32>
    %cst_17 = arith.constant dense<0.000000e+00> : vector<64xf32>
    %26 = vector.multi_reduction <add>, %17, %cst_17 [0] : vector<2x64xf32> to vector<64xf32>
    %27 = vector.shape_cast %26 : vector<64xf32> to vector<1x64xf32>
    %28 = arith.addf %25, %27 : vector<1x64xf32>
    %29 = arith.mulf %5, %5 : vector<2x64xf32>
    %cst_18 = arith.constant dense<0.000000e+00> : vector<64xf32>
    %30 = vector.multi_reduction <add>, %29, %cst_18 [0] : vector<2x64xf32> to vector<64xf32>
    %31 = vector.shape_cast %30 : vector<64xf32> to vector<1x64xf32>
    %32 = arith.mulf %9, %9 : vector<2x64xf32>
    %cst_19 = arith.constant dense<0.000000e+00> : vector<64xf32>
    %33 = vector.multi_reduction <add>, %32, %cst_19 [0] : vector<2x64xf32> to vector<64xf32>
    %34 = vector.shape_cast %33 : vector<64xf32> to vector<1x64xf32>
    %35 = arith.addf %31, %34 : vector<1x64xf32>
    %36 = arith.mulf %13, %13 : vector<2x64xf32>
    %cst_20 = arith.constant dense<0.000000e+00> : vector<64xf32>
    %37 = vector.multi_reduction <add>, %36, %cst_20 [0] : vector<2x64xf32> to vector<64xf32>
    %38 = vector.shape_cast %37 : vector<64xf32> to vector<1x64xf32>
    %39 = arith.addf %35, %38 : vector<1x64xf32>
    %40 = arith.mulf %17, %17 : vector<2x64xf32>
    %cst_21 = arith.constant dense<0.000000e+00> : vector<64xf32>
    %41 = vector.multi_reduction <add>, %40, %cst_21 [0] : vector<2x64xf32> to vector<64xf32>
    %42 = vector.shape_cast %41 : vector<64xf32> to vector<1x64xf32>
    %43 = arith.addf %39, %42 : vector<1x64xf32>
    %cst_22 = arith.constant 8.000000e+00 : f32
    %44 = vector.broadcast %cst_22 : f32 to vector<1x64xf32>
    %45 = arith.divf %28, %44 : vector<1x64xf32>
    %cst_23 = arith.constant 8.000000e+00 : f32
    %46 = vector.broadcast %cst_23 : f32 to vector<1x64xf32>
    %47 = arith.divf %43, %46 : vector<1x64xf32>
    %48 = arith.mulf %45, %45 : vector<1x64xf32>
    %49 = arith.subf %47, %48 : vector<1x64xf32>
    %cst_24 = arith.constant 9.99999974E-6 : f32
    %50 = vector.broadcast %cst_24 : f32 to vector<1x64xf32>
    %51 = arith.addf %49, %50 : vector<1x64xf32>
    %52 = math.rsqrt %51 : vector<1x64xf32>
    %c0_25 = arith.constant 0 : index
    %c0_26 = arith.constant 0 : index
    %53 = vector.load %arg6[%c0_25, %c0_26] : memref<1x64xf32, #tpu.memory_space<vmem>>, vector<1x64xf32>
    %54 = arith.mulf %53, %52 : vector<1x64xf32>
    %c0_27 = arith.constant 0 : index
    %c0_28 = arith.constant 0 : index
    %55 = vector.load %arg7[%c0_27, %c0_28] : memref<1x64xf32, #tpu.memory_space<vmem>>, vector<1x64xf32>
    %56 = arith.mulf %45, %54 : vector<1x64xf32>
    %57 = arith.subf %55, %56 : vector<1x64xf32>
    %58 = vector.broadcast %54 : vector<1x64xf32> to vector<2x64xf32>
    %59 = arith.mulf %5, %58 : vector<2x64xf32>
    %60 = vector.broadcast %54 : vector<1x64xf32> to vector<2x64xf32>
    %61 = arith.mulf %9, %60 : vector<2x64xf32>
    %62 = arith.maximumf %59, %61 : vector<2x64xf32>
    %63 = vector.broadcast %54 : vector<1x64xf32> to vector<2x64xf32>
    %64 = arith.mulf %13, %63 : vector<2x64xf32>
    %65 = vector.broadcast %54 : vector<1x64xf32> to vector<2x64xf32>
    %66 = arith.mulf %17, %65 : vector<2x64xf32>
    %67 = arith.maximumf %64, %66 : vector<2x64xf32>
    %68 = arith.maximumf %62, %67 : vector<2x64xf32>
    %69 = vector.broadcast %57 : vector<1x64xf32> to vector<2x64xf32>
    %70 = arith.addf %68, %69 : vector<2x64xf32>
    %cst_29 = arith.constant 0.000000e+00 : f32
    %71 = vector.broadcast %cst_29 : f32 to vector<2x64xf32>
    %72 = arith.maximumf %70, %71 : vector<2x64xf32>
    %c0_30 = arith.constant 0 : index
    %c0_31 = arith.constant 0 : index
    %73 = vector.load %arg8[%c0_30, %c0_31] : memref<2x64xf32, #tpu.memory_space<vmem>>, vector<2x64xf32>
    tpu.vector_store %arg8[%c0_30, %c0_31], %72 {strides = array<i32>} : memref<2x64xf32, #tpu.memory_space<vmem>>, vector<2x64xf32>,
    return
  }
}

</mosaic_0001>

<bundles_post_ra>
// kernel: convnet_s_forward.4
= control target key start
LH: loop header
LB: loop body
LE: loop exit
PB: predicated region body
PF: predicated region fallthrough
CT: control target
= control target key end

     0   :  { %vm103_vm0 = vcmask 1040384   ;;  %vm54_vm1 = vcmask 72704   ;;  %vm1714_vm2 = vmmov 1   ;;  %vm879_vm4 = vcmask 523264   ;;  %s3033_s4 = inlined_call_operand.vmem [shape: f32[9,64], index: 4, kind: input, shape index: {}]   ;;  %s3034_s0 = inlined_call_operand.vmem [shape: f32[128,9], index: 0, kind: input, shape index: {}]   ;;  %s3035_s1 = inlined_call_operand.vmem [shape: f32[128,9], index: 1, kind: input, shape index: {}]   ;;  %s3036_s2 = inlined_call_operand.vmem [shape: f32[128,9], index: 2, kind: input, shape index: {}]   ;;  %s3037_s3 = inlined_call_operand.vmem [shape: f32[128,9], index: 3, kind: input, shape index: {}]   ;;  %s3038_s5 = inlined_call_operand.vmem [shape: f32[1,64], index: 5, kind: input, shape index: {}]   ;;  %s3039_s6 = inlined_call_operand.vmem [shape: f32[1,64], index: 6, kind: input, shape index: {}]   ;;  %s3040_s7 = inlined_call_operand.vmem [shape: f32[1,64], index: 7, kind: input, shape index: {}]   ;;  %s3041_s8 = inlined_call_operand.vmem [shape: f32[128,64], index: 8, kind: output, shape index: {}]  }
   0x1   :  { %v29_v0 = vld [vmem:[%s3033_s4] sm:$0xff]  ;;  %v30_v1 = vld [vmem:[%s3033_s4 + $0x8] sm:$0x1]  ;;  %vm1766_vm3 = vmpackc.low %vm103_vm0, %vm1714_vm2 }
   0x2   :  { %v1687_v3 = vpack.c.bf16 %v30_v1, %v29_v0  ;;  %v32_v4 = vld [vmem:[%s3034_s0] sm:$0xff]  ;;  %v33_v6 = vld [vmem:[%s3034_s0 + $0x8] sm:$0xff]  ;;  %v34_v8 = vld [vmem:[%s3034_s0 + $0x10] sm:$0xff] }
   0x3   :  { %v252_v5 = vld [vmem:[%s3035_s1] sm:$0xff]  ;;  %1579 = vmatprep.mubr.msk.f32.mxu0 %vm54_vm1, %v32_v4  ;;  %v253_v7 = vld [vmem:[%s3035_s1 + $0x8] sm:$0xff]  ;;  %v254_v9 = vld [vmem:[%s3035_s1 + $0x10] sm:$0xff] }
   0x4   :  { %1607 = vmatprep.mubr.msk.f32.mxu1 %vm54_vm1, %v252_v5  ;;  %1689 = vmatprep.subr.msk.bf16.mxu0 %vm1766_vm3, %v1687_v3  ;;  %v35_v10 = vld [vmem:[%s3034_s0 + $0x18] sm:$0xff]  ;;  %v36_v12 = vld [vmem:[%s3034_s0 + $0x20] sm:$0xff]  ;;  %v37_v14 = vld [vmem:[%s3034_s0 + $0x28] sm:$0xff] }
   0x5   :  { %1695 = vmatprep.subr.msk.bf16.mxu1 %vm1766_vm3, %v1687_v3  ;;  %1692 = vmatpush3.bf16.msk.msra.mxu0 %vm1766_vm3, %v1687_v3  ;;  %v255_v11 = vld [vmem:[%s3035_s1 + $0x18] sm:$0xff]  ;;  %v256_v13 = vld [vmem:[%s3035_s1 + $0x20] sm:$0xff]  ;;  %v257_v15 = vld [vmem:[%s3035_s1 + $0x28] sm:$0xff] }
   0x6   :  { %1698 = vmatpush3.bf16.msk.msra.mxu1 %vm1766_vm3, %v1687_v3  ;;  %1701 = vmatprep.subr.msk.bf16.mxu0 %vm1766_vm3, %v1687_v3  ;;  %v38_v16 = vld [vmem:[%s3034_s0 + $0x30] sm:$0xff]  ;;  %v39_v18 = vld [vmem:[%s3034_s0 + $0x38] sm:$0xff]  ;;  %v40_v20 = vld [vmem:[%s3034_s0 + $0x40] sm:$0xff] }
   0x7   :  { %1707 = vmatprep.subr.msk.bf16.mxu1 %vm1766_vm3, %v1687_v3  ;;  %v258_v17 = vld [vmem:[%s3035_s1 + $0x30] sm:$0xff]  ;;  %v259_v19 = vld [vmem:[%s3035_s1 + $0x38] sm:$0xff]  ;;  %v260_v21 = vld [vmem:[%s3035_s1 + $0x40] sm:$0xff] }
   0x8   :  { %1580 = vmatmul.mubr.msk.f32.vlgmr.msra.gmra.mrb[0].mxu0 %vm54_vm1, %v33_v6  ;;  %v41_v22 = vld [vmem:[%s3034_s0 + $0x48] sm:$0xff]  ;;  %v42_v24 = vld [vmem:[%s3034_s0 + $0x50] sm:$0xff]  ;;  %v43_v26 = vld [vmem:[%s3034_s0 + $0x58] sm:$0xff] }
   0x9   :  { %1608 = vmatmul.mubr.msk.f32.vlgmr.msra.gmra.mrb[0].mxu1 %vm54_vm1, %v253_v7  ;;  %1704 = vmatpush3.bf16.msk.msra.mxu0 %vm1766_vm3, %v1687_v3  ;;  %v261_v23 = vld [vmem:[%s3035_s1 + $0x48] sm:$0xff]  ;;  %v262_v25 = vld [vmem:[%s3035_s1 + $0x50] sm:$0xff]  ;;  %v263_v27 = vld [vmem:[%s3035_s1 + $0x58] sm:$0xff] }
   0xa   :  { %1582 = vmatprep.mubr.msk.f32.mxu0 %vm54_vm1, %v34_v8  ;;  %1610 = vmatprep.mubr.msk.f32.mxu1 %vm54_vm1, %v254_v9  ;;  %v44_v28 = vld [vmem:[%s3034_s0 + $0x60] sm:$0xff]  ;;  %v45_v30 = vld [vmem:[%s3034_s0 + $0x68] sm:$0xff]  ;;  %v46_v32 = vld [vmem:[%s3034_s0 + $0x70] sm:$0xff] }
   0xb   :  { %1710 = vmatpush3.bf16.msk.msra.mxu1 %vm1766_vm3, %v1687_v3  ;;  %v264_v29 = vld [vmem:[%s3035_s1 + $0x60] sm:$0xff]  ;;  %v265_v31 = vld [vmem:[%s3035_s1 + $0x68] sm:$0xff]  ;;  %v266_v33 = vld [vmem:[%s3035_s1 + $0x70] sm:$0xff] }
   0xc   :  { %1583 = vmatmul.mubr.msk.f32.gmra.mrb[2].mxu0 %vm54_vm1, %v35_v10  ;;  %v47_v34 = vld [vmem:[%s3034_s0 + $0x78] sm:$0xff]  ;;  %v461_v36 = vld [vmem:[%s3036_s2] sm:$0xff]  ;;  %v462_v38 = vld [vmem:[%s3036_s2 + $0x8] sm:$0xff] }
   0xd   :  { %1611 = vmatmul.mubr.msk.f32.gmra.mrb[2].mxu1 %vm54_vm1, %v255_v11  ;;  %1585 = vmatprep.mubr.msk.f32.mxu0 %vm54_vm1, %v36_v12  ;;  %v267_v35 = vld [vmem:[%s3035_s1 + $0x78] sm:$0xff]  ;;  %v670_v37 = vld [vmem:[%s3037_s3] sm:$0xff]  ;;  %v671_v39 = vld [vmem:[%s3037_s3 + $0x8] sm:$0xff] }
   0xe   :  { %1613 = vmatprep.mubr.msk.f32.mxu1 %vm54_vm1, %v256_v13  ;;  %v463_v40 = vld [vmem:[%s3036_s2 + $0x10] sm:$0xff]  ;;  %v464_v42 = vld [vmem:[%s3036_s2 + $0x18] sm:$0xff]  ;;  %v465_v44 = vld [vmem:[%s3036_s2 + $0x20] sm:$0xff] }
   0xf   :  { %v672_v41 = vld [vmem:[%s3037_s3 + $0x10] sm:$0xff]  ;;  %v673_v43 = vld [vmem:[%s3037_s3 + $0x18] sm:$0xff]  ;;  %v674_v45 = vld [vmem:[%s3037_s3 + $0x20] sm:$0xff] }
  0x10   :  { %1586 = vmatmul.mubr.msk.f32.gmra.mrb[4].mxu0 %vm54_vm1, %v37_v14  ;;  %v466_v46 = vld [vmem:[%s3036_s2 + $0x28] sm:$0xff]  ;;  %v467_v48 = vld [vmem:[%s3036_s2 + $0x30] sm:$0xff]  ;;  %v468_v50 = vld [vmem:[%s3036_s2 + $0x38] sm:$0xff] }
  0x11   :  { %1614 = vmatmul.mubr.msk.f32.gmra.mrb[4].mxu1 %vm54_vm1, %v257_v15  ;;  %1588 = vmatprep.mubr.msk.f32.mxu0 %vm54_vm1, %v38_v16  ;;  %v675_v47 = vld [vmem:[%s3037_s3 + $0x28] sm:$0xff]  ;;  %v676_v49 = vld [vmem:[%s3037_s3 + $0x30] sm:$0xff]  ;;  %v677_v51 = vld [vmem:[%s3037_s3 + $0x38] sm:$0xff] }
  0x12   :  { %1616 = vmatprep.mubr.msk.f32.mxu1 %vm54_vm1, %v258_v17  ;;  %v469_v52 = vld [vmem:[%s3036_s2 + $0x40] sm:$0xff]  ;;  %v470_v54 = vld [vmem:[%s3036_s2 + $0x48] sm:$0xff]  ;;  %v471_v56 = vld [vmem:[%s3036_s2 + $0x50] sm:$0xff] }
  0x13   :  { %v678_v53 = vld [vmem:[%s3037_s3 + $0x40] sm:$0xff]  ;;  %v679_v55 = vld [vmem:[%s3037_s3 + $0x48] sm:$0xff]  ;;  %v680_v57 = vld [vmem:[%s3037_s3 + $0x50] sm:$0xff] }
  0x14   :  { %1589 = vmatmul.mubr.msk.f32.gmra.mrb[6].mxu0 %vm54_vm1, %v39_v18  ;;  %v472_v58 = vld [vmem:[%s3036_s2 + $0x58] sm:$0xff]  ;;  %v473_v60 = vld [vmem:[%s3036_s2 + $0x60] sm:$0xff]  ;;  %v474_v62 = vld [vmem:[%s3036_s2 + $0x68] sm:$0xff] }
  0x15   :  { %1617 = vmatmul.mubr.msk.f32.gmra.mrb[6].mxu1 %vm54_vm1, %v259_v19  ;;  %1591 = vmatprep.mubr.msk.f32.mxu0 %vm54_vm1, %v40_v20  ;;  %v681_v59 = vld [vmem:[%s3037_s3 + $0x58] sm:$0xff]  ;;  %v682_v61 = vld [vmem:[%s3037_s3 + $0x60] sm:$0xff]  ;;  %v683_v63 = vld [vmem:[%s3037_s3 + $0x68] sm:$0xff] }
  0x16   :  { %1619 = vmatprep.mubr.msk.f32.mxu1 %vm54_vm1, %v260_v21  ;;  %v475_v0 = vld [vmem:[%s3036_s2 + $0x70] sm:$0xff]  ;;  %v476_v2 = vld [vmem:[%s3036_s2 + $0x78] sm:$0xff]  ;;  %v2045_v4 = vld [vmem:[%s3038_s5] ss:$0 sm:$0xff] }
  0x17   :  { %v684_v1 = vld [vmem:[%s3037_s3 + $0x70] sm:$0xff]  ;;  %v685_v3 = vld [vmem:[%s3037_s3 + $0x78] sm:$0xff] }
  0x18   :  { %1592 = vmatmul.mubr.msk.f32.gmra.mrb[8].mxu0 %vm54_vm1, %v41_v22 }
  0x19   :  { %1620 = vmatmul.mubr.msk.f32.gmra.mrb[8].mxu1 %vm54_vm1, %v261_v23  ;;  %1594 = vmatprep.mubr.msk.f32.mxu0 %vm54_vm1, %v42_v24 }
  0x1a   :  { %1622 = vmatprep.mubr.msk.f32.mxu1 %vm54_vm1, %v262_v25 }
  0x1c   :  { %1595 = vmatmul.mubr.msk.f32.gmra.mrb[10].mxu0 %vm54_vm1, %v43_v26 }
  0x1d   :  { %1623 = vmatmul.mubr.msk.f32.gmra.mrb[10].mxu1 %vm54_vm1, %v263_v27  ;;  %1597 = vmatprep.mubr.msk.f32.mxu0 %vm54_vm1, %v44_v28 }
  0x1e   :  { %1625 = vmatprep.mubr.msk.f32.mxu1 %vm54_vm1, %v264_v29 }
  0x20   :  { %1598 = vmatmul.mubr.msk.f32.gmra.mrb[12].mxu0 %vm54_vm1, %v45_v30 }
  0x21   :  { %1626 = vmatmul.mubr.msk.f32.gmra.mrb[12].mxu1 %vm54_vm1, %v265_v31  ;;  %1600 = vmatprep.mubr.msk.f32.mxu0 %vm54_vm1, %v46_v32 }
  0x22   :  { %1628 = vmatprep.mubr.msk.f32.mxu1 %vm54_vm1, %v266_v33 }
  0x24   :  { %1601 = vmatmul.mubr.msk.f32.gmra.mrb[14].mxu0 %vm54_vm1, %v47_v34 }
  0x25   :  { %1629 = vmatmul.mubr.msk.f32.gmra.mrb[14].mxu1 %vm54_vm1, %v267_v35  ;;  %1635 = vmatprep.mubr.msk.f32.mxu0 %vm54_vm1, %v461_v36 }
  0x26   :  { %1663 = vmatprep.mubr.msk.f32.mxu1 %vm54_vm1, %v670_v37 }
  0x28   :  { %1636 = vmatmul.mubr.msk.f32.vlgmr.msra.gmra.mrb[16].mxu0 %vm54_vm1, %v462_v38 }
  0x29   :  { %1664 = vmatmul.mubr.msk.f32.vlgmr.msra.gmra.mrb[16].mxu1 %vm54_vm1, %v671_v39  ;;  %1638 = vmatprep.mubr.msk.f32.mxu0 %vm54_vm1, %v463_v40 }
  0x2a   :  { %1666 = vmatprep.mubr.msk.f32.mxu1 %vm54_vm1, %v672_v41 }
  0x2c   :  { %1639 = vmatmul.mubr.msk.f32.gmra.mrb[18].mxu0 %vm54_vm1, %v464_v42 }
  0x2d   :  { %1667 = vmatmul.mubr.msk.f32.gmra.mrb[18].mxu1 %vm54_vm1, %v673_v43  ;;  %1641 = vmatprep.mubr.msk.f32.mxu0 %vm54_vm1, %v465_v44 }
  0x2e   :  { %1669 = vmatprep.mubr.msk.f32.mxu1 %vm54_vm1, %v674_v45 }
  0x30   :  { %1642 = vmatmul.mubr.msk.f32.gmra.mrb[20].mxu0 %vm54_vm1, %v466_v46 }
  0x31   :  { %1670 = vmatmul.mubr.msk.f32.gmra.mrb[20].mxu1 %vm54_vm1, %v675_v47  ;;  %1644 = vmatprep.mubr.msk.f32.mxu0 %vm54_vm1, %v467_v48 }
  0x32   :  { %1672 = vmatprep.mubr.msk.f32.mxu1 %vm54_vm1, %v676_v49 }
  0x34   :  { %1645 = vmatmul.mubr.msk.f32.gmra.mrb[22].mxu0 %vm54_vm1, %v468_v50 }
  0x35   :  { %1673 = vmatmul.mubr.msk.f32.gmra.mrb[22].mxu1 %vm54_vm1, %v677_v51  ;;  %1647 = vmatprep.mubr.msk.f32.mxu0 %vm54_vm1, %v469_v52 }
  0x36   :  { %1675 = vmatprep.mubr.msk.f32.mxu1 %vm54_vm1, %v678_v53 }
  0x38   :  { %1648 = vmatmul.mubr.msk.f32.gmra.mrb[24].mxu0 %vm54_vm1, %v470_v54 }
  0x39   :  { %1676 = vmatmul.mubr.msk.f32.gmra.mrb[24].mxu1 %vm54_vm1, %v679_v55  ;;  %1650 = vmatprep.mubr.msk.f32.mxu0 %vm54_vm1, %v471_v56 }
  0x3a   :  { %1678 = vmatprep.mubr.msk.f32.mxu1 %vm54_vm1, %v680_v57 }
  0x3c   :  { %1651 = vmatmul.mubr.msk.f32.gmra.mrb[26].mxu0 %vm54_vm1, %v472_v58 }
  0x3d   :  { %1679 = vmatmul.mubr.msk.f32.gmra.mrb[26].mxu1 %vm54_vm1, %v681_v59  ;;  %1653 = vmatprep.mubr.msk.f32.mxu0 %vm54_vm1, %v473_v60 }
  0x3e   :  { %1681 = vmatprep.mubr.msk.f32.mxu1 %vm54_vm1, %v682_v61 }
  0x40   :  { %1654 = vmatmul.mubr.msk.f32.gmra.mrb[28].mxu0 %vm54_vm1, %v474_v62 }
  0x41   :  { %1682 = vmatmul.mubr.msk.f32.gmra.mrb[28].mxu1 %vm54_vm1, %v683_v63  ;;  %1656 = vmatprep.mubr.msk.f32.mxu0 %vm54_vm1, %v475_v0 }
  0x42   :  { %1684 = vmatprep.mubr.msk.f32.mxu1 %vm54_vm1, %v684_v1 }
  0x44   :  { %1657 = vmatmul.mubr.msk.f32.gmra.mrb[30].mxu0 %vm54_vm1, %v476_v2 }
  0x45   :  { %1685 = vmatmul.mubr.msk.f32.gmra.mrb[30].mxu1 %vm54_vm1, %v685_v3 }
  0xdb   :  { %v1581_v5 = vpop.f32.mrb[0].mxu0 }
  0xdc   :  { %v1609_v6 = vpop.f32.mrb[0].mxu1  ;;  %v2048_v7 = vadd.f32 %v1581_v5, %v2045_v4  ;;  %v173_v8 = vpop.f32.mrb[1].mxu0 }
  0xdd   :  { %v2051_v9 = vadd.f32 %v1609_v6, %v2045_v4  ;;  %v382_v10 = vpop.f32.mrb[1].mxu1  ;;  %v2054_v11 = vadd.f32 %v2045_v4, %v173_v8 }
  0xde   :  { %v2057_v12 = vadd.f32 %v2045_v4, %v382_v10  ;;  %v881_v13 = vsel %vm879_vm4, %v2048_v7, 0.0  ;;  %v1032_v14 = vmul.f32 %v2048_v7, %v2048_v7 }
  0xdf   :  { %3098 = vst [vmem:[#allocation2_spill] sm:$0xff] %v2051_v9  ;;  %v918_v15 = vsel %vm879_vm4, %v2051_v9, 0.0  ;;  %v1085_v16 = vmul.f32 %v2051_v9, %v2051_v9  ;;  %v880_v17 = vsel %vm879_vm4, %v2054_v11, 0.0  ;;  %v1031_v18 = vmul.f32 %v2054_v11, %v2054_v11  ;;  %v1584_v21 = vpop.f32.mrb[2].mxu0 }
  0xe0   :  { %3099 = vst [vmem:[#allocation3_spill] sm:$0xff] %v2057_v12  ;;  %v917_v19 = vsel %vm879_vm4, %v2057_v12, 0.0  ;;  %v1084_v20 = vmul.f32 %v2057_v12, %v2057_v12  ;;  %v1612_v22 = vpop.f32.mrb[2].mxu1  ;;  %v1048_v23 = vsel %vm879_vm4, %v1032_v14, 0.0  ;;  %v183_v26 = vpop.f32.mrb[3].mxu0  ;;  %v2080_v30 = vadd.f32 %v1584_v21, %v2045_v4 }
  0xe1   :  { %v1101_v24 = vsel %vm879_vm4, %v1085_v16, 0.0  ;;  %v919_v25 = vadd.f32 %v918_v15, %v917_v19  ;;  %v392_v27 = vpop.f32.mrb[3].mxu1  ;;  %v1047_v28 = vsel %vm879_vm4, %v1031_v18, 0.0  ;;  %v2083_v31 = vadd.f32 %v1612_v22, %v2045_v4 }
  0xe2   :  { %v1100_v29 = vsel %vm879_vm4, %v1084_v20, 0.0  ;;  %v882_v32 = vadd.f32 %v881_v13, %v880_v17  ;;  %v2086_v33 = vadd.f32 %v2045_v4, %v183_v26  ;;  %v2089_v34 = vadd.f32 %v2045_v4, %v392_v27 }
  0xe3   :  { %3100 = vst [vmem:[#allocation4_spill] sm:$0xff] %v2083_v31  ;;  %v1049_v35 = vadd.f32 %v1048_v23, %v1047_v28  ;;  %v1102_v36 = vadd.f32 %v1101_v24, %v1100_v29  ;;  %v1034_v37 = vmul.f32 %v2080_v30, %v2080_v30  ;;  %v1087_v38 = vmul.f32 %v2083_v31, %v2083_v31  ;;  %v1587_v39 = vpop.f32.mrb[4].mxu0 }
  0xe4   :  { %3101 = vst [vmem:[#allocation5_spill] sm:$0xff] %v2089_v34  ;;  %v1615_v40 = vpop.f32.mrb[4].mxu1  ;;  %v883_v41 = vsel %vm879_vm4, %v2086_v33, 0.0  ;;  %v1033_v42 = vmul.f32 %v2086_v33, %v2086_v33  ;;  %v920_v43 = vsel %vm879_vm4, %v2089_v34, 0.0  ;;  %v1086_v44 = vmul.f32 %v2089_v34, %v2089_v34  ;;  %v193_v45 = vpop.f32.mrb[5].mxu0 }
  0xe5   :  { %v402_v46 = vpop.f32.mrb[5].mxu1  ;;  %v885_v47 = vsel %vm879_vm4, %v2080_v30, 0.0  ;;  %v922_v48 = vsel %vm879_vm4, %v2083_v31, 0.0  ;;  %v884_v49 = vadd.f32 %v883_v41, %v882_v32  ;;  %v921_v50 = vadd.f32 %v920_v43, %v919_v25 }
  0xe6   :  { %v1050_v51 = vsel %vm879_vm4, %v1033_v42, 0.0  ;;  %v1103_v52 = vsel %vm879_vm4, %v1086_v44, 0.0  ;;  %v2110_v53 = vadd.f32 %v1587_v39, %v2045_v4  ;;  %v2113_v54 = vadd.f32 %v1615_v40, %v2045_v4 }
  0xe7   :  { %v1051_v55 = vadd.f32 %v1050_v51, %v1049_v35  ;;  %v1104_v56 = vadd.f32 %v1103_v52, %v1102_v36  ;;  %v2116_v57 = vadd.f32 %v2045_v4, %v193_v45  ;;  %v886_v58 = vadd.f32 %v885_v47, %v884_v49  ;;  %v1590_v59 = vpop.f32.mrb[6].mxu0 }
  0xe8   :  { %3102 = vst [vmem:[#allocation6_spill] sm:$0xff] %v2113_v54  ;;  %v1618_v60 = vpop.f32.mrb[6].mxu1  ;;  %v1052_v61 = vsel %vm879_vm4, %v1034_v37, 0.0  ;;  %v1105_v62 = vsel %vm879_vm4, %v1087_v38, 0.0  ;;  %v889_v63 = vsel %vm879_vm4, %v2110_v53, 0.0  ;;  %v1036_v0 = vmul.f32 %v2110_v53, %v2110_v53  ;;  %v203_v1 = vpop.f32.mrb[7].mxu0 }
  0xe9   :  { %v412_v2 = vpop.f32.mrb[7].mxu1  ;;  %v887_v3 = vsel %vm879_vm4, %v2116_v57, 0.0  ;;  %v1035_v5 = vmul.f32 %v2116_v57, %v2116_v57  ;;  %v1053_v6 = vadd.f32 %v1052_v61, %v1051_v55  ;;  %v2129_v8 = vadd.f32 %v2045_v4, %v402_v46 }
  0xea   :  { %v926_v10 = vsel %vm879_vm4, %v2113_v54, 0.0  ;;  %v1089_v13 = vmul.f32 %v2113_v54, %v2113_v54  ;;  %v888_v14 = vadd.f32 %v887_v3, %v886_v58  ;;  %v923_v15 = vadd.f32 %v922_v48, %v921_v50 }
  0xeb   :  { %3103 = vst [vmem:[#allocation7_spill] sm:$0xff] %v2129_v8  ;;  %v1054_v16 = vsel %vm879_vm4, %v1035_v5, 0.0  ;;  %v924_v17 = vsel %vm879_vm4, %v2129_v8, 0.0  ;;  %v1088_v18 = vmul.f32 %v2129_v8, %v2129_v8  ;;  %v1106_v19 = vadd.f32 %v1105_v62, %v1104_v56  ;;  %v1593_v20 = vpop.f32.mrb[8].mxu0 }
  0xec   :  { %v1621_v21 = vpop.f32.mrb[8].mxu1  ;;  %v1055_v22 = vadd.f32 %v1054_v16, %v1053_v6  ;;  %v925_v23 = vadd.f32 %v924_v17, %v923_v15  ;;  %v2141_v24 = vadd.f32 %v1590_v59, %v2045_v4  ;;  %v2144_v25 = vadd.f32 %v1618_v60, %v2045_v4  ;;  %v213_v26 = vpop.f32.mrb[9].mxu0 }
  0xed   :  { %v422_v27 = vpop.f32.mrb[9].mxu1  ;;  %v1107_v28 = vsel %vm879_vm4, %v1088_v18, 0.0  ;;  %v2148_v29 = vadd.f32 %v2045_v4, %v203_v1  ;;  %v890_v32 = vadd.f32 %v889_v63, %v888_v14  ;;  %v2151_v35 = vadd.f32 %v2045_v4, %v412_v2 }
  0xee   :  { %3104 = vst [vmem:[#allocation8_spill] sm:$0xff] %v2144_v25  ;;  %v1056_v36 = vsel %vm879_vm4, %v1036_v0, 0.0  ;;  %v1109_v37 = vsel %vm879_vm4, %v1089_v13, 0.0  ;;  %v1108_v38 = vadd.f32 %v1107_v28, %v1106_v19  ;;  %v893_v39 = vsel %vm879_vm4, %v2141_v24, 0.0 }
  0xef   :  { %3105 = vst [vmem:[#allocation9_spill] sm:$0xff] %v2151_v35  ;;  %v1038_v40 = vmul.f32 %v2141_v24, %v2141_v24  ;;  %v891_v41 = vsel %vm879_vm4, %v2148_v29, 0.0  ;;  %v1037_v42 = vmul.f32 %v2148_v29, %v2148_v29  ;;  %v1057_v43 = vadd.f32 %v1056_v36, %v1055_v22  ;;  %v1596_v44 = vpop.f32.mrb[10].mxu0 }
  0xf0   :  { %v1624_v45 = vpop.f32.mrb[10].mxu1  ;;  %v1091_v46 = vmul.f32 %v2144_v25, %v2144_v25  ;;  %v892_v47 = vadd.f32 %v891_v41, %v890_v32  ;;  %v927_v48 = vadd.f32 %v926_v10, %v925_v23  ;;  %v928_v49 = vsel %vm879_vm4, %v2151_v35, 0.0  ;;  %v223_v50 = vpop.f32.mrb[11].mxu0 }
  0xf1   :  { %v432_v51 = vpop.f32.mrb[11].mxu1  ;;  %v930_v52 = vsel %vm879_vm4, %v2144_v25, 0.0  ;;  %v1058_v55 = vsel %vm879_vm4, %v1037_v42, 0.0  ;;  %v1090_v56 = vmul.f32 %v2151_v35, %v2151_v35  ;;  %v1110_v58 = vadd.f32 %v1109_v37, %v1108_v38 }
  0xf2   :  { %v1059_v59 = vadd.f32 %v1058_v55, %v1057_v43  ;;  %v929_v60 = vadd.f32 %v928_v49, %v927_v48  ;;  %v2173_v61 = vadd.f32 %v1593_v20, %v2045_v4  ;;  %v2176_v62 = vadd.f32 %v1621_v21, %v2045_v4 }
  0xf3   :  { %v1111_v63 = vsel %vm879_vm4, %v1090_v56, 0.0  ;;  %v2180_v0 = vadd.f32 %v2045_v4, %v213_v26  ;;  %v894_v1 = vadd.f32 %v893_v39, %v892_v47  ;;  %v2183_v2 = vadd.f32 %v2045_v4, %v422_v27  ;;  %v1599_v3 = vpop.f32.mrb[12].mxu0 }
  0xf4   :  { %3106 = vst [vmem:[#allocation10_spill] sm:$0xff] %v2176_v62  ;;  %v1627_v5 = vpop.f32.mrb[12].mxu1  ;;  %v1060_v6 = vsel %vm879_vm4, %v1038_v40, 0.0  ;;  %v1113_v10 = vsel %vm879_vm4, %v1091_v46, 0.0  ;;  %v1112_v13 = vadd.f32 %v1111_v63, %v1110_v58  ;;  %v897_v14 = vsel %vm879_vm4, %v2173_v61, 0.0  ;;  %v233_v15 = vpop.f32.mrb[13].mxu0 }
  0xf5   :  { %3107 = vst [vmem:[#allocation11_spill] sm:$0xff] %v2183_v2  ;;  %v442_v16 = vpop.f32.mrb[13].mxu1  ;;  %v1040_v17 = vmul.f32 %v2173_v61, %v2173_v61  ;;  %v895_v18 = vsel %vm879_vm4, %v2180_v0, 0.0  ;;  %v1039_v19 = vmul.f32 %v2180_v0, %v2180_v0  ;;  %v1061_v20 = vadd.f32 %v1060_v6, %v1059_v59 }
  0xf6   :  { %v1093_v21 = vmul.f32 %v2176_v62, %v2176_v62  ;;  %v896_v22 = vadd.f32 %v895_v18, %v894_v1  ;;  %v931_v23 = vadd.f32 %v930_v52, %v929_v60  ;;  %v932_v26 = vsel %vm879_vm4, %v2183_v2, 0.0 }
  0xf7   :  { %v934_v27 = vsel %vm879_vm4, %v2176_v62, 0.0  ;;  %v1062_v28 = vsel %vm879_vm4, %v1039_v19, 0.0  ;;  %v1092_v32 = vmul.f32 %v2183_v2, %v2183_v2  ;;  %v1114_v36 = vadd.f32 %v1113_v10, %v1112_v13  ;;  %v2204_v37 = vpop.f32.mrb[14].mxu0 }
  0xf8   :  { %v2206_v38 = vpop.f32.mrb[14].mxu1  ;;  %v1063_v39 = vadd.f32 %v1062_v28, %v1061_v20  ;;  %v933_v40 = vadd.f32 %v932_v26, %v931_v23  ;;  %v2209_v41 = vadd.f32 %v1596_v44, %v2045_v4  ;;  %v2212_v42 = vadd.f32 %v1624_v45, %v2045_v4  ;;  %v2214_v43 = vpop.f32.mrb[15].mxu0 }
  0xf9   :  { %v2216_v46 = vpop.f32.mrb[15].mxu1  ;;  %v1115_v47 = vsel %vm879_vm4, %v1092_v32, 0.0  ;;  %v2220_v48 = vadd.f32 %v2045_v4, %v223_v50  ;;  %v898_v49 = vadd.f32 %v897_v14, %v896_v22  ;;  %v2223_v52 = vadd.f32 %v2045_v4, %v432_v51 }
  0xfa   :  { %3108 = vst [vmem:[#allocation12_spill] sm:$0xff] %v2212_v42  ;;  %v1064_v55 = vsel %vm879_vm4, %v1040_v17, 0.0  ;;  %v1117_v44 = vsel %vm879_vm4, %v1093_v21, 0.0  ;;  %v1116_v56 = vadd.f32 %v1115_v47, %v1114_v36  ;;  %v901_v45 = vsel %vm879_vm4, %v2209_v41, 0.0 }
  0xfb   :  { %3109 = vst [vmem:[#allocation13_spill] sm:$0xff] %v2223_v52  ;;  %v1042_v58 = vmul.f32 %v2209_v41, %v2209_v41  ;;  %v899_v59 = vsel %vm879_vm4, %v2220_v48, 0.0  ;;  %v1041_v50 = vmul.f32 %v2220_v48, %v2220_v48  ;;  %v1065_v60 = vadd.f32 %v1064_v55, %v1063_v39  ;;  %v2235_v51 = vpop.f32.mrb[16].mxu0 }
  0xfc   :  { %v2237_v63 = vpop.f32.mrb[16].mxu1  ;;  %v1095_v1 = vmul.f32 %v2212_v42, %v2212_v42  ;;  %v900_v6 = vadd.f32 %v899_v59, %v898_v49  ;;  %v935_v10 = vadd.f32 %v934_v27, %v933_v40  ;;  %v936_v13 = vsel %vm879_vm4, %v2223_v52, 0.0  ;;  %v2243_v14 = vpop.f32.mrb[17].mxu0 }
  0xfd   :  { %v2245_v17 = vpop.f32.mrb[17].mxu1  ;;  %v938_v18 = vsel %vm879_vm4, %v2212_v42, 0.0  ;;  %v1066_v19 = vsel %vm879_vm4, %v1041_v50, 0.0  ;;  %v1094_v20 = vmul.f32 %v2223_v52, %v2223_v52  ;;  %v1118_v21 = vadd.f32 %v1117_v44, %v1116_v56 }
  0xfe   :  { %v1067_v22 = vadd.f32 %v1066_v19, %v1065_v60  ;;  %v937_v23 = vadd.f32 %v936_v13, %v935_v10  ;;  %v2253_v26 = vadd.f32 %v1599_v3, %v2045_v4  ;;  %v2256_v27 = vadd.f32 %v1627_v5, %v2045_v4 }
  0xff   :  { %v1119_v28 = vsel %vm879_vm4, %v1094_v20, 0.0  ;;  %v2260_v32 = vadd.f32 %v2045_v4, %v233_v15  ;;  %v902_v36 = vadd.f32 %v901_v45, %v900_v6  ;;  %v2263_v39 = vadd.f32 %v2045_v4, %v442_v16  ;;  %v2265_v40 = vpop.f32.mrb[18].mxu0 }
 0x100   :  { %3110 = vst [vmem:[#allocation14_spill] sm:$0xff] %v2253_v26  ;;  %3111 = vst [vmem:[#allocation15_spill] sm:$0xff] %v2256_v27  ;;  %v2267_v47 = vpop.f32.mrb[18].mxu1  ;;  %v1068_v49 = vsel %vm879_vm4, %v1042_v58, 0.0  ;;  %v1121_v3 = vsel %vm879_vm4, %v1095_v1, 0.0  ;;  %v1120_v55 = vadd.f32 %v1119_v28, %v1118_v21  ;;  %v905_v5 = vsel %vm879_vm4, %v2253_v26, 0.0 }
 0x101   :  { %3112 = vst [vmem:[#allocation16_spill] sm:$0xff] %v2263_v39  ;;  %v2273_v44 = vpop.f32.mrb[19].mxu0  ;;  %v2275_v15 = vpop.f32.mrb[19].mxu1  ;;  %v1044_v16 = vmul.f32 %v2253_v26, %v2253_v26  ;;  %v903_v56 = vsel %vm879_vm4, %v2260_v32, 0.0  ;;  %v1043_v45 = vmul.f32 %v2260_v32, %v2260_v32  ;;  %v1069_v58 = vadd.f32 %v1068_v49, %v1067_v22 }
 0x102   :  { %v1097_v59 = vmul.f32 %v2256_v27, %v2256_v27  ;;  %v904_v50 = vadd.f32 %v903_v56, %v902_v36  ;;  %v939_v60 = vadd.f32 %v938_v18, %v937_v23  ;;  %v940_v1 = vsel %vm879_vm4, %v2263_v39, 0.0 }
 0x103   :  { %v942_v6 = vsel %vm879_vm4, %v2256_v27, 0.0  ;;  %v1070_v10 = vsel %vm879_vm4, %v1043_v45, 0.0  ;;  %v1096_v13 = vmul.f32 %v2263_v39, %v2263_v39  ;;  %v1122_v19 = vadd.f32 %v1121_v3, %v1120_v55  ;;  %v2292_v20 = vpop.f32.mrb[20].mxu0 }
 0x104   :  { %v2294_v21 = vpop.f32.mrb[20].mxu1  ;;  %v1071_v22 = vadd.f32 %v1070_v10, %v1069_v58  ;;  %v941_v28 = vadd.f32 %v940_v1, %v939_v60  ;;  %v2298_v18 = vadd.f32 %v2204_v37, %v2045_v4  ;;  %v2302_v23 = vadd.f32 %v2206_v38, %v2045_v4  ;;  %v2304_v36 = vpop.f32.mrb[21].mxu0 }
 0x105   :  { %v2306_v49 = vpop.f32.mrb[21].mxu1  ;;  %v1123_v3 = vsel %vm879_vm4, %v1096_v13, 0.0  ;;  %v2311_v55 = vadd.f32 %v2045_v4, %v2214_v43  ;;  %v906_v56 = vadd.f32 %v905_v5, %v904_v50  ;;  %v2315_v45 = vadd.f32 %v2045_v4, %v2216_v46 }
 0x106   :  { %3113 = vst [vmem:[#allocation17_spill] sm:$0xff] %v2298_v18  ;;  %3114 = vst [vmem:[#allocation18_spill] sm:$0xff] %v2302_v23  ;;  %v1072_v37 = vsel %vm879_vm4, %v1044_v16, 0.0  ;;  %v1125_v38 = vsel %vm879_vm4, %v1097_v59, 0.0  ;;  %v1124_v58 = vadd.f32 %v1123_v3, %v1122_v19  ;;  %v1046_v60 = vmul.f32 %v2298_v18, %v2298_v18 }
 0x107   :  { %3115 = vst [vmem:[#allocation19_spill] sm:$0xff] %v2311_v55  ;;  %3116 = vst [vmem:[#allocation20_spill] sm:$0xff] %v2315_v45  ;;  %v1099_v1 = vmul.f32 %v2302_v23, %v2302_v23  ;;  %v907_v43 = vsel %vm879_vm4, %v2311_v55, 0.0  ;;  %v1045_v5 = vmul.f32 %v2311_v55, %v2311_v55  ;;  %v1073_v50 = vadd.f32 %v1072_v37, %v1071_v22  ;;  %v2327_v46 = vpop.f32.mrb[22].mxu0 }
 0x108   :  { %v2329_v10 = vpop.f32.mrb[22].mxu1  ;;  %v909_v16 = vsel %vm879_vm4, %v2298_v18, 0.0  ;;  %v908_v59 = vadd.f32 %v907_v43, %v906_v56  ;;  %v943_v13 = vadd.f32 %v942_v6, %v941_v28  ;;  %v944_v19 = vsel %vm879_vm4, %v2315_v45, 0.0  ;;  %v2335_v3 = vpop.f32.mrb[23].mxu0 }
 0x109   :  { %v2337_v27 = vpop.f32.mrb[23].mxu1  ;;  %v946_v39 = vsel %vm879_vm4, %v2302_v23, 0.0  ;;  %v1074_v22 = vsel %vm879_vm4, %v1045_v5, 0.0  ;;  %v1098_v37 = vmul.f32 %v2315_v45, %v2315_v45  ;;  %v1126_v42 = vadd.f32 %v1125_v38, %v1124_v58 }
 0x10a   :  { %v910_v52 = vadd.f32 %v909_v16, %v908_v59  ;;  %v1075_v62 = vadd.f32 %v1074_v22, %v1073_v50  ;;  %v945_v56 = vadd.f32 %v944_v19, %v943_v13  ;;  %v2346_v6 = vadd.f32 %v2235_v51, %v2045_v4 }
 0x10b   :  { %v1076_v28 = vsel %vm879_vm4, %v1046_v60, 0.0  ;;  %v1129_v43 = vsel %vm879_vm4, %v1099_v1, 0.0  ;;  %v1127_v2 = vsel %vm879_vm4, %v1098_v37, 0.0  ;;  %v2353_v5 = vadd.f32 %v2045_v4, %v2243_v14  ;;  %v2355_v23 = vpop.f32.mrb[24].mxu0 }
 0x10c   :  { %3117 = vst [vmem:[#allocation21_spill] sm:$0xff] %v2346_v6  ;;  %v2357_v38 = vpop.f32.mrb[24].mxu1  ;;  %v911_v58 = vrot.slane %v910_v52, 4  ;;  %v1077_v50 = vadd.f32 %v1076_v28, %v1075_v62  ;;  %v947_v16 = vadd.f32 %v946_v39, %v945_v56  ;;  %v1128_v59 = vadd.f32 %v1127_v2, %v1126_v42  ;;  %v2359_v51 = vpop.f32.mrb[25].mxu0 }
 0x10d   :  { %3118 = vst [vmem:[#allocation22_spill] sm:$0xff] %v2353_v5  ;;  %v2361_v13 = vpop.f32.mrb[25].mxu1  ;;  %v1139_v60 = vmul.f32 %v2346_v6, %v2346_v6  ;;  %v1138_v1 = vmul.f32 %v2353_v5, %v2353_v5  ;;  %v2369_v14 = vadd.f32 %v2237_v63, %v2045_v4  ;;  %v2373_v19 = vadd.f32 %v2045_v4, %v2245_v17 }
 0x10e   :  { %v912_v62 = vadd.f32 %v911_v58, %v910_v52  ;;  %v1078_v2 = vrot.slane %v1077_v50, 4  ;;  %v948_v42 = vrot.slane %v947_v16, 4  ;;  %v1130_v39 = vadd.f32 %v1129_v43, %v1128_v59 }
 0x10f   :  { %3119 = vst [vmem:[#allocation23_spill] sm:$0xff] %v2369_v14  ;;  %3120 = vst [vmem:[#allocation24_spill] sm:$0xff] %v2373_v19  ;;  %v956_v22 = vsel %vm879_vm4, %v2346_v6, 0.0  ;;  %v1155_v37 = vsel %vm879_vm4, %v1139_v60, 0.0  ;;  %v955_v56 = vsel %vm879_vm4, %v2353_v5, 0.0  ;;  %v1154_v28 = vsel %vm879_vm4, %v1138_v1, 0.0 }
 0x110   :  { %v2381_v63 = vpop.f32.mrb[26].mxu0  ;;  %v2383_v45 = vpop.f32.mrb[26].mxu1  ;;  %v913_v17 = vrot.slane %v912_v62, 2  ;;  %v1079_v25 = vadd.f32 %v1078_v2, %v1077_v50  ;;  %v949_v52 = vadd.f32 %v948_v42, %v947_v16  ;;  %v1131_v58 = vrot.slane %v1130_v39, 4 }
 0x111   :  { %v2385_v35 = vpop.f32.mrb[27].mxu0  ;;  %v2387_v43 = vpop.f32.mrb[27].mxu1  ;;  %v994_v59 = vsel %vm879_vm4, %v2369_v14, 0.0  ;;  %v1193_v60 = vmul.f32 %v2369_v14, %v2369_v14  ;;  %v993_v1 = vsel %vm879_vm4, %v2373_v19, 0.0  ;;  %v1192_v6 = vmul.f32 %v2373_v19, %v2373_v19 }
 0x112   :  { %v914_v5 = vadd.f32 %v913_v17, %v912_v62  ;;  %v1080_v50 = vrot.slane %v1079_v25, 2  ;;  %v950_v16 = vrot.slane %v949_v52, 2  ;;  %v1132_v2 = vadd.f32 %v1131_v58, %v1130_v39 }
 0x113   :  { %v957_v42 = vadd.f32 %v956_v22, %v955_v56  ;;  %v1209_v54 = vsel %vm879_vm4, %v1193_v60, 0.0  ;;  %v1208_v8 = vsel %vm879_vm4, %v1192_v6, 0.0  ;;  %v2401_v31 = vadd.f32 %v2265_v40, %v2045_v4  ;;  %v2403_v14 = vpop.f32.mrb[28].mxu0 }
 0x114   :  { %v2405_v34 = vpop.f32.mrb[28].mxu1  ;;  %v915_v9 = vrot.slane %v914_v5, 1  ;;  %v1081_v12 = vadd.f32 %v1080_v50, %v1079_v25  ;;  %v951_v19 = vadd.f32 %v950_v16, %v949_v52  ;;  %v1133_v62 = vrot.slane %v1132_v2, 2  ;;  %v2407_v17 = vpop.f32.mrb[29].mxu0 }
 0x115   :  { %3121 = vst [vmem:[#allocation25_spill] sm:$0xff] %v2401_v31  ;;  %v2409_v39 = vpop.f32.mrb[29].mxu1  ;;  %v1156_v22 = vadd.f32 %v1155_v37, %v1154_v28  ;;  %v995_v56 = vadd.f32 %v994_v59, %v993_v1  ;;  %v1141_v6 = vmul.f32 %v2401_v31, %v2401_v31  ;;  %v2415_v40 = vadd.f32 %v2267_v47, %v2045_v4 }
 0x116   :  { %v916_v58 = vadd.f32 %v915_v9, %v914_v5  ;;  %v1082_v60 = vrot.slane %v1081_v12, 1  ;;  %v952_v18 = vrot.slane %v951_v19, 1  ;;  %v1134_v55 = vadd.f32 %v1133_v62, %v1132_v2 }
 0x117   :  { %v1210_v25 = vadd.f32 %v1209_v54, %v1208_v8  ;;  %v960_v52 = vsel %vm879_vm4, %v2401_v31, 0.0  ;;  %v1195_v50 = vmul.f32 %v2415_v40, %v2415_v40  ;;  %v2423_v37 = vadd.f32 %v2045_v4, %v2273_v44  ;;  %v2425_v28 = vpop.f32.mrb[30].mxu0 }
 0x118   :  { %v2427_v59 = vpop.f32.mrb[30].mxu1  ;;  %v1083_v47 = vadd.f32 %v1082_v60, %v1081_v12  ;;  %v953_v9 = vadd.f32 %v952_v18, %v951_v19  ;;  %v1135_v5 = vrot.slane %v1134_v55, 1  ;;  %v2431_v54 = vadd.f32 %v2045_v4, %v2275_v15  ;;  %v2433_v8 = vpop.f32.mrb[31].mxu0 }
 0x119   :  { %3122 = vst [vmem:[#allocation26_spill] sm:$0xff] %v2423_v37  ;;  %v2435_v1 = vpop.f32.mrb[31].mxu1  ;;  %v1159_v16 = vsel %vm879_vm4, %v1141_v6, 0.0  ;;  %v958_v44 = vsel %vm879_vm4, %v2423_v37, 0.0  ;;  %v1140_v2 = vmul.f32 %v2423_v37, %v2423_v37  ;;  %v2444_v12 = vadd.f32 %v2292_v20, %v2045_v4 }
 0x11a   :  { %v2446_v18 = vadd.f32 %v953_v9, %v916_v58  ;;  %v1136_v15 = vadd.f32 %v1135_v5, %v1134_v55  ;;  %v959_v19 = vadd.f32 %v958_v44, %v957_v42  ;;  %v996_v62 = vsel %vm879_vm4, %v2431_v54, 0.0 }
 0x11b   :  { %v998_v6 = vsel %vm879_vm4, %v2415_v40, 0.0  ;;  %v1157_v60 = vsel %vm879_vm4, %v1140_v2, 0.0  ;;  %v997_v31 = vadd.f32 %v996_v62, %v995_v56  ;;  %v1194_v37 = vmul.f32 %v2431_v54, %v2431_v54 }
 0x11c   :  { %v2455_v26 = vadd.f32 %v1136_v15, %v1083_v47  ;;  %v1213_v20 = vsel %vm879_vm4, %v1195_v50, 0.0  ;;  %v1158_v58 = vadd.f32 %v1157_v60, %v1156_v22  ;;  %v2460_v55 = vadd.f32 %v2294_v21, %v2045_v4 }
 0x11d   :  { %v1211_v42 = vsel %vm879_vm4, %v1194_v37, 0.0  ;;  %v2465_v9 = vadd.f32 %v2045_v4, %v2304_v36  ;;  %v961_v5 = vadd.f32 %v960_v52, %v959_v19  ;;  %v2469_v56 = vadd.f32 %v2045_v4, %v2306_v49 }
 0x11e   :  { %v1212_v47 = vadd.f32 %v1211_v42, %v1210_v25  ;;  %v964_v50 = vsel %vm879_vm4, %v2444_v12, 0.0  ;;  %v1143_v22 = vmul.f32 %v2444_v12, %v2444_v12  ;;  %v1197_v21 = vmul.f32 %v2460_v55, %v2460_v55 }
 0x11f   :  { %v962_v37 = vsel %vm879_vm4, %v2465_v9, 0.0  ;;  %v1142_v36 = vmul.f32 %v2465_v9, %v2465_v9  ;;  %v1160_v52 = vadd.f32 %v1159_v16, %v1158_v58  ;;  %v999_v44 = vadd.f32 %v998_v6, %v997_v31 }
 0x120   :  { %v1002_v49 = vsel %vm879_vm4, %v2460_v55, 0.0  ;;  %v963_v25 = vadd.f32 %v962_v37, %v961_v5  ;;  %v1000_v2 = vsel %vm879_vm4, %v2469_v56, 0.0  ;;  %v1196_v15 = vmul.f32 %v2469_v56, %v2469_v56 }
 0x121   :  { %v1161_v19 = vsel %vm879_vm4, %v1142_v36, 0.0  ;;  %v1001_v62 = vadd.f32 %v1000_v2, %v999_v44  ;;  %v1214_v60 = vadd.f32 %v1213_v20, %v1212_v47  ;;  %v2490_v42 = vadd.f32 %v2327_v46, %v2045_v4 }
 0x122   :  { %v1162_v16 = vadd.f32 %v1161_v19, %v1160_v52  ;;  %v1215_v31 = vsel %vm879_vm4, %v1196_v15, 0.0  ;;  %v2495_v6 = vadd.f32 %v2329_v10, %v2045_v4  ;;  %v2499_v58 = vadd.f32 %v2045_v4, %v2335_v3 }
 0x123   :  { %v1217_v5 = vsel %vm879_vm4, %v1197_v21, 0.0  ;;  %v1216_v37 = vadd.f32 %v1215_v31, %v1214_v60  ;;  %v1145_v20 = vmul.f32 %v2490_v42, %v2490_v42  ;;  %v965_v47 = vadd.f32 %v964_v50, %v963_v25 }
 0x124   :  { %v1163_v46 = vsel %vm879_vm4, %v1143_v22, 0.0  ;;  %v968_v36 = vsel %vm879_vm4, %v2490_v42, 0.0  ;;  %v966_v10 = vsel %vm879_vm4, %v2499_v58, 0.0  ;;  %v1144_v52 = vmul.f32 %v2499_v58, %v2499_v58 }
 0x125   :  { %v1199_v3 = vmul.f32 %v2495_v6, %v2495_v6  ;;  %v967_v21 = vadd.f32 %v966_v10, %v965_v47  ;;  %v1164_v44 = vadd.f32 %v1163_v46, %v1162_v16  ;;  %v2515_v2 = vadd.f32 %v2045_v4, %v2337_v27 }
 0x126   :  { %v1167_v50 = vsel %vm879_vm4, %v1145_v20, 0.0  ;;  %v1165_v22 = vsel %vm879_vm4, %v1144_v52, 0.0  ;;  %v1003_v25 = vadd.f32 %v1002_v49, %v1001_v62  ;;  %v1218_v15 = vadd.f32 %v1217_v5, %v1216_v37 }
 0x127   :  { %v1166_v19 = vadd.f32 %v1165_v22, %v1164_v44  ;;  %v1004_v60 = vsel %vm879_vm4, %v2515_v2, 0.0  ;;  %v1198_v31 = vmul.f32 %v2515_v2, %v2515_v2  ;;  %v2525_v16 = vadd.f32 %v2355_v23, %v2045_v4 }
 0x128   :  { %v1005_v47 = vadd.f32 %v1004_v60, %v1003_v25  ;;  %v2529_v27 = vadd.f32 %v2357_v38, %v2045_v4  ;;  %v2533_v49 = vadd.f32 %v2045_v4, %v2359_v51  ;;  %v969_v62 = vadd.f32 %v968_v36, %v967_v21 }
 0x129   :  { %v1006_v5 = vsel %vm879_vm4, %v2495_v6, 0.0  ;;  %v1221_v37 = vsel %vm879_vm4, %v1199_v3, 0.0  ;;  %v1219_v20 = vsel %vm879_vm4, %v1198_v31, 0.0  ;;  %v1168_v46 = vadd.f32 %v1167_v50, %v1166_v19 }
 0x12a   :  { %v1220_v23 = vadd.f32 %v1219_v20, %v1218_v15  ;;  %v1147_v10 = vmul.f32 %v2525_v16, %v2525_v16  ;;  %v970_v38 = vsel %vm879_vm4, %v2533_v49, 0.0  ;;  %v1201_v51 = vmul.f32 %v2529_v27, %v2529_v27 }
 0x12b   :  { %v971_v52 = vadd.f32 %v970_v38, %v969_v62  ;;  %v1146_v36 = vmul.f32 %v2533_v49, %v2533_v49  ;;  %v2549_v3 = vadd.f32 %v2045_v4, %v2361_v13  ;;  %v1007_v21 = vadd.f32 %v1006_v5, %v1005_v47 }
 0x12c   :  { %v1222_v44 = vadd.f32 %v1221_v37, %v1220_v23  ;;  %v2553_v50 = vadd.f32 %v2381_v63, %v2045_v4  ;;  %v2562_v19 = vadd.f32 %v2383_v45, %v2045_v4  ;;  %v972_v13 = vsel %vm879_vm4, %v2525_v16, 0.0 }
 0x12d   :  { %v1169_v22 = vsel %vm879_vm4, %v1146_v36, 0.0  ;;  %v1008_v25 = vsel %vm879_vm4, %v2549_v3, 0.0  ;;  %v1200_v15 = vmul.f32 %v2549_v3, %v2549_v3  ;;  %v1010_v60 = vsel %vm879_vm4, %v2529_v27, 0.0 }
 0x12e   :  { %3123 = vst [vmem:[#allocation27_spill] sm:$0xff] %v2562_v19  ;;  %v1170_v63 = vadd.f32 %v1169_v22, %v1168_v46  ;;  %v1009_v31 = vadd.f32 %v1008_v25, %v1007_v21  ;;  %v1171_v47 = vsel %vm879_vm4, %v1147_v10, 0.0  ;;  %v1225_v62 = vsel %vm879_vm4, %v1201_v51, 0.0 }
 0x12f   :  { %v1223_v5 = vsel %vm879_vm4, %v1200_v15, 0.0  ;;  %v2573_v37 = vadd.f32 %v2045_v4, %v2385_v35  ;;  %v1149_v20 = vmul.f32 %v2553_v50, %v2553_v50  ;;  %v973_v23 = vadd.f32 %v972_v13, %v971_v52 }
 0x130   :  { %v1224_v45 = vadd.f32 %v1223_v5, %v1222_v44  ;;  %v1172_v38 = vadd.f32 %v1171_v47, %v1170_v63  ;;  %v1203_v46 = vmul.f32 %v2562_v19, %v2562_v19  ;;  %v2585_v36 = vadd.f32 %v2045_v4, %v2387_v43 }
 0x131   :  { %v974_v10 = vsel %vm879_vm4, %v2573_v37, 0.0  ;;  %v1148_v51 = vmul.f32 %v2573_v37, %v2573_v37  ;;  %v1011_v21 = vadd.f32 %v1010_v60, %v1009_v31  ;;  %v2589_v52 = vadd.f32 %v2403_v14, %v2045_v4 }
 0x132   :  { %3124 = vst [vmem:[#allocation28_spill] sm:$0xff] %v2585_v36  ;;  %v975_v35 = vadd.f32 %v974_v10, %v973_v23  ;;  %v1226_v44 = vadd.f32 %v1225_v62, %v1224_v45  ;;  %v1012_v25 = vsel %vm879_vm4, %v2585_v36, 0.0  ;;  %v1202_v15 = vmul.f32 %v2585_v36, %v2585_v36 }
 0x133   :  { %v1173_v22 = vsel %vm879_vm4, %v1148_v51, 0.0  ;;  %v2598_v13 = vadd.f32 %v2405_v34, %v2045_v4  ;;  %v976_v43 = vsel %vm879_vm4, %v2553_v50, 0.0  ;;  %v1014_v60 = vsel %vm879_vm4, %v2562_v19, 0.0 }
 0x134   :  { %v1174_v14 = vadd.f32 %v1173_v22, %v1172_v38  ;;  %v1013_v63 = vadd.f32 %v1012_v25, %v1011_v21  ;;  %v1175_v31 = vsel %vm879_vm4, %v1149_v20, 0.0  ;;  %v1229_v47 = vsel %vm879_vm4, %v1203_v46, 0.0 }
 0x135   :  { %3125 = vst [vmem:[#allocation29_spill] sm:$0xff] %v2598_v13  ;;  %v1227_v62 = vsel %vm879_vm4, %v1202_v15, 0.0  ;;  %v2609_v5 = vadd.f32 %v2045_v4, %v2407_v17  ;;  %v1151_v45 = vmul.f32 %v2589_v52, %v2589_v52  ;;  %v977_v23 = vadd.f32 %v976_v43, %v975_v35 }
 0x136   :  { %v1228_v34 = vadd.f32 %v1227_v62, %v1226_v44  ;;  %v1176_v10 = vadd.f32 %v1175_v31, %v1174_v14  ;;  %v1205_v38 = vmul.f32 %v2598_v13, %v2598_v13  ;;  %v2621_v51 = vadd.f32 %v2045_v4, %v2409_v39 }
 0x137   :  { %v978_v20 = vsel %vm879_vm4, %v2609_v5, 0.0  ;;  %v1150_v46 = vmul.f32 %v2609_v5, %v2609_v5  ;;  %v1015_v21 = vadd.f32 %v1014_v60, %v1013_v63  ;;  %v2625_v35 = vadd.f32 %v2425_v28, %v2045_v4 }
 0x138   :  { %3126 = vst [vmem:[#allocation30_spill] sm:$0xff] %v2621_v51  ;;  %v979_v17 = vadd.f32 %v978_v20, %v977_v23  ;;  %v1230_v44 = vadd.f32 %v1229_v47, %v1228_v34  ;;  %v1016_v25 = vsel %vm879_vm4, %v2621_v51, 0.0  ;;  %v1204_v15 = vmul.f32 %v2621_v51, %v2621_v51 }
 0x139   :  { %v1177_v22 = vsel %vm879_vm4, %v1150_v46, 0.0  ;;  %v2634_v43 = vadd.f32 %v2427_v59, %v2045_v4  ;;  %v980_v39 = vsel %vm879_vm4, %v2589_v52, 0.0  ;;  %v1018_v60 = vsel %vm879_vm4, %v2598_v13, 0.0 }
 0x13a   :  { %v1178_v28 = vadd.f32 %v1177_v22, %v1176_v10  ;;  %v1017_v14 = vadd.f32 %v1016_v25, %v1015_v21  ;;  %v1179_v63 = vsel %vm879_vm4, %v1151_v45, 0.0  ;;  %v1233_v31 = vsel %vm879_vm4, %v1205_v38, 0.0 }
 0x13b   :  { %3127 = vst [vmem:[#allocation31_spill] sm:$0xff] %v2634_v43  ;;  %v1231_v47 = vsel %vm879_vm4, %v1204_v15, 0.0  ;;  %v2645_v62 = vadd.f32 %v2045_v4, %v2433_v8  ;;  %v1153_v34 = vmul.f32 %v2625_v35, %v2625_v35  ;;  %v981_v23 = vadd.f32 %v980_v39, %v979_v17 }
 0x13c   :  { %v1232_v59 = vadd.f32 %v1231_v47, %v1230_v44  ;;  %v1180_v20 = vadd.f32 %v1179_v63, %v1178_v28  ;;  %v1207_v10 = vmul.f32 %v2634_v43, %v2634_v43  ;;  %v2657_v46 = vadd.f32 %v2045_v4, %v2435_v1 }
 0x13d   :  { %v982_v45 = vsel %vm879_vm4, %v2645_v62, 0.0  ;;  %v1152_v38 = vmul.f32 %v2645_v62, %v2645_v62  ;;  %v984_v8 = vsel %vm879_vm4, %v2625_v35, 0.0  ;;  %v1019_v44 = vadd.f32 %v1018_v60, %v1017_v14 }
 0x13e   :  { %3128 = vst [vmem:[#allocation32_spill] sm:$0xff] %v2657_v46  ;;  %v983_v21 = vadd.f32 %v982_v45, %v981_v23  ;;  %v1234_v17 = vadd.f32 %v1233_v31, %v1232_v59  ;;  %v1022_v22 = vsel %vm879_vm4, %v2634_v43, 0.0  ;;  %v1020_v15 = vsel %vm879_vm4, %v2657_v46, 0.0 }
 0x13f   :  { %v1181_v25 = vsel %vm879_vm4, %v1152_v38, 0.0  ;;  %v1206_v39 = vmul.f32 %v2657_v46, %v2657_v46  ;;  %v1021_v1 = vadd.f32 %v1020_v15, %v1019_v44  ;;  %v1183_v63 = vsel %vm879_vm4, %v1153_v34, 0.0 }
 0x140   :  { %v985_v28 = vadd.f32 %v984_v8, %v983_v21  ;;  %v1182_v4 = vadd.f32 %v1181_v25, %v1180_v20  ;;  %v1237_v47 = vsel %vm879_vm4, %v1207_v10, 0.0 }
 0x141   :  { %v1235_v60 = vsel %vm879_vm4, %v1206_v39, 0.0  ;;  %v1023_v59 = vadd.f32 %v1022_v22, %v1021_v1 }
 0x142   :  { %v986_v14 = vrot.slane %v985_v28, 4  ;;  %v1184_v31 = vadd.f32 %v1183_v63, %v1182_v4  ;;  %v1236_v23 = vadd.f32 %v1235_v60, %v1234_v17 }
 0x143   :  { %v1024_v43 = vrot.slane %v1023_v59, 4 }
 0x144   :  { %v987_v45 = vadd.f32 %v986_v14, %v985_v28  ;;  %v1185_v38 = vrot.slane %v1184_v31, 4  ;;  %v1238_v13 = vadd.f32 %v1237_v47, %v1236_v23  ;;  %v1259_v23 = vlaneseq }
 0x145   :  { %v1025_v46 = vadd.f32 %v1024_v43, %v1023_v59 }
 0x146   :  { %v988_v51 = vrot.slane %v987_v45, 2  ;;  %v1186_v19 = vadd.f32 %v1185_v38, %v1184_v31  ;;  %v1239_v8 = vrot.slane %v1238_v13, 4 }
 0x147   :  { %v1026_v44 = vrot.slane %v1025_v46, 2 }
 0x148   :  { %v989_v20 = vadd.f32 %v988_v51, %v987_v45  ;;  %v1187_v21 = vrot.slane %v1186_v19, 2  ;;  %v1240_v34 = vadd.f32 %v1239_v8, %v1238_v13  ;;  %v2673_v45 = vshrl.u32 %v1259_v23, 7  ;;  %v2682_v8 = vld [vmem:[%s3040_s7] sm:$0x1] }
 0x149   :  { %v1027_v15 = vadd.f32 %v1026_v44, %v1025_v46  ;;  %3130 = vst [vmem:[#allocation34_spill] sm:$0xff] %v2682_v8  ;;  %v3172_v8 = vld [vmem:[#allocation26_spill] sm:$0xff] }
 0x14a   :  { %v990_v25 = vrot.slane %v989_v20, 1  ;;  %v1188_v10 = vadd.f32 %v1187_v21, %v1186_v19  ;;  %v1241_v39 = vrot.slane %v1240_v34, 2  ;;  %3129 = vst [vmem:[#allocation33_spill] sm:$0xff] %v2673_v45 }
 0x14b   :  { %v1028_v22 = vrot.slane %v1027_v15, 1 }
 0x14c   :  { %v991_v36 = vadd.f32 %v990_v25, %v989_v20  ;;  %v1189_v4 = vrot.slane %v1188_v10, 1  ;;  %v1242_v17 = vadd.f32 %v1241_v39, %v1240_v34 }
 0x14d   :  { %v1029_v63 = vadd.f32 %v1028_v22, %v1027_v15  ;;  %v3140_v22 = vld [vmem:[#allocation19_spill] sm:$0xff] }
 0x14e   :  { %v992_v28 = vadd.f32 %v991_v36, %v2446_v18  ;;  %v1190_v1 = vadd.f32 %v1189_v4, %v1188_v10  ;;  %v1243_v47 = vrot.slane %v1242_v17, 1  ;;  %v1253_v18 = vld [vmem:[%s3039_s6] sm:$0x1]  ;;  %v3073_v36 = vsub.s32 0, %v2673_v45  ;;  %v3173_v45 = vld [vmem:[#allocation25_spill] sm:$0xff] }
 0x14f   :  { %v3138_v4 = vld [vmem:[#allocation14_spill] sm:$0xff] }
 0x150   :  { %v1191_v43 = vadd.f32 %v1190_v1, %v2455_v26  ;;  %v1030_v60 = vadd.f32 %v1029_v63, %v992_v28  ;;  %v1244_v51 = vadd.f32 %v1243_v47, %v1242_v17  ;;  %v3142_v17 = vld [vmem:[#allocation17_spill] sm:$0xff]  ;;  %v3144_v28 = vld [vmem:[#allocation3_spill] sm:$0xff]  ;;  %v3145_v1 = vld [vmem:[#allocation2_spill] sm:$0xff] }
 0x151   :  { %v3146_v63 = vld [vmem:[#allocation5_spill] sm:$0xff] }
 0x152   :  { %v1245_v14 = vadd.f32 %v1244_v51, %v1191_v43  ;;  %v1247_v31 = vmul.f32 0.001953125, %v1030_v60  ;;  %v3147_v43 = vld [vmem:[#allocation4_spill] sm:$0xff]  ;;  %v3148_v51 = vld [vmem:[#allocation7_spill] sm:$0xff] }
 0x154   :  { %v1248_v13 = vmul.f32 0.001953125, %v1245_v14  ;;  %v1249_v59 = vmul.f32 %v1247_v31, %v1247_v31 }
 0x156   :  { %v1250_v19 = vsub.f32 %v1248_v13, %v1249_v59  ;;  %v3150_v59 = vld [vmem:[#allocation9_spill] sm:$0xff] }
 0x158   :  { %v1251_v46 = vadd.f32 1e-05, %v1250_v19 }
 0x15a   :  { %1712 = vrsqrt.f32 %v1251_v46  ;;  %v3152_v46 = vld [vmem:[#allocation8_spill] sm:$0xff] }
 0x164   :  { %v1713_v38 = vpop.eup %1712 }
 0x165   :  { %v1254_v26 = vmul.f32 %v1713_v38, %v1253_v18  ;;  %v3154_v18 = vld [vmem:[#allocation11_spill] sm:$0xff] }
 0x167   :  { %v2684_v20 = vmul.f32 %v1254_v26, %v1247_v31  ;;  %v2688_v21 = vrot.slane %v1254_v26, %v3073_v36  ;;  %v3149_v31 = vld [vmem:[#allocation6_spill] sm:$0xff] }
 0x168   :  { %v3156_v26 = vld [vmem:[#allocation10_spill] sm:$0xff] }
 0x169   :  { %3131 = vst [vmem:[#allocation35_spill] sm:$0xff] %v2684_v20  ;;  %v2694_v34 = vmul.f32 %v2688_v21, %v2054_v11  ;;  %v2698_v25 = vmul.f32 %v2688_v21, %v2048_v7  ;;  %v2702_v10 = vmul.f32 %v2688_v21, %v2086_v33  ;;  %v2706_v15 = vmul.f32 %v2688_v21, %v2080_v30  ;;  %v3171_v20 = vld [vmem:[#allocation21_spill] sm:$0xff] }
 0x16a   :  { %v2710_v39 = vmul.f32 %v2688_v21, %v2116_v57  ;;  %v2714_v11 = vmul.f32 %v2688_v21, %v2110_v53  ;;  %v2718_v7 = vmul.f32 %v2688_v21, %v2148_v29  ;;  %v2722_v33 = vmul.f32 %v2688_v21, %v2141_v24 }
 0x16b   :  { %v2726_v30 = vmul.f32 %v2688_v21, %v2180_v0  ;;  %v2730_v57 = vmul.f32 %v2688_v21, %v2173_v61  ;;  %v2734_v53 = vmul.f32 %v2688_v21, %v2220_v48  ;;  %v2738_v29 = vmul.f32 %v2688_v21, %v2209_v41 }
 0x16c   :  { %3132 = vst [vmem:[#allocation36_spill] sm:$0xff] %v2722_v33  ;;  %v2742_v24 = vmul.f32 %v2688_v21, %v2260_v32  ;;  %v2746_v0 = vmul.f32 %v2688_v21, %v3138_v4  ;;  %v2750_v61 = vmul.f32 %v2688_v21, %v3140_v22  ;;  %v2754_v48 = vmul.f32 %v2688_v21, %v3142_v17  ;;  %v3158_v22 = vld [vmem:[#allocation13_spill] sm:$0xff] }
 0x16d   :  { %3133 = vst [vmem:[#allocation37_spill] sm:$0xff] %v2726_v30  ;;  %3134 = vst [vmem:[#allocation38_spill] sm:$0xff] %v2730_v57  ;;  %v2758_v41 = vmul.f32 %v2688_v21, %v3144_v28  ;;  %v2762_v32 = vmul.f32 %v2688_v21, %v3145_v1  ;;  %v2766_v47 = vmul.f32 %v2688_v21, %v3146_v63  ;;  %v3160_v28 = vld [vmem:[#allocation12_spill] sm:$0xff] }
 0x16e   :  { %3135 = vst [vmem:[#allocation39_spill] sm:$0xff] %v2734_v53  ;;  %3136 = vst [vmem:[#allocation40_spill] sm:$0xff] %v2738_v29  ;;  %v2770_v60 = vmul.f32 %v2688_v21, %v3147_v43  ;;  %v2774_v14 = vmul.f32 %v2688_v21, %v3148_v51  ;;  %v2778_v13 = vmul.f32 %v2688_v21, %v3149_v31  ;;  %v3162_v63 = vld [vmem:[#allocation16_spill] sm:$0xff]  ;;  %v3164_v51 = vld [vmem:[#allocation15_spill] sm:$0xff] }
 0x16f   :  { %3137 = vst [vmem:[#allocation41_spill] sm:$0xff] %v2742_v24  ;;  %3139 = vst [vmem:[#allocation14_spill] sm:$0xff] %v2746_v0  ;;  %v2782_v19 = vmul.f32 %v2688_v21, %v3150_v59  ;;  %v2786_v23 = vmul.f32 %v2688_v21, %v3152_v46  ;;  %v2790_v38 = vmul.f32 %v2688_v21, %v3154_v18  ;;  %v3166_v59 = vld [vmem:[#allocation20_spill] sm:$0xff]  ;;  %v3168_v18 = vld [vmem:[#allocation18_spill] sm:$0xff] }
 0x170   :  { %3141 = vst [vmem:[#allocation19_spill] sm:$0xff] %v2750_v61  ;;  %3143 = vst [vmem:[#allocation17_spill] sm:$0xff] %v2754_v48  ;;  %v2794_v4 = vmul.f32 %v2688_v21, %v3156_v26  ;;  %v2798_v17 = vmul.f32 %v2688_v21, %v3158_v22  ;;  %v2802_v1 = vmul.f32 %v2688_v21, %v3160_v28  ;;  %v3170_v22 = vld [vmem:[#allocation22_spill] sm:$0xff]  ;;  %v3175_v48 = vld [vmem:[#allocation23_spill] sm:$0xff] }
 0x171   :  { %3151 = vst [vmem:[#allocation3_spill] sm:$0xff] %v2782_v19  ;;  %3153 = vst [vmem:[#allocation2_spill] sm:$0xff] %v2786_v23  ;;  %v2806_v43 = vmul.f32 %v2688_v21, %v3162_v63  ;;  %v2810_v31 = vmul.f32 %v2688_v21, %v3164_v51  ;;  %v2814_v46 = vmul.f32 %v2688_v21, %v3166_v59  ;;  %v3177_v61 = vld [vmem:[#allocation27_spill] sm:$0xff]  ;;  %v3179_v0 = vld [vmem:[#allocation29_spill] sm:$0xff] }
 0x172   :  { %3155 = vst [vmem:[#allocation5_spill] sm:$0xff] %v2790_v38  ;;  %3157 = vst [vmem:[#allocation4_spill] sm:$0xff] %v2794_v4  ;;  %v2818_v26 = vmul.f32 %v2688_v21, %v3168_v18  ;;  %v1312_v63 = vmul.f32 %v2688_v21, %v3170_v22  ;;  %v1313_v51 = vmul.f32 %v2688_v21, %v3171_v20  ;;  %v3181_v24 = vld [vmem:[#allocation31_spill] sm:$0xff] }
 0x173   :  { %3159 = vst [vmem:[#allocation7_spill] sm:$0xff] %v2798_v17  ;;  %3161 = vst [vmem:[#allocation6_spill] sm:$0xff] %v2802_v1  ;;  %v1314_v59 = vmul.f32 %v2688_v21, %v3172_v8  ;;  %v1315_v44 = vmul.f32 %v2688_v21, %v3173_v45  ;;  %v1316_v18 = vmul.f32 %v2688_v21, %v2465_v9 }
 0x174   :  { %3163 = vst [vmem:[#allocation9_spill] sm:$0xff] %v2806_v43  ;;  %3165 = vst [vmem:[#allocation8_spill] sm:$0xff] %v2810_v31  ;;  %v1317_v36 = vmul.f32 %v2688_v21, %v2444_v12  ;;  %v1318_v28 = vmul.f32 %v2688_v21, %v2499_v58  ;;  %v1319_v22 = vmul.f32 %v2688_v21, %v2490_v42  ;;  %v3178_v31 = vld [vmem:[#allocation30_spill] sm:$0xff]  ;;  %v3180_v43 = vld [vmem:[#allocation32_spill] sm:$0xff] }
 0x175   :  { %3167 = vst [vmem:[#allocation11_spill] sm:$0xff] %v2814_v46  ;;  %3169 = vst [vmem:[#allocation10_spill] sm:$0xff] %v2818_v26  ;;  %v1320_v20 = vmul.f32 %v2688_v21, %v2533_v49  ;;  %v1321_v8 = vmul.f32 %v2688_v21, %v2525_v16  ;;  %v1322_v45 = vmul.f32 %v2688_v21, %v2573_v37  ;;  %v3174_v26 = vld [vmem:[#allocation24_spill] sm:$0xff] }
 0x176   :  { %v1323_v9 = vmul.f32 %v2688_v21, %v2553_v50  ;;  %v1324_v12 = vmul.f32 %v2688_v21, %v2609_v5  ;;  %v1325_v58 = vmul.f32 %v2688_v21, %v2589_v52  ;;  %v1326_v42 = vmul.f32 %v2688_v21, %v2645_v62  ;;  %v3176_v46 = vld [vmem:[#allocation28_spill] sm:$0xff] }
 0x177   :  { %v1327_v49 = vmul.f32 %v2688_v21, %v2625_v35  ;;  %v1328_v16 = vmul.f32 %v2688_v21, %v3174_v26  ;;  %v1329_v37 = vmul.f32 %v2688_v21, %v3175_v48  ;;  %v1330_v50 = vmul.f32 %v2688_v21, %v2431_v54 }
 0x178   :  { %v1331_v5 = vmul.f32 %v2688_v21, %v2415_v40  ;;  %v1332_v52 = vmul.f32 %v2688_v21, %v2469_v56  ;;  %v1333_v62 = vmul.f32 %v2688_v21, %v2460_v55  ;;  %v1334_v35 = vmul.f32 %v2688_v21, %v2515_v2 }
 0x179   :  { %v1335_v26 = vmul.f32 %v2688_v21, %v2495_v6  ;;  %v1336_v48 = vmul.f32 %v2688_v21, %v2549_v3  ;;  %v1337_v54 = vmul.f32 %v2688_v21, %v2529_v27  ;;  %v1338_v40 = vmul.f32 %v2688_v21, %v3176_v46 }
 0x17a   :  { %v1339_v56 = vmul.f32 %v2688_v21, %v3177_v61  ;;  %v1340_v55 = vmul.f32 %v2688_v21, %v3178_v31  ;;  %v1341_v2 = vmul.f32 %v2688_v21, %v3179_v0  ;;  %v1342_v6 = vmul.f32 %v2688_v21, %v3180_v43 }
 0x17b   :  { %v1343_v3 = vmul.f32 %v2688_v21, %v3181_v24  ;;  %v1344_v1 = vmax.f32 %v1312_v63, %v1328_v16  ;;  %v1345_v27 = vmax.f32 %v1313_v51, %v1329_v37  ;;  %v1346_v29 = vmax.f32 %v1314_v59, %v1330_v50  ;;  %v3208_v50 = vld [vmem:[#allocation14_spill] sm:$0xff] }
 0x17c   :  { %v1347_v17 = vmax.f32 %v1315_v44, %v1331_v5  ;;  %v1348_v46 = vmax.f32 %v1316_v18, %v1332_v52  ;;  %v1349_v53 = vmax.f32 %v1317_v36, %v1333_v62  ;;  %v1350_v4 = vmax.f32 %v1318_v28, %v1334_v35  ;;  %v3209_v5 = vld [vmem:[#allocation8_spill] sm:$0xff]  ;;  %v3211_v62 = vld [vmem:[#allocation19_spill] sm:$0xff] }
 0x17d   :  { %v1351_v61 = vmax.f32 %v1319_v22, %v1335_v26  ;;  %v1352_v57 = vmax.f32 %v1320_v20, %v1336_v48  ;;  %v1353_v38 = vmax.f32 %v1321_v8, %v1337_v54  ;;  %v1354_v31 = vmax.f32 %v1322_v45, %v1338_v40  ;;  %v3190_v22 = vld [vmem:[#allocation36_spill] sm:$0xff]  ;;  %v3191_v20 = vld [vmem:[#allocation2_spill] sm:$0xff]  ;;  %v3194_v8 = vld [vmem:[#allocation5_spill] sm:$0xff] }
 0x17e   :  { %v1355_v30 = vmax.f32 %v1323_v9, %v1339_v56  ;;  %v1356_v23 = vmax.f32 %v1324_v12, %v1340_v55  ;;  %v1357_v0 = vmax.f32 %v1325_v58, %v1341_v2  ;;  %v1358_v33 = vmax.f32 %v1326_v42, %v1342_v6  ;;  %v3197_v45 = vld [vmem:[#allocation4_spill] sm:$0xff]  ;;  %v3199_v9 = vld [vmem:[#allocation39_spill] sm:$0xff]  ;;  %v3203_v58 = vld [vmem:[#allocation6_spill] sm:$0xff] }
 0x17f   :  { %v1359_v19 = vmax.f32 %v1327_v49, %v1343_v3  ;;  %v3182_v43 = vmax.f32 %v2694_v34, %v2758_v41  ;;  %v3183_v24 = vmax.f32 %v2698_v25, %v2762_v32  ;;  %v3184_v36 = vmax.f32 %v2702_v10, %v2766_v47  ;;  %v3193_v47 = vld [vmem:[#allocation37_spill] sm:$0xff]  ;;  %v3200_v12 = vld [vmem:[#allocation7_spill] sm:$0xff]  ;;  %v3215_v54 = vld [vmem:[#allocation10_spill] sm:$0xff] }
 0x180   :  { %v3185_v63 = vmax.f32 %v2706_v15, %v2770_v60  ;;  %v3186_v59 = vmax.f32 %v2710_v39, %v2774_v14  ;;  %v3187_v34 = vmax.f32 %v2714_v11, %v2778_v13  ;;  %v3192_v10 = vmax.f32 %v3190_v22, %v3191_v20  ;;  %v3202_v13 = vld [vmem:[#allocation40_spill] sm:$0xff]  ;;  %v3205_v42 = vld [vmem:[#allocation41_spill] sm:$0xff]  ;;  %v3212_v35 = vld [vmem:[#allocation11_spill] sm:$0xff] }
 0x181   :  { %v1360_v21 = vmax.f32 %v3182_v43, %v1344_v1  ;;  %v1361_v44 = vmax.f32 %v3183_v24, %v1345_v27  ;;  %v1362_v28 = vmax.f32 %v3184_v36, %v1346_v29  ;;  %v3188_v1 = vld [vmem:[#allocation3_spill] sm:$0xff]  ;;  %v3195_v15 = vmax.f32 %v3193_v47, %v3194_v8  ;;  %v3206_v49 = vld [vmem:[#allocation9_spill] sm:$0xff]  ;;  %v3219_v6 = vld [vmem:[#allocation34_spill] sm:$0xff] }
 0x182   :  { %v1363_v51 = vmax.f32 %v3185_v63, %v1347_v17  ;;  %v1364_v18 = vmax.f32 %v3186_v59, %v1348_v46  ;;  %v1365_v41 = vmax.f32 %v3187_v34, %v1349_v53  ;;  %v3189_v25 = vmax.f32 %v2718_v7, %v3188_v1  ;;  %v3196_v17 = vld [vmem:[#allocation38_spill] sm:$0xff]  ;;  %v3214_v48 = vld [vmem:[#allocation17_spill] sm:$0xff] }
 0x183   :  { %v1367_v29 = vmax.f32 %v3192_v10, %v1351_v61  ;;  %v1368_v60 = vmax.f32 %v3195_v15, %v1352_v57  ;;  %v3198_v39 = vmax.f32 %v3196_v17, %v3197_v45  ;;  %v3201_v11 = vmax.f32 %v3199_v9, %v3200_v12  ;;  %v3217_v55 = vld [vmem:[#allocation33_spill] sm:$0xff] }
 0x184   :  { %v1366_v32 = vmax.f32 %v3189_v25, %v1350_v4  ;;  %v3204_v7 = vmax.f32 %v3202_v13, %v3203_v58  ;;  %v3207_v16 = vmax.f32 %v3205_v42, %v3206_v49  ;;  %v3210_v52 = vmax.f32 %v3208_v50, %v3209_v5 }
 0x185   :  { %v1369_v14 = vmax.f32 %v3198_v39, %v1353_v38  ;;  %v1370_v53 = vmax.f32 %v3201_v11, %v1354_v31  ;;  %v3213_v26 = vmax.f32 %v3211_v62, %v3212_v35  ;;  %v3216_v40 = vmax.f32 %v3214_v48, %v3215_v54 }
 0x186   :  { %v1371_v4 = vmax.f32 %v3204_v7, %v1355_v30  ;;  %v1372_v37 = vmax.f32 %v3207_v16, %v1356_v23  ;;  %v1373_v57 = vmax.f32 %v3210_v52, %v1357_v0  ;;  %v3218_v2 = vsub.s32 0, %v3217_v55  ;;  %v3220_v30 = vld [vmem:[#allocation35_spill] sm:$0xff] }
 0x187   :  { %v1374_v38 = vmax.f32 %v3213_v26, %v1358_v33  ;;  %v1375_v56 = vmax.f32 %v3216_v40, %v1359_v19  ;;  %v3221_v3 = vsub.f32 %v3219_v6, %v3220_v30 }
 0x189   :  { %v1380_v27 = vrot.slane %v3221_v3, %v3218_v2 }
 0x18b   :  { %v1382_v46 = vadd.f32 %v1380_v27, %v1360_v21  ;;  %v1383_v23 = vadd.f32 %v1380_v27, %v1361_v44  ;;  %v1384_v61 = vadd.f32 %v1380_v27, %v1362_v28  ;;  %v1385_v31 = vadd.f32 %v1380_v27, %v1363_v51 }
 0x18c   :  { %v1386_v43 = vadd.f32 %v1380_v27, %v1364_v18  ;;  %v1387_v0 = vadd.f32 %v1380_v27, %v1365_v41  ;;  %v1388_v24 = vadd.f32 %v1380_v27, %v1366_v32  ;;  %v1389_v36 = vadd.f32 %v1380_v27, %v1367_v29 }
 0x18d   :  { %v1390_v63 = vadd.f32 %v1380_v27, %v1368_v60  ;;  %v1391_v33 = vadd.f32 %v1380_v27, %v1369_v14  ;;  %v1392_v59 = vadd.f32 %v1380_v27, %v1370_v53  ;;  %v1393_v34 = vadd.f32 %v1380_v27, %v1371_v4 }
 0x18e   :  { %v1394_v1 = vadd.f32 %v1380_v27, %v1372_v37  ;;  %v1395_v19 = vadd.f32 %v1380_v27, %v1373_v57  ;;  %v1396_v25 = vadd.f32 %v1380_v27, %v1374_v38  ;;  %v1397_v22 = vadd.f32 %v1380_v27, %v1375_v56 }
 0x18f   :  { %v1398_v20 = vmax.f32 %v1382_v46, 0.0  ;;  %v1399_v10 = vmax.f32 %v1383_v23, 0.0  ;;  %v1400_v47 = vmax.f32 %v1384_v61, 0.0  ;;  %v1401_v8 = vmax.f32 %v1385_v31, 0.0 }
 0x190   :  { %v1402_v21 = vmax.f32 %v1386_v43, 0.0  ;;  %v1403_v44 = vmax.f32 %v1387_v0, 0.0  ;;  %v1404_v28 = vmax.f32 %v1388_v24, 0.0  ;;  %v1405_v51 = vmax.f32 %v1389_v36, 0.0 }
 0x191   :  { %v1406_v18 = vmax.f32 %v1390_v63, 0.0  ;;  %v1407_v41 = vmax.f32 %v1391_v33, 0.0  ;;  %v1408_v32 = vmax.f32 %v1392_v59, 0.0  ;;  %v1409_v29 = vmax.f32 %v1393_v34, 0.0  ;;  %1414 = vst.msk [vmem:[%s3041_s8] sm:$0xff] %vm879_vm4, %v1398_v20  ;;  %1415 = vst.msk [vmem:[%s3041_s8 + $0x8] sm:$0xff] %vm879_vm4, %v1399_v10 }
 0x192   :  { %1416 = vst.msk [vmem:[%s3041_s8 + $0x10] sm:$0xff] %vm879_vm4, %v1400_v47  ;;  %1417 = vst.msk [vmem:[%s3041_s8 + $0x18] sm:$0xff] %vm879_vm4, %v1401_v8  ;;  %v1410_v15 = vmax.f32 %v1394_v1, 0.0  ;;  %v1411_v60 = vmax.f32 %v1395_v19, 0.0  ;;  %v1412_v17 = vmax.f32 %v1396_v25, 0.0  ;;  %v1413_v45 = vmax.f32 %v1397_v22, 0.0 }
 0x193   :  { %1418 = vst.msk [vmem:[%s3041_s8 + $0x20] sm:$0xff] %vm879_vm4, %v1402_v21  ;;  %1419 = vst.msk [vmem:[%s3041_s8 + $0x28] sm:$0xff] %vm879_vm4, %v1403_v44 }
 0x194   :  { %1420 = vst.msk [vmem:[%s3041_s8 + $0x30] sm:$0xff] %vm879_vm4, %v1404_v28  ;;  %1421 = vst.msk [vmem:[%s3041_s8 + $0x38] sm:$0xff] %vm879_vm4, %v1405_v51 }
 0x195   :  { %1422 = vst.msk [vmem:[%s3041_s8 + $0x40] sm:$0xff] %vm879_vm4, %v1406_v18  ;;  %1423 = vst.msk [vmem:[%s3041_s8 + $0x48] sm:$0xff] %vm879_vm4, %v1407_v41 }
 0x196   :  { %1424 = vst.msk [vmem:[%s3041_s8 + $0x50] sm:$0xff] %vm879_vm4, %v1408_v32  ;;  %1425 = vst.msk [vmem:[%s3041_s8 + $0x58] sm:$0xff] %vm879_vm4, %v1409_v29 }
 0x197   :  { %1426 = vst.msk [vmem:[%s3041_s8 + $0x60] sm:$0xff] %vm879_vm4, %v1410_v15  ;;  %1427 = vst.msk [vmem:[%s3041_s8 + $0x68] sm:$0xff] %vm879_vm4, %v1411_v60 }
 0x198   :  { %1428 = vst.msk [vmem:[%s3041_s8 + $0x70] sm:$0xff] %vm879_vm4, %v1412_v17  ;;  %1429 = vst.msk [vmem:[%s3041_s8 + $0x78] sm:$0xff] %vm879_vm4, %v1413_v45 }

// kernel: convnet_s_forward.5
= control target key start
LH: loop header
LB: loop body
LE: loop exit
PB: predicated region body
PF: predicated region fallthrough
CT: control target
= control target key end

     0   :  { %vm128_vm0 = vcmask 523264   ;;  %s3204_s4 = inlined_call_operand.vmem [shape: f32[576,64], index: 4, kind: input, shape index: {}]   ;;  %s3205_s0 = inlined_call_operand.vmem [shape: f32[32,576], index: 0, kind: input, shape index: {}]   ;;  %s3206_s1 = inlined_call_operand.vmem [shape: f32[32,576], index: 1, kind: input, shape index: {}]   ;;  %s3207_s2 = inlined_call_operand.vmem [shape: f32[32,576], index: 2, kind: input, shape index: {}]   ;;  %s3208_s3 = inlined_call_operand.vmem [shape: f32[32,576], index: 3, kind: input, shape index: {}]   ;;  %s3209_s5 = inlined_call_operand.vmem [shape: f32[1,64], index: 5, kind: input, shape index: {}]   ;;  %s3210_s6 = inlined_call_operand.vmem [shape: f32[1,64], index: 6, kind: input, shape index: {}]   ;;  %s3211_s7 = inlined_call_operand.vmem [shape: f32[1,64], index: 7, kind: input, shape index: {}]   ;;  %s3212_s8 = inlined_call_operand.vmem [shape: f32[32,64], index: 8, kind: output, shape index: {}]  }
   0x1   :  { %v45_v0 = vld [vmem:[%s3204_s4 + $0x80] sm:$0xff]  ;;  %v46_v1 = vld [vmem:[%s3204_s4 + $0x88] sm:$0xff]  ;;  %v47_v11 = vld [vmem:[%s3204_s4 + $0x90] sm:$0xff] }
   0x2   :  { %v29_v2 = vld [vmem:[%s3204_s4] sm:$0xff]  ;;  %v2332_v3 = vpack.c.bf16 %v46_v1, %v45_v0  ;;  %v30_v4 = vld [vmem:[%s3204_s4 + $0x8] sm:$0xff]  ;;  %v48_v13 = vld [vmem:[%s3204_s4 + $0x98] sm:$0xff] }
   0x3   :  { %v77_v5 = vld [vmem:[%s3204_s4 + $0x180] sm:$0xff]  ;;  %v78_v6 = vld [vmem:[%s3204_s4 + $0x188] sm:$0xff]  ;;  %v2343_v7 = vpack.c.bf16 %v30_v4, %v29_v2  ;;  %v31_v14 = vld [vmem:[%s3204_s4 + $0x10] sm:$0xff]  ;;  %v2370_v16 = vpack.c.bf16 %v48_v13, %v47_v11 }
   0x4   :  { %v2345_v8 = vpack.c.bf16 %v78_v6, %v77_v5  ;;  %v61_v9 = vld [vmem:[%s3204_s4 + $0x100] sm:$0xff]  ;;  %v62_v10 = vld [vmem:[%s3204_s4 + $0x108] sm:$0xff]  ;;  %1957 = vmatprep.subr.bf16.mxu0 %v2332_v3  ;;  %v32_v15 = vld [vmem:[%s3204_s4 + $0x18] sm:$0xff] }
   0x5   :  { %v2357_v12 = vpack.c.bf16 %v62_v10, %v61_v9  ;;  %1959 = vmatpush3.bf16.msra.mxu0 %v2343_v7  ;;  %v2372_v17 = vpack.c.bf16 %v32_v15, %v31_v14  ;;  %v79_v18 = vld [vmem:[%s3204_s4 + $0x190] sm:$0xff]  ;;  %v80_v19 = vld [vmem:[%s3204_s4 + $0x198] sm:$0xff]  ;;  %v49_v23 = vld [vmem:[%s3204_s4 + $0xa0] sm:$0xff] }
   0x6   :  { %1989 = vmatprep.subr.bf16.mxu1 %v2345_v8  ;;  %v63_v20 = vld [vmem:[%s3204_s4 + $0x110] sm:$0xff]  ;;  %v2384_v21 = vpack.c.bf16 %v80_v19, %v79_v18  ;;  %v64_v22 = vld [vmem:[%s3204_s4 + $0x118] sm:$0xff]  ;;  %v50_v24 = vld [vmem:[%s3204_s4 + $0xa8] sm:$0xff]  ;;  %1961 = vmatprep.subr.bf16.mxu0 %v2370_v16 }
   0x7   :  { %1991 = vmatpush3.bf16.msra.mxu1 %v2357_v12  ;;  %v2396_v25 = vpack.c.bf16 %v64_v22, %v63_v20  ;;  %v2398_v26 = vpack.c.bf16 %v50_v24, %v49_v23  ;;  %v33_v27 = vld [vmem:[%s3204_s4 + $0x20] sm:$0xff]  ;;  %v34_v28 = vld [vmem:[%s3204_s4 + $0x28] sm:$0xff]  ;;  %v51_v35 = vld [vmem:[%s3204_s4 + $0xb0] sm:$0xff] }
   0x8   :  { %v81_v29 = vld [vmem:[%s3204_s4 + $0x1a0] sm:$0xff]  ;;  %1993 = vmatprep.subr.bf16.mxu1 %v2384_v21  ;;  %v82_v30 = vld [vmem:[%s3204_s4 + $0x1a8] sm:$0xff]  ;;  %v2420_v33 = vpack.c.bf16 %v34_v28, %v33_v27  ;;  %v52_v36 = vld [vmem:[%s3204_s4 + $0xb8] sm:$0xff] }
   0x9   :  { %v65_v31 = vld [vmem:[%s3204_s4 + $0x120] sm:$0xff]  ;;  %v66_v32 = vld [vmem:[%s3204_s4 + $0x128] sm:$0xff]  ;;  %1963 = vmatpush3.bf16.msra.mxu0 %v2372_v17  ;;  %v2422_v34 = vpack.c.bf16 %v82_v30, %v81_v29  ;;  %v35_v37 = vld [vmem:[%s3204_s4 + $0x30] sm:$0xff]  ;;  %v2437_v39 = vpack.c.bf16 %v52_v36, %v51_v35 }
   0xa   :  { %1965 = vmatprep.subr.bf16.mxu0 %v2398_v26  ;;  %v2435_v38 = vpack.c.bf16 %v66_v32, %v65_v31  ;;  %v36_v40 = vld [vmem:[%s3204_s4 + $0x38] sm:$0xff]  ;;  %v83_v41 = vld [vmem:[%s3204_s4 + $0x1b0] sm:$0xff]  ;;  %v53_v46 = vld [vmem:[%s3204_s4 + $0xc0] sm:$0xff] }
   0xb   :  { %1995 = vmatpush3.bf16.msra.mxu1 %v2396_v25  ;;  %v84_v42 = vld [vmem:[%s3204_s4 + $0x1b8] sm:$0xff]  ;;  %v67_v44 = vld [vmem:[%s3204_s4 + $0x130] sm:$0xff]  ;;  %v54_v47 = vld [vmem:[%s3204_s4 + $0xc8] sm:$0xff]  ;;  %v2464_v48 = vpack.c.bf16 %v36_v40, %v35_v37 }
   0xc   :  { %1997 = vmatprep.subr.bf16.mxu1 %v2422_v34  ;;  %v2449_v43 = vpack.c.bf16 %v84_v42, %v83_v41  ;;  %v68_v45 = vld [vmem:[%s3204_s4 + $0x138] sm:$0xff]  ;;  %v85_v49 = vld [vmem:[%s3204_s4 + $0x1c0] sm:$0xff]  ;;  %v86_v50 = vld [vmem:[%s3204_s4 + $0x1c8] sm:$0xff]  ;;  %v2476_v52 = vpack.c.bf16 %v54_v47, %v53_v46 }
   0xd   :  { %1967 = vmatpush3.bf16.msra.mxu0 %v2420_v33  ;;  %v2474_v51 = vpack.c.bf16 %v68_v45, %v67_v44  ;;  %v37_v53 = vld [vmem:[%s3204_s4 + $0x40] sm:$0xff]  ;;  %v38_v54 = vld [vmem:[%s3204_s4 + $0x48] sm:$0xff]  ;;  %v2488_v56 = vpack.c.bf16 %v86_v50, %v85_v49  ;;  %v55_v58 = vld [vmem:[%s3204_s4 + $0xd0] sm:$0xff] }
   0xe   :  { %1969 = vmatprep.subr.bf16.mxu0 %v2437_v39  ;;  %v69_v55 = vld [vmem:[%s3204_s4 + $0x140] sm:$0xff]  ;;  %v70_v57 = vld [vmem:[%s3204_s4 + $0x148] sm:$0xff]  ;;  %v56_v59 = vld [vmem:[%s3204_s4 + $0xd8] sm:$0xff]  ;;  %v2506_v62 = vpack.c.bf16 %v38_v54, %v37_v53 }
   0xf   :  { %1999 = vmatpush3.bf16.msra.mxu1 %v2435_v38  ;;  %v87_v60 = vld [vmem:[%s3204_s4 + $0x1d0] sm:$0xff]  ;;  %v88_v61 = vld [vmem:[%s3204_s4 + $0x1d8] sm:$0xff]  ;;  %v2510_v63 = vpack.c.bf16 %v70_v57, %v69_v55  ;;  %v2512_v0 = vpack.c.bf16 %v56_v59, %v55_v58  ;;  %v57_v9 = vld [vmem:[%s3204_s4 + $0xe0] sm:$0xff] }
  0x10   :  { %2001 = vmatprep.subr.bf16.mxu1 %v2449_v43  ;;  %v39_v1 = vld [vmem:[%s3204_s4 + $0x50] sm:$0xff]  ;;  %v40_v2 = vld [vmem:[%s3204_s4 + $0x58] sm:$0xff]  ;;  %v2524_v5 = vpack.c.bf16 %v88_v61, %v87_v60  ;;  %v58_v10 = vld [vmem:[%s3204_s4 + $0xe8] sm:$0xff] }
  0x11   :  { %1971 = vmatpush3.bf16.msra.mxu0 %v2464_v48  ;;  %v71_v4 = vld [vmem:[%s3204_s4 + $0x150] sm:$0xff]  ;;  %v72_v6 = vld [vmem:[%s3204_s4 + $0x158] sm:$0xff]  ;;  %v89_v11 = vld [vmem:[%s3204_s4 + $0x1e0] sm:$0xff]  ;;  %v2542_v14 = vpack.c.bf16 %v40_v2, %v39_v1  ;;  %v2554_v20 = vpack.c.bf16 %v58_v10, %v57_v9 }
  0x12   :  { %1973 = vmatprep.subr.bf16.mxu0 %v2476_v52  ;;  %v90_v13 = vld [vmem:[%s3204_s4 + $0x1e8] sm:$0xff]  ;;  %v41_v15 = vld [vmem:[%s3204_s4 + $0x60] sm:$0xff]  ;;  %v2552_v19 = vpack.c.bf16 %v72_v6, %v71_v4  ;;  %v59_v28 = vld [vmem:[%s3204_s4 + $0xf0] sm:$0xff] }
  0x13   :  { %2003 = vmatpush3.bf16.msra.mxu1 %v2474_v51  ;;  %v103_v18 = vld [vmem:[%s3205_s0 + $0x8] sm:$0xff]  ;;  %v73_v23 = vld [vmem:[%s3204_s4 + $0x160] sm:$0xff]  ;;  %v2566_v27 = vpack.c.bf16 %v90_v13, %v89_v11  ;;  %v60_v29 = vld [vmem:[%s3204_s4 + $0xf8] sm:$0xff] }
  0x14   :  { %2005 = vmatprep.subr.bf16.mxu1 %v2488_v56  ;;  %v42_v22 = vld [vmem:[%s3204_s4 + $0x68] sm:$0xff]  ;;  %205 = vmatprep.mubr.f32.mxu0 %v103_v18  ;;  %v105_v30 = vld [vmem:[%s3205_s0 + $0x18] sm:$0xff]  ;;  %v91_v31 = vld [vmem:[%s3204_s4 + $0x1f0] sm:$0xff]  ;;  %v2590_v37 = vpack.c.bf16 %v60_v29, %v59_v28 }
  0x15   :  { %1975 = vmatpush3.bf16.msra.mxu0 %v2506_v62  ;;  %v74_v24 = vld [vmem:[%s3204_s4 + $0x168] sm:$0xff]  ;;  %v92_v32 = vld [vmem:[%s3204_s4 + $0x1f8] sm:$0xff]  ;;  %290 = vmatprep.mubr.f32.mxu1 %v105_v30  ;;  %v2584_v35 = vpack.c.bf16 %v42_v22, %v41_v15  ;;  %v43_v40 = vld [vmem:[%s3204_s4 + $0x70] sm:$0xff] }
  0x16   :  { %1977 = vmatprep.subr.bf16.mxu0 %v2512_v0  ;;  %v2588_v36 = vpack.c.bf16 %v74_v24, %v73_v23  ;;  %v44_v41 = vld [vmem:[%s3204_s4 + $0x78] sm:$0xff]  ;;  %v75_v42 = vld [vmem:[%s3204_s4 + $0x170] sm:$0xff]  ;;  %v2602_v44 = vpack.c.bf16 %v92_v32, %v91_v31  ;;  %v93_v46 = vld [vmem:[%s3204_s4 + $0x200] sm:$0xff] }
  0x17   :  { %2007 = vmatpush3.bf16.msra.mxu1 %v2510_v63  ;;  %v76_v45 = vld [vmem:[%s3204_s4 + $0x178] sm:$0xff]  ;;  %v94_v47 = vld [vmem:[%s3204_s4 + $0x208] sm:$0xff]  ;;  %v2614_v49 = vpack.c.bf16 %v44_v41, %v43_v40  ;;  %v95_v54 = vld [vmem:[%s3204_s4 + $0x210] sm:$0xff] }
  0x18   :  { %2009 = vmatprep.subr.bf16.mxu1 %v2524_v5  ;;  %v2618_v50 = vpack.c.bf16 %v76_v45, %v75_v42  ;;  %v2620_v53 = vpack.c.bf16 %v94_v47, %v93_v46  ;;  %v96_v55 = vld [vmem:[%s3204_s4 + $0x218] sm:$0xff]  ;;  %v102_v57 = vld [vmem:[%s3205_s0] sm:$0xff]  ;;  %v104_v58 = vld [vmem:[%s3205_s0 + $0x10] sm:$0xff] }
  0x19   :  { %1979 = vmatpush3.bf16.msra.mxu0 %v2542_v14  ;;  %v108_v59 = vld [vmem:[%s3205_s0 + $0x30] sm:$0xff]  ;;  %v2642_v60 = vpack.c.bf16 %v96_v55, %v95_v54  ;;  %v110_v61 = vld [vmem:[%s3205_s0 + $0x40] sm:$0xff]  ;;  %v98_v2 = vld [vmem:[%s3204_s4 + $0x228] sm:$0xff] }
  0x1a   :  { %1981 = vmatprep.subr.bf16.mxu0 %v2554_v20  ;;  %v97_v1 = vld [vmem:[%s3204_s4 + $0x220] sm:$0xff]  ;;  %v107_v4 = vld [vmem:[%s3205_s0 + $0x28] sm:$0xff]  ;;  %v109_v6 = vld [vmem:[%s3205_s0 + $0x38] sm:$0xff] }
  0x1b   :  { %2011 = vmatpush3.bf16.msra.mxu1 %v2552_v19  ;;  %v113_v9 = vld [vmem:[%s3205_s0 + $0x58] sm:$0xff]  ;;  %v2665_v10 = vpack.c.bf16 %v98_v2, %v97_v1  ;;  %v115_v11 = vld [vmem:[%s3205_s0 + $0x68] sm:$0xff]  ;;  %v99_v13 = vld [vmem:[%s3204_s4 + $0x230] sm:$0xff] }
  0x1c   :  { %2013 = vmatprep.subr.bf16.mxu1 %v2566_v27  ;;  %v100_v15 = vld [vmem:[%s3204_s4 + $0x238] sm:$0xff]  ;;  %v112_v18 = vld [vmem:[%s3205_s0 + $0x50] sm:$0xff]  ;;  %v114_v22 = vld [vmem:[%s3205_s0 + $0x60] sm:$0xff] }
  0x1d   :  { %1983 = vmatpush3.bf16.msra.mxu0 %v2584_v35  ;;  %v118_v23 = vld [vmem:[%s3205_s0 + $0x80] sm:$0xff]  ;;  %v2689_v24 = vpack.c.bf16 %v100_v15, %v99_v13  ;;  %v120_v28 = vld [vmem:[%s3205_s0 + $0x90] sm:$0xff]  ;;  %v117_v29 = vld [vmem:[%s3205_s0 + $0x78] sm:$0xff] }
  0x1e   :  { %1985 = vmatprep.subr.bf16.mxu0 %v2590_v37  ;;  %v119_v30 = vld [vmem:[%s3205_s0 + $0x88] sm:$0xff]  ;;  %v106_v31 = vld [vmem:[%s3205_s0 + $0x20] sm:$0xff]  ;;  %v116_v41 = vld [vmem:[%s3205_s0 + $0x70] sm:$0xff] }
  0x1f   :  { %2015 = vmatpush3.bf16.msra.mxu1 %v2588_v36  ;;  %v111_v32 = vld [vmem:[%s3205_s0 + $0x48] sm:$0xff]  ;;  %v121_v42 = vld [vmem:[%s3205_s0 + $0x98] sm:$0xff]  ;;  %v396_v46 = vld [vmem:[%s3206_s1] sm:$0xff] }
  0x20   :  { %2017 = vmatprep.subr.bf16.mxu1 %v2602_v44  ;;  %v397_v40 = vld [vmem:[%s3206_s1 + $0x8] sm:$0xff]  ;;  %v399_v45 = vld [vmem:[%s3206_s1 + $0x18] sm:$0xff]  ;;  %v402_v47 = vld [vmem:[%s3206_s1 + $0x30] sm:$0xff] }
  0x21   :  { %1987 = vmatpush3.bf16.msra.mxu0 %v2614_v49  ;;  %v401_v54 = vld [vmem:[%s3206_s1 + $0x28] sm:$0xff]  ;;  %v407_v55 = vld [vmem:[%s3206_s1 + $0x58] sm:$0xff]  ;;  %v398_v1 = vld [vmem:[%s3206_s1 + $0x10] sm:$0xff] }
  0x22   :  { %2021 = vmatprep.subr.bf16.mxu0 %v2620_v53  ;;  %v404_v2 = vld [vmem:[%s3206_s1 + $0x40] sm:$0xff]  ;;  %v415_v13 = vld [vmem:[%s3206_s1 + $0x98] sm:$0xff] }
  0x23   :  { %2019 = vmatpush3.bf16.msra.mxu1 %v2618_v50  ;;  %v686_v15 = vld [vmem:[%s3207_s2 + $0x18] sm:$0xff] }
  0x24   :  { %2037 = vmatprep.subr.bf16.mxu1 %v2332_v3  ;;  %206 = vmatmul.mubr.f32.vlgmr.msra.gmra.mrb[0].mxu0 %v102_v57  ;;  %v406_v57 = vld [vmem:[%s3206_s1 + $0x50] sm:$0xff] }
  0x25   :  { %2023 = vmatpush3.bf16.msra.mxu0 %v2620_v53  ;;  %210 = vmatprep.mubr.f32.mxu0 %v108_v59  ;;  %v411_v59 = vld [vmem:[%s3206_s1 + $0x78] sm:$0xff] }
  0x26   :  { %291 = vmatmul.mubr.f32.vlgmr.msra.gmra.mrb[0].mxu1 %v104_v58  ;;  %2025 = vmatprep.subr.bf16.mxu0 %v2642_v60  ;;  %v412_v58 = vld [vmem:[%s3206_s1 + $0x80] sm:$0xff] }
  0x27   :  { %2039 = vmatpush3.bf16.msra.mxu1 %v2343_v7  ;;  %295 = vmatprep.mubr.f32.mxu1 %v110_v61  ;;  %v400_v61 = vld [vmem:[%s3206_s1 + $0x20] sm:$0xff] }
  0x28   :  { %211 = vmatmul.mubr.f32.gmra.mrb[2].mxu0 %v107_v4  ;;  %2041 = vmatprep.subr.bf16.mxu1 %v2370_v16  ;;  %v405_v4 = vld [vmem:[%s3206_s1 + $0x48] sm:$0xff] }
  0x29   :  { %2027 = vmatpush3.bf16.msra.mxu0 %v2642_v60  ;;  %215 = vmatprep.mubr.f32.mxu0 %v113_v9  ;;  %v403_v9 = vld [vmem:[%s3206_s1 + $0x38] sm:$0xff] }
  0x2a   :  { %296 = vmatmul.mubr.f32.gmra.mrb[2].mxu1 %v109_v6  ;;  %2029 = vmatprep.subr.bf16.mxu0 %v2665_v10  ;;  %v410_v6 = vld [vmem:[%s3206_s1 + $0x70] sm:$0xff] }
  0x2b   :  { %2043 = vmatpush3.bf16.msra.mxu1 %v2372_v17  ;;  %300 = vmatprep.mubr.f32.mxu1 %v115_v11  ;;  %v409_v11 = vld [vmem:[%s3206_s1 + $0x68] sm:$0xff] }
  0x2c   :  { %216 = vmatmul.mubr.f32.gmra.mrb[4].mxu0 %v112_v18  ;;  %2045 = vmatprep.subr.bf16.mxu1 %v2398_v26  ;;  %v408_v18 = vld [vmem:[%s3206_s1 + $0x60] sm:$0xff] }
  0x2d   :  { %2031 = vmatpush3.bf16.msra.mxu0 %v2665_v10  ;;  %220 = vmatprep.mubr.f32.mxu0 %v118_v23  ;;  %v413_v23 = vld [vmem:[%s3206_s1 + $0x88] sm:$0xff] }
  0x2e   :  { %301 = vmatmul.mubr.f32.gmra.mrb[4].mxu1 %v114_v22  ;;  %2033 = vmatprep.subr.bf16.mxu0 %v2689_v24  ;;  %v414_v22 = vld [vmem:[%s3206_s1 + $0x90] sm:$0xff] }
  0x2f   :  { %2047 = vmatpush3.bf16.msra.mxu1 %v2420_v33  ;;  %305 = vmatprep.mubr.f32.mxu1 %v120_v28  ;;  %v684_v28 = vld [vmem:[%s3207_s2 + $0x8] sm:$0xff] }
  0x30   :  { %221 = vmatmul.mubr.f32.gmra.mrb[6].mxu0 %v117_v29  ;;  %2049 = vmatprep.subr.bf16.mxu1 %v2437_v39  ;;  %v683_v29 = vld [vmem:[%s3207_s2] sm:$0xff] }
  0x31   :  { %2035 = vmatpush3.bf16.msra.mxu0 %v2689_v24  ;;  %1884 = vmatprep.mubr.msk.f32.mxu0 %vm128_vm0, %v106_v31  ;;  %v685_v31 = vld [vmem:[%s3207_s2 + $0x10] sm:$0xff] }
  0x32   :  { %306 = vmatmul.mubr.f32.gmra.mrb[6].mxu1 %v119_v30  ;;  %2069 = vmatprep.subr.bf16.mxu0 %v2345_v8  ;;  %v689_v30 = vld [vmem:[%s3207_s2 + $0x30] sm:$0xff] }
  0x33   :  { %2051 = vmatpush3.bf16.msra.mxu1 %v2464_v48  ;;  %492 = vmatprep.mubr.f32.mxu1 %v397_v40  ;;  %v688_v40 = vld [vmem:[%s3207_s2 + $0x28] sm:$0xff] }
  0x34   :  { %2053 = vmatprep.subr.bf16.mxu1 %v2476_v52  ;;  %1885 = vmatmul.mubr.msk.f32.vlgmr.msra.gmra.mrb[8].mxu0 %vm128_vm0, %v111_v32  ;;  %v691_v32 = vld [vmem:[%s3207_s2 + $0x40] sm:$0xff] }
  0x35   :  { %2071 = vmatpush3.bf16.msra.mxu0 %v2357_v12  ;;  %1887 = vmatprep.mubr.msk.f32.mxu0 %vm128_vm0, %v116_v41  ;;  %v694_v41 = vld [vmem:[%s3207_s2 + $0x58] sm:$0xff] }
  0x36   :  { %2073 = vmatprep.subr.bf16.mxu0 %v2384_v21 }
  0x37   :  { %2055 = vmatpush3.bf16.msra.mxu1 %v2506_v62 }
  0x38   :  { %2057 = vmatprep.subr.bf16.mxu1 %v2512_v0  ;;  %1888 = vmatmul.mubr.msk.f32.gmra.mrb[10].mxu0 %vm128_vm0, %v121_v42  ;;  %v696_v42 = vld [vmem:[%s3207_s2 + $0x68] sm:$0xff] }
  0x39   :  { %2075 = vmatpush3.bf16.msra.mxu0 %v2396_v25  ;;  %577 = vmatprep.mubr.f32.mxu0 %v399_v45  ;;  %v693_v45 = vld [vmem:[%s3207_s2 + $0x50] sm:$0xff] }
  0x3a   :  { %2077 = vmatprep.subr.bf16.mxu0 %v2422_v34 }
  0x3b   :  { %2059 = vmatpush3.bf16.msra.mxu1 %v2542_v14 }
  0x3c   :  { %2061 = vmatprep.subr.bf16.mxu1 %v2554_v20 }
  0x3d   :  { %2079 = vmatpush3.bf16.msra.mxu0 %v2435_v38 }
  0x3e   :  { %2081 = vmatprep.subr.bf16.mxu0 %v2449_v43 }
  0x3f   :  { %2063 = vmatpush3.bf16.msra.mxu1 %v2584_v35 }
  0x40   :  { %2065 = vmatprep.subr.bf16.mxu1 %v2590_v37 }
  0x41   :  { %2083 = vmatpush3.bf16.msra.mxu0 %v2474_v51 }
  0x42   :  { %2085 = vmatprep.subr.bf16.mxu0 %v2488_v56 }
  0x43   :  { %2067 = vmatpush3.bf16.msra.mxu1 %v2614_v49 }
  0x44   :  { %2101 = vmatprep.subr.bf16.mxu1 %v2620_v53 }
  0x45   :  { %2087 = vmatpush3.bf16.msra.mxu0 %v2510_v63 }
  0x46   :  { %493 = vmatmul.mubr.f32.vlgmr.msra.gmra.mrb[8].mxu1 %v396_v46  ;;  %2089 = vmatprep.subr.bf16.mxu0 %v2524_v5  ;;  %v701_v46 = vld [vmem:[%s3207_s2 + $0x90] sm:$0xff] }
  0x47   :  { %2103 = vmatpush3.bf16.msra.mxu1 %v2620_v53  ;;  %497 = vmatprep.mubr.f32.mxu1 %v402_v47  ;;  %v698_v47 = vld [vmem:[%s3207_s2 + $0x78] sm:$0xff] }
  0x48   :  { %2105 = vmatprep.subr.bf16.mxu1 %v2642_v60 }
  0x49   :  { %2091 = vmatpush3.bf16.msra.mxu0 %v2552_v19 }
  0x4a   :  { %498 = vmatmul.mubr.f32.gmra.mrb[10].mxu1 %v401_v54  ;;  %2093 = vmatprep.subr.bf16.mxu0 %v2566_v27  ;;  %v971_v54 = vld [vmem:[%s3208_s3 + $0x8] sm:$0xff] }
  0x4b   :  { %2107 = vmatpush3.bf16.msra.mxu1 %v2642_v60  ;;  %502 = vmatprep.mubr.f32.mxu1 %v407_v55  ;;  %v692_v55 = vld [vmem:[%s3207_s2 + $0x48] sm:$0xff] }
  0x4c   :  { %2109 = vmatprep.subr.bf16.mxu1 %v2665_v10 }
  0x4d   :  { %2095 = vmatpush3.bf16.msra.mxu0 %v2588_v36 }
  0x4e   :  { %503 = vmatmul.mubr.f32.gmra.mrb[12].mxu1 %v406_v57  ;;  %2097 = vmatprep.subr.bf16.mxu0 %v2602_v44 }
  0x4f   :  { %2111 = vmatpush3.bf16.msra.mxu1 %v2665_v10  ;;  %507 = vmatprep.mubr.f32.mxu1 %v412_v58 }
  0x50   :  { %2113 = vmatprep.subr.bf16.mxu1 %v2689_v24 }
  0x51   :  { %2099 = vmatpush3.bf16.msra.mxu0 %v2618_v50 }
  0x52   :  { %508 = vmatmul.mubr.f32.gmra.mrb[14].mxu1 %v411_v59  ;;  %2117 = vmatprep.subr.bf16.mxu0 %v2332_v3 }
  0x53   :  { %2115 = vmatpush3.bf16.msra.mxu1 %v2689_v24  ;;  %1906 = vmatprep.mubr.msk.f32.mxu1 %vm128_vm0, %v400_v61 }
  0x54   :  { %2149 = vmatprep.subr.bf16.mxu1 %v2345_v8  ;;  %578 = vmatmul.mubr.f32.vlgmr.msra.gmra.mrb[12].mxu0 %v398_v1 }
  0x55   :  { %2119 = vmatpush3.bf16.msra.mxu0 %v2343_v7  ;;  %582 = vmatprep.mubr.f32.mxu0 %v404_v2 }
  0x56   :  { %1907 = vmatmul.mubr.msk.f32.vlgmr.msra.gmra.mrb[16].mxu1 %vm128_vm0, %v405_v4  ;;  %2121 = vmatprep.subr.bf16.mxu0 %v2370_v16 }
  0x57   :  { %2151 = vmatpush3.bf16.msra.mxu1 %v2357_v12  ;;  %1909 = vmatprep.mubr.msk.f32.mxu1 %vm128_vm0, %v410_v6 }
  0x58   :  { %583 = vmatmul.mubr.f32.gmra.mrb[14].mxu0 %v403_v9  ;;  %2153 = vmatprep.subr.bf16.mxu1 %v2384_v21 }
  0x59   :  { %2123 = vmatpush3.bf16.msra.mxu0 %v2372_v17  ;;  %587 = vmatprep.mubr.f32.mxu0 %v409_v11 }
  0x5a   :  { %2125 = vmatprep.subr.bf16.mxu0 %v2398_v26  ;;  %1910 = vmatmul.mubr.msk.f32.gmra.mrb[18].mxu1 %vm128_vm0, %v415_v13 }
  0x5b   :  { %2155 = vmatpush3.bf16.msra.mxu1 %v2396_v25  ;;  %864 = vmatprep.mubr.f32.mxu1 %v686_v15 }
  0x5c   :  { %588 = vmatmul.mubr.f32.gmra.mrb[16].mxu0 %v408_v18  ;;  %2157 = vmatprep.subr.bf16.mxu1 %v2422_v34 }
  0x5d   :  { %2127 = vmatpush3.bf16.msra.mxu0 %v2420_v33  ;;  %592 = vmatprep.mubr.f32.mxu0 %v414_v22 }
  0x5e   :  { %2129 = vmatprep.subr.bf16.mxu0 %v2437_v39 }
  0x5f   :  { %2159 = vmatpush3.bf16.msra.mxu1 %v2435_v38 }
  0x60   :  { %593 = vmatmul.mubr.f32.gmra.mrb[18].mxu0 %v413_v23  ;;  %2161 = vmatprep.subr.bf16.mxu1 %v2449_v43 }
  0x61   :  { %2131 = vmatpush3.bf16.msra.mxu0 %v2464_v48  ;;  %779 = vmatprep.mubr.f32.mxu0 %v684_v28 }
  0x62   :  { %2133 = vmatprep.subr.bf16.mxu0 %v2476_v52 }
  0x63   :  { %2163 = vmatpush3.bf16.msra.mxu1 %v2474_v51 }
  0x64   :  { %2165 = vmatprep.subr.bf16.mxu1 %v2488_v56 }
  0x65   :  { %2135 = vmatpush3.bf16.msra.mxu0 %v2506_v62 }
  0x66   :  { %2137 = vmatprep.subr.bf16.mxu0 %v2512_v0 }
  0x67   :  { %2167 = vmatpush3.bf16.msra.mxu1 %v2510_v63 }
  0x68   :  { %2169 = vmatprep.subr.bf16.mxu1 %v2524_v5 }
  0x69   :  { %2139 = vmatpush3.bf16.msra.mxu0 %v2542_v14 }
  0x6a   :  { %2141 = vmatprep.subr.bf16.mxu0 %v2554_v20 }
  0x6b   :  { %2171 = vmatpush3.bf16.msra.mxu1 %v2552_v19 }
  0x6c   :  { %2173 = vmatprep.subr.bf16.mxu1 %v2566_v27 }
  0x6d   :  { %2143 = vmatpush3.bf16.msra.mxu0 %v2584_v35 }
  0x6e   :  { %2145 = vmatprep.subr.bf16.mxu0 %v2590_v37 }
  0x6f   :  { %2175 = vmatpush3.bf16.msra.mxu1 %v2588_v36 }
  0x70   :  { %2177 = vmatprep.subr.bf16.mxu1 %v2602_v44 }
  0x71   :  { %2147 = vmatpush3.bf16.msra.mxu0 %v2614_v49 }
  0x72   :  { %2181 = vmatprep.subr.bf16.mxu0 %v2620_v53 }
  0x73   :  { %2179 = vmatpush3.bf16.msra.mxu1 %v2618_v50 }
  0x74   :  { %780 = vmatmul.mubr.f32.vlgmr.msra.gmra.mrb[20].mxu0 %v683_v29  ;;  %2197 = vmatprep.subr.bf16.mxu1 %v2332_v3  ;;  %v690_v3 = vld [vmem:[%s3207_s2 + $0x38] sm:$0xff] }
  0x75   :  { %2183 = vmatpush3.bf16.msra.mxu0 %v2620_v53  ;;  %784 = vmatprep.mubr.f32.mxu0 %v689_v30 }
  0x76   :  { %865 = vmatmul.mubr.f32.vlgmr.msra.gmra.mrb[20].mxu1 %v685_v31  ;;  %2185 = vmatprep.subr.bf16.mxu0 %v2642_v60 }
  0x77   :  { %869 = vmatprep.mubr.f32.mxu1 %v691_v32  ;;  %2199 = vmatpush3.bf16.msra.mxu1 %v2343_v7  ;;  %v699_v7 = vld [vmem:[%s3207_s2 + $0x80] sm:$0xff] }
  0x78   :  { %785 = vmatmul.mubr.f32.gmra.mrb[22].mxu0 %v688_v40  ;;  %2201 = vmatprep.subr.bf16.mxu1 %v2370_v16  ;;  %v695_v16 = vld [vmem:[%s3207_s2 + $0x60] sm:$0xff] }
  0x79   :  { %2187 = vmatpush3.bf16.msra.mxu0 %v2642_v60  ;;  %789 = vmatprep.mubr.f32.mxu0 %v694_v41 }
  0x7a   :  { %870 = vmatmul.mubr.f32.gmra.mrb[22].mxu1 %v690_v3  ;;  %2189 = vmatprep.subr.bf16.mxu0 %v2665_v10 }
  0x7b   :  { %874 = vmatprep.mubr.f32.mxu1 %v696_v42  ;;  %2203 = vmatpush3.bf16.msra.mxu1 %v2372_v17  ;;  %v687_v17 = vld [vmem:[%s3207_s2 + $0x20] sm:$0xff] }
  0x7c   :  { %790 = vmatmul.mubr.f32.gmra.mrb[24].mxu0 %v693_v45  ;;  %2205 = vmatprep.subr.bf16.mxu1 %v2398_v26  ;;  %v700_v26 = vld [vmem:[%s3207_s2 + $0x88] sm:$0xff] }
  0x7d   :  { %2191 = vmatpush3.bf16.msra.mxu0 %v2665_v10  ;;  %794 = vmatprep.mubr.f32.mxu0 %v699_v7 }
  0x7e   :  { %875 = vmatmul.mubr.f32.gmra.mrb[24].mxu1 %v695_v16  ;;  %2193 = vmatprep.subr.bf16.mxu0 %v2689_v24 }
  0x7f   :  { %879 = vmatprep.mubr.f32.mxu1 %v701_v46  ;;  %2207 = vmatpush3.bf16.msra.mxu1 %v2420_v33  ;;  %v697_v33 = vld [vmem:[%s3207_s2 + $0x70] sm:$0xff] }
  0x80   :  { %795 = vmatmul.mubr.f32.gmra.mrb[26].mxu0 %v698_v47  ;;  %2209 = vmatprep.subr.bf16.mxu1 %v2437_v39  ;;  %v702_v39 = vld [vmem:[%s3207_s2 + $0x98] sm:$0xff] }
  0x81   :  { %2195 = vmatpush3.bf16.msra.mxu0 %v2689_v24  ;;  %1928 = vmatprep.mubr.msk.f32.mxu0 %vm128_vm0, %v687_v17 }
  0x82   :  { %880 = vmatmul.mubr.f32.gmra.mrb[26].mxu1 %v700_v26  ;;  %2229 = vmatprep.subr.bf16.mxu0 %v2345_v8  ;;  %v973_v8 = vld [vmem:[%s3208_s3 + $0x18] sm:$0xff] }
  0x83   :  { %2211 = vmatpush3.bf16.msra.mxu1 %v2464_v48  ;;  %1066 = vmatprep.mubr.f32.mxu1 %v971_v54  ;;  %v985_v48 = vld [vmem:[%s3208_s3 + $0x78] sm:$0xff] }
  0x84   :  { %1929 = vmatmul.mubr.msk.f32.vlgmr.msra.gmra.mrb[28].mxu0 %vm128_vm0, %v692_v55  ;;  %2213 = vmatprep.subr.bf16.mxu1 %v2476_v52  ;;  %v972_v52 = vld [vmem:[%s3208_s3 + $0x10] sm:$0xff] }
  0x85   :  { %2231 = vmatpush3.bf16.msra.mxu0 %v2357_v12  ;;  %1931 = vmatprep.mubr.msk.f32.mxu0 %vm128_vm0, %v697_v33  ;;  %v970_v12 = vld [vmem:[%s3208_s3] sm:$0xff] }
  0x86   :  { %2233 = vmatprep.subr.bf16.mxu0 %v2384_v21  ;;  %v976_v21 = vld [vmem:[%s3208_s3 + $0x30] sm:$0xff] }
  0x87   :  { %2215 = vmatpush3.bf16.msra.mxu1 %v2506_v62  ;;  %v979_v62 = vld [vmem:[%s3208_s3 + $0x48] sm:$0xff] }
  0x88   :  { %1932 = vmatmul.mubr.msk.f32.gmra.mrb[30].mxu0 %vm128_vm0, %v702_v39  ;;  %2217 = vmatprep.subr.bf16.mxu1 %v2512_v0  ;;  %v977_v0 = vld [vmem:[%s3208_s3 + $0x38] sm:$0xff] }
  0x89   :  { %2235 = vmatpush3.bf16.msra.mxu0 %v2396_v25  ;;  %1151 = vmatprep.mubr.f32.mxu0 %v973_v8  ;;  %v975_v25 = vld [vmem:[%s3208_s3 + $0x28] sm:$0xff] }
  0x8a   :  { %2237 = vmatprep.subr.bf16.mxu0 %v2422_v34  ;;  %v981_v34 = vld [vmem:[%s3208_s3 + $0x58] sm:$0xff] }
  0x8b   :  { %2219 = vmatpush3.bf16.msra.mxu1 %v2542_v14  ;;  %v989_v14 = vld [vmem:[%s3208_s3 + $0x98] sm:$0xff] }
  0x8c   :  { %2221 = vmatprep.subr.bf16.mxu1 %v2554_v20  ;;  %v988_v20 = vld [vmem:[%s3208_s3 + $0x90] sm:$0xff] }
  0x8d   :  { %2239 = vmatpush3.bf16.msra.mxu0 %v2435_v38  ;;  %v980_v38 = vld [vmem:[%s3208_s3 + $0x50] sm:$0xff] }
  0x8e   :  { %2241 = vmatprep.subr.bf16.mxu0 %v2449_v43  ;;  %v986_v43 = vld [vmem:[%s3208_s3 + $0x80] sm:$0xff] }
  0x8f   :  { %2223 = vmatpush3.bf16.msra.mxu1 %v2584_v35 }
  0x90   :  { %2225 = vmatprep.subr.bf16.mxu1 %v2590_v37 }
  0x91   :  { %2243 = vmatpush3.bf16.msra.mxu0 %v2474_v51  ;;  %v974_v51 = vld [vmem:[%s3208_s3 + $0x20] sm:$0xff] }
  0x92   :  { %2245 = vmatprep.subr.bf16.mxu0 %v2488_v56  ;;  %v978_v56 = vld [vmem:[%s3208_s3 + $0x40] sm:$0xff] }
  0x93   :  { %2227 = vmatpush3.bf16.msra.mxu1 %v2614_v49 }
  0x94   :  { %2261 = vmatprep.subr.bf16.mxu1 %v2620_v53 }
  0x95   :  { %2247 = vmatpush3.bf16.msra.mxu0 %v2510_v63  ;;  %v984_v63 = vld [vmem:[%s3208_s3 + $0x70] sm:$0xff] }
  0x96   :  { %1067 = vmatmul.mubr.f32.vlgmr.msra.gmra.mrb[28].mxu1 %v970_v12  ;;  %2249 = vmatprep.subr.bf16.mxu0 %v2524_v5  ;;  %v983_v5 = vld [vmem:[%s3208_s3 + $0x68] sm:$0xff] }
  0x97   :  { %2263 = vmatpush3.bf16.msra.mxu1 %v2620_v53  ;;  %1071 = vmatprep.mubr.f32.mxu1 %v976_v21 }
  0x98   :  { %2265 = vmatprep.subr.bf16.mxu1 %v2642_v60 }
  0x99   :  { %2251 = vmatpush3.bf16.msra.mxu0 %v2552_v19  ;;  %v982_v19 = vld [vmem:[%s3208_s3 + $0x60] sm:$0xff] }
  0x9a   :  { %1072 = vmatmul.mubr.f32.gmra.mrb[30].mxu1 %v975_v25  ;;  %2253 = vmatprep.subr.bf16.mxu0 %v2566_v27  ;;  %v987_v27 = vld [vmem:[%s3208_s3 + $0x88] sm:$0xff] }
  0x9b   :  { %2267 = vmatpush3.bf16.msra.mxu1 %v2642_v60  ;;  %1076 = vmatprep.mubr.f32.mxu1 %v981_v34 }
  0x9c   :  { %2269 = vmatprep.subr.bf16.mxu1 %v2665_v10 }
  0x9d   :  { %2255 = vmatpush3.bf16.msra.mxu0 %v2588_v36  ;;  %v3030_v36 = vld [vmem:[%s3209_s5] ss:$0 sm:$0xff] }
  0x9e   :  { %1077 = vmatmul.mubr.f32.gmra.mrb[32].mxu1 %v980_v38  ;;  %2257 = vmatprep.subr.bf16.mxu0 %v2602_v44 }
  0x9f   :  { %2271 = vmatpush3.bf16.msra.mxu1 %v2665_v10  ;;  %1081 = vmatprep.mubr.f32.mxu1 %v986_v43 }
  0xa0   :  { %2273 = vmatprep.subr.bf16.mxu1 %v2689_v24 }
  0xa1   :  { %2259 = vmatpush3.bf16.msra.mxu0 %v2618_v50 }
  0xa2   :  { %1082 = vmatmul.mubr.f32.gmra.mrb[34].mxu1 %v985_v48 }
  0xa3   :  { %2275 = vmatpush3.bf16.msra.mxu1 %v2689_v24  ;;  %1950 = vmatprep.mubr.msk.f32.mxu1 %vm128_vm0, %v974_v51 }
  0xa4   :  { %1152 = vmatmul.mubr.f32.vlgmr.msra.gmra.mrb[32].mxu0 %v972_v52 }
  0xa5   :  { %1156 = vmatprep.mubr.f32.mxu0 %v978_v56 }
  0xa6   :  { %1951 = vmatmul.mubr.msk.f32.vlgmr.msra.gmra.mrb[36].mxu1 %vm128_vm0, %v979_v62 }
  0xa7   :  { %1953 = vmatprep.mubr.msk.f32.mxu1 %vm128_vm0, %v984_v63 }
  0xa8   :  { %1157 = vmatmul.mubr.f32.gmra.mrb[34].mxu0 %v977_v0 }
  0xa9   :  { %1161 = vmatprep.mubr.f32.mxu0 %v983_v5 }
  0xaa   :  { %1954 = vmatmul.mubr.msk.f32.gmra.mrb[38].mxu1 %vm128_vm0, %v989_v14 }
  0xac   :  { %1162 = vmatmul.mubr.f32.gmra.mrb[36].mxu0 %v982_v19 }
  0xad   :  { %1166 = vmatprep.mubr.f32.mxu0 %v988_v20 }
  0xb0   :  { %1167 = vmatmul.mubr.f32.gmra.mrb[38].mxu0 %v987_v27 }
  0xf7   :  { %v1500_v35 = vpop.f32.mrb[0].mxu0 }
  0xf8   :  { %v1501_v37 = vpop.f32.mrb[1].mxu0 }
  0xf9   :  { %v1544_v44 = vpop.f32.mrb[0].mxu1  ;;  %v1502_v49 = vadd.f32 %v1501_v37, %v1500_v35 }
  0xfa   :  { %v1545_v50 = vpop.f32.mrb[1].mxu1 }
  0xfb   :  { %v1546_v53 = vadd.f32 %v1545_v50, %v1544_v44  ;;  %v208_v60 = vadd.f32 %v1502_v49, %v3030_v36  ;;  %v1503_v10 = vpop.f32.mrb[2].mxu0 }
  0xfc   :  { %v1504_v24 = vpop.f32.mrb[3].mxu0 }
  0xfd   :  { %v1547_v57 = vpop.f32.mrb[2].mxu1  ;;  %v1505_v58 = vadd.f32 %v1504_v24, %v1503_v10  ;;  %v293_v61 = vadd.f32 %v1546_v53, %v208_v60 }
  0xfe   :  { %v1548_v59 = vpop.f32.mrb[3].mxu1 }
  0xff   :  { %v1549_v1 = vadd.f32 %v1548_v59, %v1547_v57  ;;  %v213_v2 = vadd.f32 %v1505_v58, %v3030_v36  ;;  %v1506_v4 = vpop.f32.mrb[4].mxu0 }
 0x100   :  { %v1507_v6 = vpop.f32.mrb[5].mxu0 }
 0x101   :  { %v1550_v9 = vpop.f32.mrb[4].mxu1  ;;  %v1508_v11 = vadd.f32 %v1507_v6, %v1506_v4  ;;  %v298_v15 = vadd.f32 %v1549_v1, %v213_v2 }
 0x102   :  { %v1551_v13 = vpop.f32.mrb[5].mxu1 }
 0x103   :  { %v1552_v18 = vadd.f32 %v1551_v13, %v1550_v9  ;;  %v218_v22 = vadd.f32 %v1508_v11, %v3030_v36  ;;  %v1509_v23 = vpop.f32.mrb[6].mxu0 }
 0x104   :  { %v1510_v28 = vpop.f32.mrb[7].mxu0 }
 0x105   :  { %v1553_v29 = vpop.f32.mrb[6].mxu1  ;;  %v1511_v30 = vadd.f32 %v1510_v28, %v1509_v23  ;;  %v303_v32 = vadd.f32 %v1552_v18, %v218_v22 }
 0x106   :  { %v1554_v31 = vpop.f32.mrb[7].mxu1 }
 0x107   :  { %v1555_v40 = vadd.f32 %v1554_v31, %v1553_v29  ;;  %v223_v41 = vadd.f32 %v1511_v30, %v3030_v36  ;;  %v1886_v3 = vpop.f32.mrb[8].mxu0 }
 0x108   :  { %v3036_v42 = vadd.f32 %v1886_v3, %v298_v15  ;;  %v377_v45 = vpop.f32.mrb[9].mxu0 }
 0x109   :  { %v3038_v7 = vadd.f32 %v377_v45, %v293_v61  ;;  %v308_v16 = vadd.f32 %v1555_v40, %v223_v41 }
 0x10a   :  { %v1258_v46 = vsel %vm128_vm0, %v3036_v42, 0.0  ;;  %v1313_v47 = vmul.f32 %v3036_v42, %v3036_v42 }
 0x10b   :  { %v1257_v17 = vsel %vm128_vm0, %v3038_v7, 0.0  ;;  %v1312_v26 = vmul.f32 %v3038_v7, %v3038_v7  ;;  %v1889_v54 = vpop.f32.mrb[10].mxu0 }
 0x10c   :  { %v1317_v55 = vsel %vm128_vm0, %v1313_v47, 0.0  ;;  %v1259_v33 = vadd.f32 %v1258_v46, %v1257_v17  ;;  %v3049_v39 = vadd.f32 %v1889_v54, %v308_v16  ;;  %v387_v8 = vpop.f32.mrb[11].mxu0 }
 0x10d   :  { %v1316_v12 = vsel %vm128_vm0, %v1312_v26, 0.0  ;;  %v3052_v21 = vadd.f32 %v387_v8, %v303_v32 }
 0x10e   :  { %v1318_v25 = vadd.f32 %v1317_v55, %v1316_v12  ;;  %v1315_v34 = vmul.f32 %v3049_v39, %v3049_v39  ;;  %v1262_v51 = vsel %vm128_vm0, %v3049_v39, 0.0 }
 0x10f   :  { %v1260_v38 = vsel %vm128_vm0, %v3052_v21, 0.0  ;;  %v1314_v43 = vmul.f32 %v3052_v21, %v3052_v21 }
 0x110   :  { %v1261_v48 = vadd.f32 %v1260_v38, %v1259_v33  ;;  %v1321_v63 = vsel %vm128_vm0, %v1315_v34, 0.0 }
 0x111   :  { %v1319_v52 = vsel %vm128_vm0, %v1314_v43, 0.0 }
 0x112   :  { %v1263_v56 = vadd.f32 %v1262_v51, %v1261_v48  ;;  %v1320_v62 = vadd.f32 %v1319_v52, %v1318_v25 }
 0x114   :  { %v1322_v0 = vadd.f32 %v1321_v63, %v1320_v62  ;;  %v1264_v16 = vrot.slane %v1263_v56, 4 }
 0x116   :  { %v1323_v8 = vrot.slane %v1322_v0, 4  ;;  %v1265_v43 = vadd.f32 %v1264_v16, %v1263_v56 }
 0x118   :  { %v1324_v62 = vadd.f32 %v1323_v8, %v1322_v0 }
 0x119   :  { %v1600_v5 = vpop.f32.mrb[8].mxu1 }
 0x11a   :  { %v1601_v14 = vpop.f32.mrb[9].mxu1 }
 0x11b   :  { %v1602_v19 = vadd.f32 %v1601_v14, %v1600_v5 }
 0x11d   :  { %v1603_v20 = vpop.f32.mrb[10].mxu1  ;;  %v495_v57 = vadd.f32 %v1602_v19, %v3030_v36  ;;  %v1266_v19 = vrot.slane %v1265_v43, 2 }
 0x11e   :  { %v1604_v27 = vpop.f32.mrb[11].mxu1 }
 0x11f   :  { %v1605_v35 = vadd.f32 %v1604_v27, %v1603_v20 }
 0x121   :  { %v1606_v37 = vpop.f32.mrb[12].mxu1  ;;  %v500_v6 = vadd.f32 %v1605_v35, %v3030_v36  ;;  %v1325_v35 = vrot.slane %v1324_v62, 2 }
 0x122   :  { %v1607_v44 = vpop.f32.mrb[13].mxu1 }
 0x123   :  { %v1608_v49 = vadd.f32 %v1607_v44, %v1606_v37  ;;  %v1267_v44 = vadd.f32 %v1266_v19, %v1265_v43 }
 0x125   :  { %v1609_v50 = vpop.f32.mrb[14].mxu1  ;;  %v505_v28 = vadd.f32 %v1608_v49, %v3030_v36 }
 0x126   :  { %v1610_v53 = vpop.f32.mrb[15].mxu1 }
 0x127   :  { %v1611_v60 = vadd.f32 %v1610_v53, %v1609_v50  ;;  %v1644_v10 = vpop.f32.mrb[12].mxu0  ;;  %v1326_v53 = vadd.f32 %v1325_v35, %v1324_v62 }
 0x128   :  { %v1645_v24 = vpop.f32.mrb[13].mxu0 }
 0x129   :  { %v1646_v58 = vadd.f32 %v1645_v24, %v1644_v10  ;;  %v1908_v59 = vpop.f32.mrb[16].mxu1  ;;  %v510_v46 = vadd.f32 %v1611_v60, %v3030_v36  ;;  %v1268_v10 = vrot.slane %v1267_v44, 1 }
 0x12a   :  { %v664_v61 = vpop.f32.mrb[17].mxu1 }
 0x12b   :  { %v1647_v1 = vpop.f32.mrb[14].mxu0  ;;  %v580_v2 = vadd.f32 %v1646_v58, %v495_v57  ;;  %v1327_v58 = vrot.slane %v1326_v53, 1 }
 0x12c   :  { %v1648_v4 = vpop.f32.mrb[15].mxu0 }
 0x12d   :  { %v1649_v9 = vadd.f32 %v1648_v4, %v1647_v1  ;;  %v3066_v11 = vadd.f32 %v664_v61, %v580_v2  ;;  %v1911_v13 = vpop.f32.mrb[18].mxu1  ;;  %v1269_v2 = vadd.f32 %v1268_v10, %v1267_v44 }
 0x12e   :  { %v674_v15 = vpop.f32.mrb[19].mxu1 }
 0x12f   :  { %v585_v18 = vadd.f32 %v1649_v9, %v500_v6  ;;  %v1650_v22 = vpop.f32.mrb[16].mxu0  ;;  %v1329_v30 = vmul.f32 %v3066_v11, %v3066_v11  ;;  %v1270_v40 = vsel %vm128_vm0, %v3066_v11, 0.0 }
 0x130   :  { %v1651_v23 = vpop.f32.mrb[17].mxu0 }
 0x131   :  { %v3069_v29 = vadd.f32 %v1908_v59, %v585_v18  ;;  %v1652_v31 = vadd.f32 %v1651_v23, %v1650_v22  ;;  %v1333_v26 = vsel %vm128_vm0, %v1329_v30, 0.0  ;;  %v1328_v18 = vadd.f32 %v1327_v58, %v1326_v53 }
 0x133   :  { %v1330_v32 = vmul.f32 %v3069_v29, %v3069_v29  ;;  %v1271_v41 = vsel %vm128_vm0, %v3069_v29, 0.0  ;;  %v1653_v3 = vpop.f32.mrb[18].mxu0  ;;  %v590_v45 = vadd.f32 %v1652_v31, %v505_v28 }
 0x134   :  { %v1272_v47 = vadd.f32 %v1271_v41, %v1270_v40  ;;  %v1654_v17 = vpop.f32.mrb[19].mxu0 }
 0x135   :  { %v1334_v54 = vsel %vm128_vm0, %v1330_v32, 0.0  ;;  %v1655_v55 = vadd.f32 %v1654_v17, %v1653_v3  ;;  %v3082_v33 = vadd.f32 %v674_v15, %v590_v45 }
 0x136   :  { %v1335_v12 = vadd.f32 %v1334_v54, %v1333_v26 }
 0x137   :  { %v595_v25 = vadd.f32 %v1655_v55, %v510_v46  ;;  %v1273_v34 = vsel %vm128_vm0, %v3082_v33, 0.0  ;;  %v1331_v38 = vmul.f32 %v3082_v33, %v3082_v33 }
 0x138   :  { %v1274_v48 = vadd.f32 %v1273_v34, %v1272_v47 }
 0x139   :  { %v3088_v51 = vadd.f32 %v1911_v13, %v595_v25  ;;  %v1336_v52 = vsel %vm128_vm0, %v1331_v38, 0.0 }
 0x13a   :  { %v1337_v63 = vadd.f32 %v1336_v52, %v1335_v12 }
 0x13b   :  { %v1332_v5 = vmul.f32 %v3088_v51, %v3088_v51  ;;  %v1275_v14 = vsel %vm128_vm0, %v3088_v51, 0.0 }
 0x13c   :  { %v1276_v20 = vadd.f32 %v1275_v14, %v1274_v48 }
 0x13d   :  { %v1338_v27 = vsel %vm128_vm0, %v1332_v5, 0.0 }
 0x13e   :  { %v1277_v37 = vrot.slane %v1276_v20, 4  ;;  %v1339_v56 = vadd.f32 %v1338_v27, %v1337_v63 }
 0x140   :  { %v1278_v49 = vadd.f32 %v1277_v37, %v1276_v20  ;;  %v1340_v50 = vrot.slane %v1339_v56, 4 }
 0x142   :  { %v1279_v60 = vrot.slane %v1278_v49, 2  ;;  %v1341_v0 = vadd.f32 %v1340_v50, %v1339_v56 }
 0x144   :  { %v1280_v24 = vadd.f32 %v1279_v60, %v1278_v49  ;;  %v1342_v57 = vrot.slane %v1341_v0, 2 }
 0x146   :  { %v1281_v59 = vrot.slane %v1280_v24, 1  ;;  %v1343_v61 = vadd.f32 %v1342_v57, %v1341_v0 }
 0x147   :  { %v1700_v1 = vpop.f32.mrb[20].mxu0 }
 0x148   :  { %v1282_v4 = vadd.f32 %v1281_v59, %v1280_v24  ;;  %v1344_v6 = vrot.slane %v1343_v61, 1  ;;  %v1701_v9 = vpop.f32.mrb[21].mxu0 }
 0x149   :  { %v1702_v13 = vadd.f32 %v1701_v9, %v1700_v1  ;;  %v1744_v15 = vpop.f32.mrb[20].mxu1 }
 0x14a   :  { %v3096_v22 = vadd.f32 %v1282_v4, %v1269_v2  ;;  %v1345_v23 = vadd.f32 %v1344_v6, %v1343_v61  ;;  %v1745_v28 = vpop.f32.mrb[21].mxu1 }
 0x14b   :  { %v782_v30 = vadd.f32 %v1702_v13, %v3030_v36  ;;  %v1746_v31 = vadd.f32 %v1745_v28, %v1744_v15  ;;  %v1703_v32 = vpop.f32.mrb[22].mxu0 }
 0x14c   :  { %v3099_v40 = vadd.f32 %v1345_v23, %v1328_v18  ;;  %v1704_v41 = vpop.f32.mrb[23].mxu0 }
 0x14d   :  { %v1705_v3 = vadd.f32 %v1704_v41, %v1703_v32  ;;  %v1747_v45 = vpop.f32.mrb[22].mxu1  ;;  %v867_v16 = vadd.f32 %v1746_v31, %v782_v30 }
 0x14e   :  { %v1748_v46 = vpop.f32.mrb[23].mxu1 }
 0x14f   :  { %v787_v47 = vadd.f32 %v1705_v3, %v3030_v36  ;;  %v1749_v17 = vadd.f32 %v1748_v46, %v1747_v45  ;;  %v1706_v26 = vpop.f32.mrb[24].mxu0 }
 0x150   :  { %v1707_v54 = vpop.f32.mrb[25].mxu0 }
 0x151   :  { %v1708_v55 = vadd.f32 %v1707_v54, %v1706_v26  ;;  %v1750_v8 = vpop.f32.mrb[24].mxu1  ;;  %v872_v12 = vadd.f32 %v1749_v17, %v787_v47 }
 0x152   :  { %v1751_v25 = vpop.f32.mrb[25].mxu1 }
 0x153   :  { %v792_v34 = vadd.f32 %v1708_v55, %v3030_v36  ;;  %v1752_v38 = vadd.f32 %v1751_v25, %v1750_v8  ;;  %v1709_v43 = vpop.f32.mrb[26].mxu0 }
 0x154   :  { %v1710_v48 = vpop.f32.mrb[27].mxu0 }
 0x155   :  { %v1711_v52 = vadd.f32 %v1710_v48, %v1709_v43  ;;  %v1753_v62 = vpop.f32.mrb[26].mxu1  ;;  %v877_v63 = vadd.f32 %v1752_v38, %v792_v34 }
 0x156   :  { %v1754_v5 = vpop.f32.mrb[27].mxu1 }
 0x157   :  { %v797_v14 = vadd.f32 %v1711_v52, %v3030_v36  ;;  %v1755_v19 = vadd.f32 %v1754_v5, %v1753_v62  ;;  %v1930_v20 = vpop.f32.mrb[28].mxu0 }
 0x158   :  { %v3104_v27 = vadd.f32 %v1930_v20, %v872_v12  ;;  %v951_v35 = vpop.f32.mrb[29].mxu0 }
 0x159   :  { %v3106_v37 = vadd.f32 %v951_v35, %v867_v16  ;;  %v882_v56 = vadd.f32 %v1755_v19, %v797_v14 }
 0x15a   :  { %v1285_v44 = vsel %vm128_vm0, %v3104_v27, 0.0  ;;  %v1348_v49 = vmul.f32 %v3104_v27, %v3104_v27 }
 0x15b   :  { %v1284_v50 = vsel %vm128_vm0, %v3106_v37, 0.0  ;;  %v1347_v53 = vmul.f32 %v3106_v37, %v3106_v37  ;;  %v1933_v60 = vpop.f32.mrb[30].mxu0 }
 0x15c   :  { %v1352_v0 = vsel %vm128_vm0, %v1348_v49, 0.0  ;;  %v1286_v10 = vadd.f32 %v1285_v44, %v1284_v50  ;;  %v3117_v24 = vadd.f32 %v1933_v60, %v882_v56  ;;  %v961_v57 = vpop.f32.mrb[31].mxu0 }
 0x15d   :  { %v1351_v58 = vsel %vm128_vm0, %v1347_v53, 0.0  ;;  %v3120_v59 = vadd.f32 %v961_v57, %v877_v63 }
 0x15e   :  { %v1353_v61 = vadd.f32 %v1352_v0, %v1351_v58  ;;  %v1350_v1 = vmul.f32 %v3117_v24, %v3117_v24  ;;  %v1289_v9 = vsel %vm128_vm0, %v3117_v24, 0.0 }
 0x15f   :  { %v1287_v2 = vsel %vm128_vm0, %v3120_v59, 0.0  ;;  %v1349_v4 = vmul.f32 %v3120_v59, %v3120_v59 }
 0x160   :  { %v1288_v6 = vadd.f32 %v1287_v2, %v1286_v10  ;;  %v1356_v23 = vsel %vm128_vm0, %v1350_v1, 0.0 }
 0x161   :  { %v1354_v13 = vsel %vm128_vm0, %v1349_v4, 0.0 }
 0x162   :  { %v1290_v15 = vadd.f32 %v1289_v9, %v1288_v6  ;;  %v1355_v18 = vadd.f32 %v1354_v13, %v1353_v61 }
 0x164   :  { %v1291_v28 = vrot.slane %v1290_v15, 4  ;;  %v1357_v30 = vadd.f32 %v1356_v23, %v1355_v18 }
 0x166   :  { %v1292_v31 = vadd.f32 %v1291_v28, %v1290_v15  ;;  %v1358_v32 = vrot.slane %v1357_v30, 4 }
 0x168   :  { %v1293_v41 = vrot.slane %v1292_v31, 2  ;;  %v1359_v3 = vadd.f32 %v1358_v32, %v1357_v30 }
 0x169   :  { %v1800_v45 = vpop.f32.mrb[28].mxu1 }
 0x16a   :  { %v1294_v16 = vadd.f32 %v1293_v41, %v1292_v31  ;;  %v1360_v46 = vrot.slane %v1359_v3, 2  ;;  %v1801_v47 = vpop.f32.mrb[29].mxu1 }
 0x16b   :  { %v1802_v17 = vadd.f32 %v1801_v47, %v1800_v45 }
 0x16c   :  { %v1295_v26 = vrot.slane %v1294_v16, 1  ;;  %v1361_v54 = vadd.f32 %v1360_v46, %v1359_v3 }
 0x16d   :  { %v1803_v55 = vpop.f32.mrb[30].mxu1  ;;  %v1069_v56 = vadd.f32 %v1802_v17, %v3030_v36 }
 0x16e   :  { %v1296_v8 = vadd.f32 %v1295_v26, %v1294_v16  ;;  %v1362_v12 = vrot.slane %v1361_v54, 1  ;;  %v1804_v25 = vpop.f32.mrb[31].mxu1 }
 0x16f   :  { %v1805_v34 = vadd.f32 %v1804_v25, %v1803_v55 }
 0x170   :  { %v3133_v38 = vadd.f32 %v1296_v8, %v3096_v22  ;;  %v1363_v43 = vadd.f32 %v1362_v12, %v1361_v54 }
 0x171   :  { %v1806_v48 = vpop.f32.mrb[32].mxu1  ;;  %v1074_v0 = vadd.f32 %v1805_v34, %v3030_v36 }
 0x172   :  { %v3136_v52 = vadd.f32 %v1363_v43, %v3099_v40  ;;  %v1807_v62 = vpop.f32.mrb[33].mxu1 }
 0x173   :  { %v1808_v63 = vadd.f32 %v1807_v62, %v1806_v48 }
 0x175   :  { %v1809_v5 = vpop.f32.mrb[34].mxu1  ;;  %v1079_v4 = vadd.f32 %v1808_v63, %v3030_v36 }
 0x176   :  { %v1810_v14 = vpop.f32.mrb[35].mxu1 }
 0x177   :  { %v1844_v19 = vpop.f32.mrb[32].mxu0  ;;  %v1811_v20 = vadd.f32 %v1810_v14, %v1809_v5 }
 0x178   :  { %v1845_v35 = vpop.f32.mrb[33].mxu0 }
 0x179   :  { %v1846_v44 = vadd.f32 %v1845_v35, %v1844_v19  ;;  %v1952_v49 = vpop.f32.mrb[36].mxu1  ;;  %v1084_v31 = vadd.f32 %v1811_v20, %v3030_v36 }
 0x17a   :  { %v1238_v50 = vpop.f32.mrb[37].mxu1 }
 0x17b   :  { %v1847_v53 = vpop.f32.mrb[34].mxu0  ;;  %v1154_v22 = vadd.f32 %v1846_v44, %v1069_v56 }
 0x17c   :  { %v1848_v60 = vpop.f32.mrb[35].mxu0 }
 0x17d   :  { %v1849_v10 = vadd.f32 %v1848_v60, %v1847_v53  ;;  %v3140_v40 = vadd.f32 %v1238_v50, %v1154_v22  ;;  %v1955_v57 = vpop.f32.mrb[38].mxu1 }
 0x17e   :  { %v1248_v58 = vpop.f32.mrb[39].mxu1 }
 0x17f   :  { %v1159_v61 = vadd.f32 %v1849_v10, %v1074_v0  ;;  %v1850_v1 = vpop.f32.mrb[36].mxu0  ;;  %v1365_v9 = vmul.f32 %v3140_v40, %v3140_v40  ;;  %v1298_v18 = vsel %vm128_vm0, %v3140_v40, 0.0 }
 0x180   :  { %v1851_v2 = vpop.f32.mrb[37].mxu0 }
 0x181   :  { %v3143_v6 = vadd.f32 %v1952_v49, %v1159_v61  ;;  %v1852_v13 = vadd.f32 %v1851_v2, %v1850_v1  ;;  %v1369_v3 = vsel %vm128_vm0, %v1365_v9, 0.0  ;;  %v1396_v2 = vlaneseq  ;;  %v1390_v9 = vld [vmem:[%s3210_s6] sm:$0x1] }
 0x183   :  { %v1366_v15 = vmul.f32 %v3143_v6, %v3143_v6  ;;  %v1299_v23 = vsel %vm128_vm0, %v3143_v6, 0.0  ;;  %v1853_v28 = vpop.f32.mrb[38].mxu0  ;;  %v1164_v30 = vadd.f32 %v1852_v13, %v1079_v4  ;;  %v1397_v4 = vshrl.u32 %v1396_v2, 7 }
 0x184   :  { %v1300_v32 = vadd.f32 %v1299_v23, %v1298_v18  ;;  %v1854_v41 = vpop.f32.mrb[39].mxu0 }
 0x185   :  { %v1370_v45 = vsel %vm128_vm0, %v1366_v15, 0.0  ;;  %v1855_v16 = vadd.f32 %v1854_v41, %v1853_v28  ;;  %v3156_v46 = vadd.f32 %v1248_v58, %v1164_v30  ;;  %v1398_v13 = vsub.s32 0, %v1397_v4 }
 0x186   :  { %v1371_v47 = vadd.f32 %v1370_v45, %v1369_v3 }
 0x187   :  { %v1169_v17 = vadd.f32 %v1855_v16, %v1084_v31  ;;  %v1301_v26 = vsel %vm128_vm0, %v3156_v46, 0.0  ;;  %v1367_v54 = vmul.f32 %v3156_v46, %v3156_v46 }
 0x188   :  { %v1302_v55 = vadd.f32 %v1301_v26, %v1300_v32 }
 0x189   :  { %v1254_v8 = vadd.f32 %v1955_v57, %v1169_v17  ;;  %v1372_v36 = vsel %vm128_vm0, %v1367_v54, 0.0 }
 0x18a   :  { %v1373_v12 = vadd.f32 %v1372_v36, %v1371_v47 }
 0x18b   :  { %v1368_v25 = vmul.f32 %v1254_v8, %v1254_v8  ;;  %v1303_v34 = vsel %vm128_vm0, %v1254_v8, 0.0 }
 0x18c   :  { %v1304_v43 = vadd.f32 %v1303_v34, %v1302_v55 }
 0x18d   :  { %v1374_v48 = vsel %vm128_vm0, %v1368_v25, 0.0 }
 0x18e   :  { %v1305_v62 = vrot.slane %v1304_v43, 4  ;;  %v1375_v63 = vadd.f32 %v1374_v48, %v1373_v12 }
 0x190   :  { %v1306_v5 = vadd.f32 %v1305_v62, %v1304_v43  ;;  %v1376_v14 = vrot.slane %v1375_v63, 4 }
 0x192   :  { %v1307_v19 = vrot.slane %v1306_v5, 2  ;;  %v1377_v20 = vadd.f32 %v1376_v14, %v1375_v63 }
 0x194   :  { %v1308_v35 = vadd.f32 %v1307_v19, %v1306_v5  ;;  %v1378_v56 = vrot.slane %v1377_v20, 2 }
 0x196   :  { %v1309_v44 = vrot.slane %v1308_v35, 1  ;;  %v1379_v49 = vadd.f32 %v1378_v56, %v1377_v20 }
 0x198   :  { %v1310_v50 = vadd.f32 %v1309_v44, %v1308_v35  ;;  %v1380_v53 = vrot.slane %v1379_v49, 1 }
 0x19a   :  { %v1311_v22 = vadd.f32 %v1310_v50, %v3133_v38  ;;  %v1381_v60 = vadd.f32 %v1380_v53, %v1379_v49  ;;  %v1392_v38 = vld [vmem:[%s3211_s7] sm:$0x1] }
 0x19c   :  { %v1382_v0 = vadd.f32 %v1381_v60, %v3136_v52  ;;  %v1384_v10 = vmul.f32 0.0078125, %v1311_v22 }
 0x19e   :  { %v1385_v57 = vmul.f32 0.0078125, %v1382_v0  ;;  %v1386_v58 = vmul.f32 %v1384_v10, %v1384_v10 }
 0x1a0   :  { %v1387_v61 = vsub.f32 %v1385_v57, %v1386_v58 }
 0x1a2   :  { %v1388_v1 = vadd.f32 1e-05, %v1387_v61 }
 0x1a4   :  { %2276 = vrsqrt.f32 %v1388_v1 }
 0x1ae   :  { %v2277_v15 = vpop.eup %2276 }
 0x1af   :  { %v1391_v18 = vmul.f32 %v2277_v15, %v1390_v9 }
 0x1b1   :  { %v1393_v52 = vmul.f32 %v1391_v18, %v1384_v10  ;;  %v1399_v23 = vrot.slane %v1391_v18, %v1398_v13 }
 0x1b3   :  { %v1394_v28 = vsub.f32 %v1392_v38, %v1393_v52  ;;  %v1401_v30 = vmul.f32 %v1399_v23, %v3038_v7  ;;  %v1402_v31 = vmul.f32 %v1399_v23, %v3036_v42  ;;  %v1403_v32 = vmul.f32 %v1399_v23, %v3052_v21 }
 0x1b4   :  { %v1404_v41 = vmul.f32 %v1399_v23, %v3049_v39  ;;  %v1405_v3 = vmul.f32 %v1399_v23, %v3066_v11  ;;  %v1406_v45 = vmul.f32 %v1399_v23, %v3069_v29  ;;  %v1407_v16 = vmul.f32 %v1399_v23, %v3082_v33 }
 0x1b5   :  { %v1408_v47 = vmul.f32 %v1399_v23, %v3088_v51  ;;  %v1413_v17 = vmul.f32 %v1399_v23, %v3106_v37  ;;  %v1414_v26 = vmul.f32 %v1399_v23, %v3104_v27  ;;  %v1415_v7 = vmul.f32 %v1399_v23, %v3120_v59 }
 0x1b6   :  { %v1409_v54 = vmax.f32 %v1401_v30, %v1405_v3  ;;  %v1410_v42 = vmax.f32 %v1402_v31, %v1406_v45  ;;  %v1411_v55 = vmax.f32 %v1403_v32, %v1407_v16  ;;  %v1416_v21 = vmul.f32 %v1399_v23, %v3117_v24 }
 0x1b7   :  { %v1412_v39 = vmax.f32 %v1404_v41, %v1408_v47  ;;  %v1417_v11 = vmul.f32 %v1399_v23, %v3140_v40  ;;  %v1418_v29 = vmul.f32 %v1399_v23, %v3143_v6  ;;  %v1419_v33 = vmul.f32 %v1399_v23, %v3156_v46 }
 0x1b8   :  { %v1420_v36 = vmul.f32 %v1399_v23, %v1254_v8  ;;  %v1433_v43 = vrot.slane %v1394_v28, %v1398_v13 }
 0x1b9   :  { %v1421_v51 = vmax.f32 %v1413_v17, %v1417_v11  ;;  %v1422_v12 = vmax.f32 %v1414_v26, %v1418_v29  ;;  %v1423_v37 = vmax.f32 %v1415_v7, %v1419_v33 }
 0x1ba   :  { %v1424_v25 = vmax.f32 %v1416_v21, %v1420_v36 }
 0x1bb   :  { %v1425_v27 = vmax.f32 %v1409_v54, %v1421_v51  ;;  %v1426_v34 = vmax.f32 %v1410_v42, %v1422_v12  ;;  %v1427_v59 = vmax.f32 %v1411_v55, %v1423_v37 }
 0x1bc   :  { %v1428_v48 = vmax.f32 %v1412_v39, %v1424_v25 }
 0x1bd   :  { %v1435_v62 = vadd.f32 %v1433_v43, %v1425_v27  ;;  %v1436_v63 = vadd.f32 %v1433_v43, %v1426_v34  ;;  %v1437_v24 = vadd.f32 %v1433_v43, %v1427_v59 }
 0x1be   :  { %v1438_v5 = vadd.f32 %v1433_v43, %v1428_v48 }
 0x1bf   :  { %v1439_v14 = vmax.f32 %v1435_v62, 0.0  ;;  %v1440_v40 = vmax.f32 %v1436_v63, 0.0  ;;  %v1441_v19 = vmax.f32 %v1437_v24, 0.0 }
 0x1c0   :  { %v1442_v6 = vmax.f32 %v1438_v5, 0.0 }
 0x1c1   :  { %1443 = vst.msk [vmem:[%s3212_s8] sm:$0xff] %vm128_vm0, %v1439_v14  ;;  %1444 = vst.msk [vmem:[%s3212_s8 + $0x8] sm:$0xff] %vm128_vm0, %v1440_v40 }
 0x1c2   :  { %1445 = vst.msk [vmem:[%s3212_s8 + $0x10] sm:$0xff] %vm128_vm0, %v1441_v19  ;;  %1446 = vst.msk [vmem:[%s3212_s8 + $0x18] sm:$0xff] %vm128_vm0, %v1442_v6 }

// kernel: convnet_s_forward.6
= control target key start
LH: loop header
LB: loop body
LE: loop exit
PB: predicated region body
PF: predicated region fallthrough
CT: control target
= control target key end

     0   :  { %vm1792_vm0 = vmmov 0   ;;  %vm113_vm1 = vcmask 523264   ;;  %s2404_s4 = inlined_call_operand.vmem [shape: f32[576,64], index: 4, kind: input, shape index: {}]   ;;  %s2405_s0 = inlined_call_operand.vmem [shape: f32[8,576], index: 0, kind: input, shape index: {}]   ;;  %s2406_s1 = inlined_call_operand.vmem [shape: f32[8,576], index: 1, kind: input, shape index: {}]   ;;  %s2407_s2 = inlined_call_operand.vmem [shape: f32[8,576], index: 2, kind: input, shape index: {}]   ;;  %s2408_s3 = inlined_call_operand.vmem [shape: f32[8,576], index: 3, kind: input, shape index: {}]   ;;  %s2409_s5 = inlined_call_operand.vmem [shape: f32[1,64], index: 5, kind: input, shape index: {}]   ;;  %s2410_s6 = inlined_call_operand.vmem [shape: f32[1,64], index: 6, kind: input, shape index: {}]   ;;  %s2411_s7 = inlined_call_operand.vmem [shape: f32[1,64], index: 7, kind: input, shape index: {}]   ;;  %s2412_s8 = inlined_call_operand.vmem [shape: f32[8,64], index: 8, kind: output, shape index: {}]  }
   0x1   :  { %v45_v0 = vld [vmem:[%s2404_s4 + $0x80] sm:$0xff]  ;;  %v46_v1 = vld [vmem:[%s2404_s4 + $0x88] sm:$0xff]  ;;  %v47_v11 = vld [vmem:[%s2404_s4 + $0x90] sm:$0xff] }
   0x2   :  { %v29_v2 = vld [vmem:[%s2404_s4] sm:$0xff]  ;;  %v1848_v3 = vpack.c.bf16 %v46_v1, %v45_v0  ;;  %v30_v4 = vld [vmem:[%s2404_s4 + $0x8] sm:$0xff]  ;;  %v48_v13 = vld [vmem:[%s2404_s4 + $0x98] sm:$0xff] }
   0x3   :  { %v77_v5 = vld [vmem:[%s2404_s4 + $0x180] sm:$0xff]  ;;  %v78_v6 = vld [vmem:[%s2404_s4 + $0x188] sm:$0xff]  ;;  %v1859_v7 = vpack.c.bf16 %v30_v4, %v29_v2  ;;  %v31_v14 = vld [vmem:[%s2404_s4 + $0x10] sm:$0xff]  ;;  %v1886_v16 = vpack.c.bf16 %v48_v13, %v47_v11 }
   0x4   :  { %v1861_v8 = vpack.c.bf16 %v78_v6, %v77_v5  ;;  %v61_v9 = vld [vmem:[%s2404_s4 + $0x100] sm:$0xff]  ;;  %v62_v10 = vld [vmem:[%s2404_s4 + $0x108] sm:$0xff]  ;;  %1483 = vmatprep.subr.bf16.mxu0 %v1848_v3  ;;  %v32_v15 = vld [vmem:[%s2404_s4 + $0x18] sm:$0xff] }
   0x5   :  { %v1873_v12 = vpack.c.bf16 %v62_v10, %v61_v9  ;;  %1485 = vmatpush3.bf16.msra.mxu0 %v1859_v7  ;;  %v1888_v17 = vpack.c.bf16 %v32_v15, %v31_v14  ;;  %v79_v18 = vld [vmem:[%s2404_s4 + $0x190] sm:$0xff]  ;;  %v80_v19 = vld [vmem:[%s2404_s4 + $0x198] sm:$0xff]  ;;  %v49_v23 = vld [vmem:[%s2404_s4 + $0xa0] sm:$0xff] }
   0x6   :  { %1515 = vmatprep.subr.bf16.mxu1 %v1861_v8  ;;  %v63_v20 = vld [vmem:[%s2404_s4 + $0x110] sm:$0xff]  ;;  %v1900_v21 = vpack.c.bf16 %v80_v19, %v79_v18  ;;  %v64_v22 = vld [vmem:[%s2404_s4 + $0x118] sm:$0xff]  ;;  %v50_v24 = vld [vmem:[%s2404_s4 + $0xa8] sm:$0xff]  ;;  %1487 = vmatprep.subr.bf16.mxu0 %v1886_v16 }
   0x7   :  { %1517 = vmatpush3.bf16.msra.mxu1 %v1873_v12  ;;  %v1912_v25 = vpack.c.bf16 %v64_v22, %v63_v20  ;;  %v1914_v26 = vpack.c.bf16 %v50_v24, %v49_v23  ;;  %v33_v27 = vld [vmem:[%s2404_s4 + $0x20] sm:$0xff]  ;;  %v34_v28 = vld [vmem:[%s2404_s4 + $0x28] sm:$0xff]  ;;  %v51_v35 = vld [vmem:[%s2404_s4 + $0xb0] sm:$0xff] }
   0x8   :  { %v81_v29 = vld [vmem:[%s2404_s4 + $0x1a0] sm:$0xff]  ;;  %1519 = vmatprep.subr.bf16.mxu1 %v1900_v21  ;;  %v82_v30 = vld [vmem:[%s2404_s4 + $0x1a8] sm:$0xff]  ;;  %v1936_v33 = vpack.c.bf16 %v34_v28, %v33_v27  ;;  %v52_v36 = vld [vmem:[%s2404_s4 + $0xb8] sm:$0xff] }
   0x9   :  { %v65_v31 = vld [vmem:[%s2404_s4 + $0x120] sm:$0xff]  ;;  %v66_v32 = vld [vmem:[%s2404_s4 + $0x128] sm:$0xff]  ;;  %1489 = vmatpush3.bf16.msra.mxu0 %v1888_v17  ;;  %v1938_v34 = vpack.c.bf16 %v82_v30, %v81_v29  ;;  %v35_v37 = vld [vmem:[%s2404_s4 + $0x30] sm:$0xff]  ;;  %v1953_v39 = vpack.c.bf16 %v52_v36, %v51_v35 }
   0xa   :  { %1491 = vmatprep.subr.bf16.mxu0 %v1914_v26  ;;  %v1951_v38 = vpack.c.bf16 %v66_v32, %v65_v31  ;;  %v36_v40 = vld [vmem:[%s2404_s4 + $0x38] sm:$0xff]  ;;  %v83_v41 = vld [vmem:[%s2404_s4 + $0x1b0] sm:$0xff]  ;;  %v53_v46 = vld [vmem:[%s2404_s4 + $0xc0] sm:$0xff] }
   0xb   :  { %1521 = vmatpush3.bf16.msra.mxu1 %v1912_v25  ;;  %v84_v42 = vld [vmem:[%s2404_s4 + $0x1b8] sm:$0xff]  ;;  %v67_v44 = vld [vmem:[%s2404_s4 + $0x130] sm:$0xff]  ;;  %v54_v47 = vld [vmem:[%s2404_s4 + $0xc8] sm:$0xff]  ;;  %v1980_v48 = vpack.c.bf16 %v36_v40, %v35_v37 }
   0xc   :  { %1523 = vmatprep.subr.bf16.mxu1 %v1938_v34  ;;  %v1965_v43 = vpack.c.bf16 %v84_v42, %v83_v41  ;;  %v68_v45 = vld [vmem:[%s2404_s4 + $0x138] sm:$0xff]  ;;  %v85_v49 = vld [vmem:[%s2404_s4 + $0x1c0] sm:$0xff]  ;;  %v86_v50 = vld [vmem:[%s2404_s4 + $0x1c8] sm:$0xff]  ;;  %v1992_v52 = vpack.c.bf16 %v54_v47, %v53_v46 }
   0xd   :  { %1493 = vmatpush3.bf16.msra.mxu0 %v1936_v33  ;;  %v1990_v51 = vpack.c.bf16 %v68_v45, %v67_v44  ;;  %v37_v53 = vld [vmem:[%s2404_s4 + $0x40] sm:$0xff]  ;;  %v38_v54 = vld [vmem:[%s2404_s4 + $0x48] sm:$0xff]  ;;  %v2004_v56 = vpack.c.bf16 %v86_v50, %v85_v49  ;;  %v55_v58 = vld [vmem:[%s2404_s4 + $0xd0] sm:$0xff] }
   0xe   :  { %1495 = vmatprep.subr.bf16.mxu0 %v1953_v39  ;;  %v69_v55 = vld [vmem:[%s2404_s4 + $0x140] sm:$0xff]  ;;  %v70_v57 = vld [vmem:[%s2404_s4 + $0x148] sm:$0xff]  ;;  %v56_v59 = vld [vmem:[%s2404_s4 + $0xd8] sm:$0xff]  ;;  %v2022_v62 = vpack.c.bf16 %v38_v54, %v37_v53 }
   0xf   :  { %1525 = vmatpush3.bf16.msra.mxu1 %v1951_v38  ;;  %v87_v60 = vld [vmem:[%s2404_s4 + $0x1d0] sm:$0xff]  ;;  %v88_v61 = vld [vmem:[%s2404_s4 + $0x1d8] sm:$0xff]  ;;  %v2026_v63 = vpack.c.bf16 %v70_v57, %v69_v55  ;;  %v2028_v0 = vpack.c.bf16 %v56_v59, %v55_v58  ;;  %v57_v9 = vld [vmem:[%s2404_s4 + $0xe0] sm:$0xff]  ;;  %v1791_v55 = vmov 0.0|0.0  }
  0x10   :  { %1527 = vmatprep.subr.bf16.mxu1 %v1965_v43  ;;  %v39_v1 = vld [vmem:[%s2404_s4 + $0x50] sm:$0xff]  ;;  %v40_v2 = vld [vmem:[%s2404_s4 + $0x58] sm:$0xff]  ;;  %v2040_v5 = vpack.c.bf16 %v88_v61, %v87_v60  ;;  %v58_v10 = vld [vmem:[%s2404_s4 + $0xe8] sm:$0xff] }
  0x11   :  { %1497 = vmatpush3.bf16.msra.mxu0 %v1980_v48  ;;  %v71_v4 = vld [vmem:[%s2404_s4 + $0x150] sm:$0xff]  ;;  %v72_v6 = vld [vmem:[%s2404_s4 + $0x158] sm:$0xff]  ;;  %v89_v11 = vld [vmem:[%s2404_s4 + $0x1e0] sm:$0xff]  ;;  %v2058_v14 = vpack.c.bf16 %v40_v2, %v39_v1  ;;  %v2070_v20 = vpack.c.bf16 %v58_v10, %v57_v9 }
  0x12   :  { %1499 = vmatprep.subr.bf16.mxu0 %v1992_v52  ;;  %v90_v13 = vld [vmem:[%s2404_s4 + $0x1e8] sm:$0xff]  ;;  %v41_v15 = vld [vmem:[%s2404_s4 + $0x60] sm:$0xff]  ;;  %v2068_v19 = vpack.c.bf16 %v72_v6, %v71_v4  ;;  %v59_v28 = vld [vmem:[%s2404_s4 + $0xf0] sm:$0xff]  ;;  %v1793_v4 = vmov 0.0  }
  0x13   :  { %1529 = vmatpush3.bf16.msra.mxu1 %v1990_v51  ;;  %v103_v18 = vld [vmem:[%s2405_s0 + $0x8] sm:$0xff]  ;;  %v73_v23 = vld [vmem:[%s2404_s4 + $0x160] sm:$0xff]  ;;  %v2082_v27 = vpack.c.bf16 %v90_v13, %v89_v11  ;;  %v60_v29 = vld [vmem:[%s2404_s4 + $0xf8] sm:$0xff] }
  0x14   :  { %1531 = vmatprep.subr.bf16.mxu1 %v2004_v56  ;;  %v42_v22 = vld [vmem:[%s2404_s4 + $0x68] sm:$0xff]  ;;  %181 = vmatprep.mubr.f32.mxu0 %v103_v18  ;;  %v105_v30 = vld [vmem:[%s2405_s0 + $0x18] sm:$0xff]  ;;  %v91_v31 = vld [vmem:[%s2404_s4 + $0x1f0] sm:$0xff]  ;;  %v2106_v37 = vpack.c.bf16 %v60_v29, %v59_v28 }
  0x15   :  { %1501 = vmatpush3.bf16.msra.mxu0 %v2022_v62  ;;  %v74_v24 = vld [vmem:[%s2404_s4 + $0x168] sm:$0xff]  ;;  %v92_v32 = vld [vmem:[%s2404_s4 + $0x1f8] sm:$0xff]  ;;  %251 = vmatprep.mubr.f32.mxu1 %v105_v30  ;;  %v2100_v35 = vpack.c.bf16 %v42_v22, %v41_v15  ;;  %v43_v40 = vld [vmem:[%s2404_s4 + $0x70] sm:$0xff] }
  0x16   :  { %1503 = vmatprep.subr.bf16.mxu0 %v2028_v0  ;;  %v2104_v36 = vpack.c.bf16 %v74_v24, %v73_v23  ;;  %v44_v41 = vld [vmem:[%s2404_s4 + $0x78] sm:$0xff]  ;;  %v2115_v42 = vpack.c.bf16 %v92_v32, %v91_v31  ;;  %v75_v44 = vld [vmem:[%s2404_s4 + $0x170] sm:$0xff]  ;;  %v93_v49 = vld [vmem:[%s2404_s4 + $0x200] sm:$0xff] }
  0x17   :  { %1533 = vmatpush3.bf16.msra.mxu1 %v2026_v63  ;;  %v76_v45 = vld [vmem:[%s2404_s4 + $0x178] sm:$0xff]  ;;  %v2124_v46 = vpack.c.bf16 %v44_v41, %v43_v40  ;;  %v94_v50 = vld [vmem:[%s2404_s4 + $0x208] sm:$0xff]  ;;  %v102_v53 = vld [vmem:[%s2405_s0] sm:$0xff] }
  0x18   :  { %1535 = vmatprep.subr.bf16.mxu1 %v2040_v5  ;;  %v2128_v47 = vpack.c.bf16 %v76_v45, %v75_v44  ;;  %v2141_v54 = vpack.c.bf16 %v94_v50, %v93_v49  ;;  %v104_v57 = vld [vmem:[%s2405_s0 + $0x10] sm:$0xff]  ;;  %v96_v59 = vld [vmem:[%s2404_s4 + $0x218] sm:$0xff]  ;;  %v328_v61 = vld [vmem:[%s2406_s1 + $0x8] sm:$0xff] }
  0x19   :  { %1505 = vmatpush3.bf16.msra.mxu0 %v2058_v14  ;;  %v95_v58 = vld [vmem:[%s2404_s4 + $0x210] sm:$0xff]  ;;  %v97_v1 = vld [vmem:[%s2404_s4 + $0x220] sm:$0xff]  ;;  %v98_v2 = vld [vmem:[%s2404_s4 + $0x228] sm:$0xff] }
  0x1a   :  { %1507 = vmatprep.subr.bf16.mxu0 %v2070_v20  ;;  %v2156_v60 = vpack.c.bf16 %v96_v59, %v95_v58  ;;  %v2173_v6 = vpack.c.bf16 %v98_v2, %v97_v1  ;;  %v99_v9 = vld [vmem:[%s2404_s4 + $0x230] sm:$0xff]  ;;  %v100_v10 = vld [vmem:[%s2404_s4 + $0x238] sm:$0xff]  ;;  %v106_v13 = vld [vmem:[%s2405_s0 + $0x20] sm:$0xff] }
  0x1b   :  { %1537 = vmatpush3.bf16.msra.mxu1 %v2068_v19  ;;  %v2185_v11 = vpack.c.bf16 %v100_v10, %v99_v9  ;;  %v330_v15 = vld [vmem:[%s2406_s1 + $0x18] sm:$0xff]  ;;  %v327_v18 = vld [vmem:[%s2406_s1] sm:$0xff]  ;;  %v329_v22 = vld [vmem:[%s2406_s1 + $0x10] sm:$0xff] }
  0x1c   :  { %1539 = vmatprep.subr.bf16.mxu1 %v2082_v27  ;;  %v331_v23 = vld [vmem:[%s2406_s1 + $0x20] sm:$0xff]  ;;  %v546_v24 = vld [vmem:[%s2407_s2 + $0x8] sm:$0xff]  ;;  %v548_v28 = vld [vmem:[%s2407_s2 + $0x18] sm:$0xff] }
  0x1d   :  { %1509 = vmatpush3.bf16.msra.mxu0 %v2100_v35  ;;  %v545_v29 = vld [vmem:[%s2407_s2] sm:$0xff]  ;;  %v547_v30 = vld [vmem:[%s2407_s2 + $0x10] sm:$0xff]  ;;  %v764_v31 = vld [vmem:[%s2408_s3 + $0x8] sm:$0xff] }
  0x1e   :  { %1511 = vmatprep.subr.bf16.mxu0 %v2106_v37 }
  0x1f   :  { %1541 = vmatpush3.bf16.msra.mxu1 %v2104_v36 }
  0x20   :  { %1543 = vmatprep.subr.bf16.mxu1 %v2115_v42 }
  0x21   :  { %1513 = vmatpush3.bf16.msra.mxu0 %v2124_v46 }
  0x22   :  { %1546 = vmatprep.subr.bf16.mxu0 %v1791_v55 }
  0x23   :  { %1545 = vmatpush3.bf16.msra.mxu1 %v2128_v47 }
  0x24   :  { %1559 = vmatprep.subr.bf16.mxu1 %v1848_v3  ;;  %182 = vmatmul.mubr.f32.vlgmr.msra.gmra.mrb[0].mxu0 %v102_v53 }
  0x25   :  { %1548 = vmatpush3.bf16.msra.mxu0 %v2141_v54  ;;  %1422 = vmatprep.mubr.msk.f32.mxu0 %vm1792_vm0, %v1793_v4 }
  0x26   :  { %252 = vmatmul.mubr.f32.vlgmr.msra.gmra.mrb[0].mxu1 %v104_v57  ;;  %1549 = vmatprep.subr.bf16.mxu0 %v1791_v55 }
  0x27   :  { %1561 = vmatpush3.bf16.msra.mxu1 %v1859_v7  ;;  %399 = vmatprep.mubr.f32.mxu1 %v328_v61 }
  0x28   :  { %1563 = vmatprep.subr.bf16.mxu1 %v1886_v16 }
  0x29   :  { %1551 = vmatpush3.bf16.msra.mxu0 %v2156_v60 }
  0x2a   :  { %1552 = vmatprep.subr.bf16.mxu0 %v1791_v55 }
  0x2b   :  { %1565 = vmatpush3.bf16.msra.mxu1 %v1888_v17 }
  0x2c   :  { %1567 = vmatprep.subr.bf16.mxu1 %v1914_v26 }
  0x2d   :  { %1554 = vmatpush3.bf16.msra.mxu0 %v2173_v6 }
  0x2e   :  { %1555 = vmatprep.subr.bf16.mxu0 %v1791_v55 }
  0x2f   :  { %1569 = vmatpush3.bf16.msra.mxu1 %v1936_v33 }
  0x30   :  { %1571 = vmatprep.subr.bf16.mxu1 %v1953_v39 }
  0x31   :  { %1557 = vmatpush3.bf16.msra.mxu0 %v2185_v11 }
  0x32   :  { %1591 = vmatprep.subr.bf16.mxu0 %v1861_v8 }
  0x33   :  { %1573 = vmatpush3.bf16.msra.mxu1 %v1980_v48 }
  0x34   :  { %1575 = vmatprep.subr.bf16.mxu1 %v1992_v52  ;;  %1423 = vmatmul.mubr.msk.f32.vlgmr.msra.gmra.mrb[2].mxu0 %vm113_vm1, %v106_v13 }
  0x35   :  { %1593 = vmatpush3.bf16.msra.mxu0 %v1873_v12  ;;  %469 = vmatprep.mubr.f32.mxu0 %v330_v15 }
  0x36   :  { %1595 = vmatprep.subr.bf16.mxu0 %v1900_v21 }
  0x37   :  { %1577 = vmatpush3.bf16.msra.mxu1 %v2022_v62 }
  0x38   :  { %1579 = vmatprep.subr.bf16.mxu1 %v2028_v0 }
  0x39   :  { %1597 = vmatpush3.bf16.msra.mxu0 %v1912_v25 }
  0x3a   :  { %1599 = vmatprep.subr.bf16.mxu0 %v1938_v34 }
  0x3b   :  { %1581 = vmatpush3.bf16.msra.mxu1 %v2058_v14 }
  0x3c   :  { %1583 = vmatprep.subr.bf16.mxu1 %v2070_v20 }
  0x3d   :  { %1601 = vmatpush3.bf16.msra.mxu0 %v1951_v38 }
  0x3e   :  { %1603 = vmatprep.subr.bf16.mxu0 %v1965_v43 }
  0x3f   :  { %1585 = vmatpush3.bf16.msra.mxu1 %v2100_v35 }
  0x40   :  { %1587 = vmatprep.subr.bf16.mxu1 %v2106_v37 }
  0x41   :  { %1605 = vmatpush3.bf16.msra.mxu0 %v1990_v51 }
  0x42   :  { %1607 = vmatprep.subr.bf16.mxu0 %v2004_v56 }
  0x43   :  { %1589 = vmatpush3.bf16.msra.mxu1 %v2124_v46 }
  0x44   :  { %1622 = vmatprep.subr.bf16.mxu1 %v1791_v55 }
  0x45   :  { %1609 = vmatpush3.bf16.msra.mxu0 %v2026_v63 }
  0x46   :  { %400 = vmatmul.mubr.f32.vlgmr.msra.gmra.mrb[2].mxu1 %v327_v18  ;;  %1611 = vmatprep.subr.bf16.mxu0 %v2040_v5 }
  0x47   :  { %1624 = vmatpush3.bf16.msra.mxu1 %v2141_v54  ;;  %1441 = vmatprep.mubr.msk.f32.mxu1 %vm1792_vm0, %v1793_v4 }
  0x48   :  { %1625 = vmatprep.subr.bf16.mxu1 %v1791_v55 }
  0x49   :  { %1613 = vmatpush3.bf16.msra.mxu0 %v2068_v19 }
  0x4a   :  { %1615 = vmatprep.subr.bf16.mxu0 %v2082_v27 }
  0x4b   :  { %1627 = vmatpush3.bf16.msra.mxu1 %v2156_v60 }
  0x4c   :  { %1628 = vmatprep.subr.bf16.mxu1 %v1791_v55 }
  0x4d   :  { %1617 = vmatpush3.bf16.msra.mxu0 %v2104_v36 }
  0x4e   :  { %1619 = vmatprep.subr.bf16.mxu0 %v2115_v42 }
  0x4f   :  { %1630 = vmatpush3.bf16.msra.mxu1 %v2173_v6 }
  0x50   :  { %1631 = vmatprep.subr.bf16.mxu1 %v1791_v55 }
  0x51   :  { %1621 = vmatpush3.bf16.msra.mxu0 %v2128_v47 }
  0x52   :  { %1635 = vmatprep.subr.bf16.mxu0 %v1848_v3 }
  0x53   :  { %1633 = vmatpush3.bf16.msra.mxu1 %v2185_v11 }
  0x54   :  { %1667 = vmatprep.subr.bf16.mxu1 %v1861_v8  ;;  %470 = vmatmul.mubr.f32.vlgmr.msra.gmra.mrb[4].mxu0 %v329_v22 }
  0x55   :  { %1637 = vmatpush3.bf16.msra.mxu0 %v1859_v7  ;;  %617 = vmatprep.mubr.f32.mxu0 %v546_v24 }
  0x56   :  { %1442 = vmatmul.mubr.msk.f32.vlgmr.msra.gmra.mrb[4].mxu1 %vm113_vm1, %v331_v23  ;;  %1639 = vmatprep.subr.bf16.mxu0 %v1886_v16 }
  0x57   :  { %1669 = vmatpush3.bf16.msra.mxu1 %v1873_v12  ;;  %687 = vmatprep.mubr.f32.mxu1 %v548_v28 }
  0x58   :  { %1671 = vmatprep.subr.bf16.mxu1 %v1900_v21 }
  0x59   :  { %1641 = vmatpush3.bf16.msra.mxu0 %v1888_v17 }
  0x5a   :  { %1643 = vmatprep.subr.bf16.mxu0 %v1914_v26 }
  0x5b   :  { %1673 = vmatpush3.bf16.msra.mxu1 %v1912_v25 }
  0x5c   :  { %1675 = vmatprep.subr.bf16.mxu1 %v1938_v34 }
  0x5d   :  { %1645 = vmatpush3.bf16.msra.mxu0 %v1936_v33 }
  0x5e   :  { %1647 = vmatprep.subr.bf16.mxu0 %v1953_v39 }
  0x5f   :  { %1677 = vmatpush3.bf16.msra.mxu1 %v1951_v38 }
  0x60   :  { %1679 = vmatprep.subr.bf16.mxu1 %v1965_v43 }
  0x61   :  { %1649 = vmatpush3.bf16.msra.mxu0 %v1980_v48 }
  0x62   :  { %1651 = vmatprep.subr.bf16.mxu0 %v1992_v52 }
  0x63   :  { %1681 = vmatpush3.bf16.msra.mxu1 %v1990_v51 }
  0x64   :  { %1683 = vmatprep.subr.bf16.mxu1 %v2004_v56 }
  0x65   :  { %1653 = vmatpush3.bf16.msra.mxu0 %v2022_v62 }
  0x66   :  { %1655 = vmatprep.subr.bf16.mxu0 %v2028_v0 }
  0x67   :  { %1685 = vmatpush3.bf16.msra.mxu1 %v2026_v63 }
  0x68   :  { %1687 = vmatprep.subr.bf16.mxu1 %v2040_v5 }
  0x69   :  { %1657 = vmatpush3.bf16.msra.mxu0 %v2058_v14 }
  0x6a   :  { %1659 = vmatprep.subr.bf16.mxu0 %v2070_v20 }
  0x6b   :  { %1689 = vmatpush3.bf16.msra.mxu1 %v2068_v19 }
  0x6c   :  { %1691 = vmatprep.subr.bf16.mxu1 %v2082_v27 }
  0x6d   :  { %1661 = vmatpush3.bf16.msra.mxu0 %v2100_v35 }
  0x6e   :  { %1663 = vmatprep.subr.bf16.mxu0 %v2106_v37 }
  0x6f   :  { %1693 = vmatpush3.bf16.msra.mxu1 %v2104_v36 }
  0x70   :  { %1695 = vmatprep.subr.bf16.mxu1 %v2115_v42 }
  0x71   :  { %1665 = vmatpush3.bf16.msra.mxu0 %v2124_v46 }
  0x72   :  { %1698 = vmatprep.subr.bf16.mxu0 %v1791_v55 }
  0x73   :  { %1697 = vmatpush3.bf16.msra.mxu1 %v2128_v47 }
  0x74   :  { %1711 = vmatprep.subr.bf16.mxu1 %v1848_v3  ;;  %618 = vmatmul.mubr.f32.vlgmr.msra.gmra.mrb[6].mxu0 %v545_v29  ;;  %v549_v3 = vld [vmem:[%s2407_s2 + $0x20] sm:$0xff] }
  0x75   :  { %1700 = vmatpush3.bf16.msra.mxu0 %v2141_v54  ;;  %1460 = vmatprep.mubr.msk.f32.mxu0 %vm1792_vm0, %v1793_v4 }
  0x76   :  { %688 = vmatmul.mubr.f32.vlgmr.msra.gmra.mrb[6].mxu1 %v547_v30  ;;  %1701 = vmatprep.subr.bf16.mxu0 %v1791_v55 }
  0x77   :  { %1713 = vmatpush3.bf16.msra.mxu1 %v1859_v7  ;;  %835 = vmatprep.mubr.f32.mxu1 %v764_v31  ;;  %v766_v7 = vld [vmem:[%s2408_s3 + $0x18] sm:$0xff] }
  0x78   :  { %1715 = vmatprep.subr.bf16.mxu1 %v1886_v16  ;;  %v767_v16 = vld [vmem:[%s2408_s3 + $0x20] sm:$0xff] }
  0x79   :  { %1703 = vmatpush3.bf16.msra.mxu0 %v2156_v60 }
  0x7a   :  { %1704 = vmatprep.subr.bf16.mxu0 %v1791_v55 }
  0x7b   :  { %1717 = vmatpush3.bf16.msra.mxu1 %v1888_v17 }
  0x7c   :  { %1719 = vmatprep.subr.bf16.mxu1 %v1914_v26 }
  0x7d   :  { %1706 = vmatpush3.bf16.msra.mxu0 %v2173_v6 }
  0x7e   :  { %1707 = vmatprep.subr.bf16.mxu0 %v1791_v55 }
  0x7f   :  { %1721 = vmatpush3.bf16.msra.mxu1 %v1936_v33 }
  0x80   :  { %1723 = vmatprep.subr.bf16.mxu1 %v1953_v39 }
  0x81   :  { %1709 = vmatpush3.bf16.msra.mxu0 %v2185_v11 }
  0x82   :  { %1743 = vmatprep.subr.bf16.mxu0 %v1861_v8  ;;  %v763_v8 = vld [vmem:[%s2408_s3] sm:$0xff] }
  0x83   :  { %1725 = vmatpush3.bf16.msra.mxu1 %v1980_v48 }
  0x84   :  { %1727 = vmatprep.subr.bf16.mxu1 %v1992_v52  ;;  %1461 = vmatmul.mubr.msk.f32.vlgmr.msra.gmra.mrb[8].mxu0 %vm113_vm1, %v549_v3 }
  0x85   :  { %1745 = vmatpush3.bf16.msra.mxu0 %v1873_v12  ;;  %905 = vmatprep.mubr.f32.mxu0 %v766_v7  ;;  %v765_v12 = vld [vmem:[%s2408_s3 + $0x10] sm:$0xff] }
  0x86   :  { %1747 = vmatprep.subr.bf16.mxu0 %v1900_v21  ;;  %v2362_v21 = vld [vmem:[%s2409_s5] ss:$0 sm:$0xff] }
  0x87   :  { %1729 = vmatpush3.bf16.msra.mxu1 %v2022_v62 }
  0x88   :  { %1731 = vmatprep.subr.bf16.mxu1 %v2028_v0 }
  0x89   :  { %1749 = vmatpush3.bf16.msra.mxu0 %v1912_v25 }
  0x8a   :  { %1751 = vmatprep.subr.bf16.mxu0 %v1938_v34 }
  0x8b   :  { %1733 = vmatpush3.bf16.msra.mxu1 %v2058_v14 }
  0x8c   :  { %1735 = vmatprep.subr.bf16.mxu1 %v2070_v20 }
  0x8d   :  { %1753 = vmatpush3.bf16.msra.mxu0 %v1951_v38 }
  0x8e   :  { %1755 = vmatprep.subr.bf16.mxu0 %v1965_v43 }
  0x8f   :  { %1737 = vmatpush3.bf16.msra.mxu1 %v2100_v35 }
  0x90   :  { %1739 = vmatprep.subr.bf16.mxu1 %v2106_v37 }
  0x91   :  { %1757 = vmatpush3.bf16.msra.mxu0 %v1990_v51 }
  0x92   :  { %1759 = vmatprep.subr.bf16.mxu0 %v2004_v56 }
  0x93   :  { %1741 = vmatpush3.bf16.msra.mxu1 %v2124_v46 }
  0x94   :  { %1774 = vmatprep.subr.bf16.mxu1 %v1791_v55 }
  0x95   :  { %1761 = vmatpush3.bf16.msra.mxu0 %v2026_v63 }
  0x96   :  { %836 = vmatmul.mubr.f32.vlgmr.msra.gmra.mrb[8].mxu1 %v763_v8  ;;  %1763 = vmatprep.subr.bf16.mxu0 %v2040_v5 }
  0x97   :  { %1776 = vmatpush3.bf16.msra.mxu1 %v2141_v54  ;;  %1479 = vmatprep.mubr.msk.f32.mxu1 %vm1792_vm0, %v1793_v4 }
  0x98   :  { %1777 = vmatprep.subr.bf16.mxu1 %v1791_v55 }
  0x99   :  { %1765 = vmatpush3.bf16.msra.mxu0 %v2068_v19 }
  0x9a   :  { %1767 = vmatprep.subr.bf16.mxu0 %v2082_v27 }
  0x9b   :  { %1779 = vmatpush3.bf16.msra.mxu1 %v2156_v60 }
  0x9c   :  { %1780 = vmatprep.subr.bf16.mxu1 %v1791_v55 }
  0x9d   :  { %1769 = vmatpush3.bf16.msra.mxu0 %v2104_v36 }
  0x9e   :  { %1771 = vmatprep.subr.bf16.mxu0 %v2115_v42 }
  0x9f   :  { %1782 = vmatpush3.bf16.msra.mxu1 %v2173_v6 }
  0xa0   :  { %1783 = vmatprep.subr.bf16.mxu1 %v1791_v55 }
  0xa1   :  { %1773 = vmatpush3.bf16.msra.mxu0 %v2128_v47 }
  0xa3   :  { %1785 = vmatpush3.bf16.msra.mxu1 %v2185_v11 }
  0xa4   :  { %906 = vmatmul.mubr.f32.vlgmr.msra.gmra.mrb[10].mxu0 %v765_v12 }
  0xa6   :  { %1480 = vmatmul.mubr.msk.f32.vlgmr.msra.gmra.mrb[10].mxu1 %vm113_vm1, %v767_v16 }
  0xf7   :  { %v1122_v17 = vpop.f32.mrb[0].mxu0 }
  0xf8   :  { %v1123_v25 = vpop.f32.mrb[1].mxu0 }
  0xf9   :  { %v1157_v26 = vpop.f32.mrb[0].mxu1  ;;  %v1124_v33 = vadd.f32 %v1123_v25, %v1122_v17 }
  0xfa   :  { %v1158_v34 = vpop.f32.mrb[1].mxu1 }
  0xfb   :  { %v1159_v38 = vadd.f32 %v1158_v34, %v1157_v26  ;;  %v184_v39 = vadd.f32 %v1124_v33, %v2362_v21 }
  0xfd   :  { %v254_v43 = vadd.f32 %v1159_v38, %v184_v39 }
 0x107   :  { %v323_v48 = vpop.f32.mrb[2].mxu0 }
 0x108   :  { %v2365_v51 = vadd.f32 %v323_v48, %v254_v43  ;;  %v1424_v52 = vpop.f32.mrb[3].mxu0 }
 0x10a   :  { %v1012_v0 = vmul.f32 %v2365_v51, %v2365_v51  ;;  %v981_v5 = vsel %vm113_vm1, %v2365_v51, 0.0 }
 0x10b   :  { %v982_v19 = vrot.slane %v981_v5, 4 }
 0x10c   :  { %v1013_v14 = vsel %vm113_vm1, %v1012_v0, 0.0 }
 0x10d   :  { %v1014_v27 = vrot.slane %v1013_v14, 4  ;;  %v983_v41 = vadd.f32 %v982_v19, %v981_v5 }
 0x10f   :  { %v1015_v44 = vadd.f32 %v1014_v27, %v1013_v14  ;;  %v984_v46 = vrot.slane %v983_v41, 2 }
 0x111   :  { %v1016_v50 = vrot.slane %v1015_v44, 2  ;;  %v985_v55 = vadd.f32 %v984_v46, %v983_v41 }
 0x113   :  { %v1017_v59 = vadd.f32 %v1016_v50, %v1015_v44  ;;  %v986_v1 = vrot.slane %v985_v55, 1 }
 0x115   :  { %v1018_v6 = vrot.slane %v1017_v59, 1  ;;  %v987_v11 = vadd.f32 %v986_v1, %v985_v55 }
 0x117   :  { %v1019_v18 = vadd.f32 %v1018_v6, %v1017_v59 }
 0x119   :  { %v1201_v56 = vpop.f32.mrb[2].mxu1 }
 0x11a   :  { %v1202_v62 = vpop.f32.mrb[3].mxu1 }
 0x11b   :  { %v1203_v63 = vadd.f32 %v1202_v62, %v1201_v56 }
 0x11d   :  { %v402_v36 = vadd.f32 %v1203_v63, %v2362_v21 }
 0x127   :  { %v1236_v20 = vpop.f32.mrb[4].mxu0 }
 0x128   :  { %v1237_v32 = vpop.f32.mrb[5].mxu0 }
 0x129   :  { %v541_v35 = vpop.f32.mrb[4].mxu1  ;;  %v1238_v37 = vadd.f32 %v1237_v32, %v1236_v20 }
 0x12a   :  { %v1443_v40 = vpop.f32.mrb[5].mxu1 }
 0x12b   :  { %v472_v42 = vadd.f32 %v1238_v37, %v402_v36 }
 0x12d   :  { %v2373_v45 = vadd.f32 %v541_v35, %v472_v42 }
 0x12f   :  { %v988_v47 = vsel %vm113_vm1, %v2373_v45, 0.0  ;;  %v1020_v49 = vmul.f32 %v2373_v45, %v2373_v45 }
 0x130   :  { %v989_v53 = vrot.slane %v988_v47, 4 }
 0x131   :  { %v1021_v54 = vsel %vm113_vm1, %v1020_v49, 0.0 }
 0x132   :  { %v990_v57 = vadd.f32 %v989_v53, %v988_v47  ;;  %v1022_v58 = vrot.slane %v1021_v54, 4 }
 0x134   :  { %v991_v60 = vrot.slane %v990_v57, 2  ;;  %v1023_v61 = vadd.f32 %v1022_v58, %v1021_v54 }
 0x136   :  { %v992_v2 = vadd.f32 %v991_v60, %v990_v57  ;;  %v1024_v4 = vrot.slane %v1023_v61, 2 }
 0x138   :  { %v993_v9 = vrot.slane %v992_v2, 1  ;;  %v1025_v10 = vadd.f32 %v1024_v4, %v1023_v61 }
 0x13a   :  { %v994_v13 = vadd.f32 %v993_v9, %v992_v2  ;;  %v1026_v15 = vrot.slane %v1025_v10, 1 }
 0x13c   :  { %v995_v22 = vadd.f32 %v994_v13, %v987_v11  ;;  %v1027_v23 = vadd.f32 %v1026_v15, %v1025_v10 }
 0x13e   :  { %v1028_v24 = vadd.f32 %v1027_v23, %v1019_v18 }
 0x147   :  { %v1280_v28 = vpop.f32.mrb[6].mxu0 }
 0x148   :  { %v1281_v29 = vpop.f32.mrb[7].mxu0 }
 0x149   :  { %v1315_v30 = vpop.f32.mrb[6].mxu1  ;;  %v1282_v31 = vadd.f32 %v1281_v29, %v1280_v28  ;;  %v1054_v29 = vld [vmem:[%s2410_s6] sm:$0x1] }
 0x14a   :  { %v1316_v3 = vpop.f32.mrb[7].mxu1 }
 0x14b   :  { %v1317_v7 = vadd.f32 %v1316_v3, %v1315_v30  ;;  %v620_v8 = vadd.f32 %v1282_v31, %v2362_v21 }
 0x14d   :  { %v690_v12 = vadd.f32 %v1317_v7, %v620_v8  ;;  %v1056_v7 = vld [vmem:[%s2411_s7] sm:$0x1] }
 0x157   :  { %v759_v16 = vpop.f32.mrb[8].mxu0 }
 0x158   :  { %v2381_v17 = vadd.f32 %v759_v16, %v690_v12  ;;  %v1462_v25 = vpop.f32.mrb[9].mxu0 }
 0x15a   :  { %v996_v26 = vsel %vm113_vm1, %v2381_v17, 0.0  ;;  %v1029_v33 = vmul.f32 %v2381_v17, %v2381_v17 }
 0x15b   :  { %v997_v34 = vrot.slane %v996_v26, 4 }
 0x15c   :  { %v1030_v38 = vsel %vm113_vm1, %v1029_v33, 0.0 }
 0x15d   :  { %v998_v39 = vadd.f32 %v997_v34, %v996_v26  ;;  %v1031_v43 = vrot.slane %v1030_v38, 4 }
 0x15f   :  { %v999_v48 = vrot.slane %v998_v39, 2  ;;  %v1032_v52 = vadd.f32 %v1031_v43, %v1030_v38 }
 0x161   :  { %v1000_v56 = vadd.f32 %v999_v48, %v998_v39  ;;  %v1033_v62 = vrot.slane %v1032_v52, 2 }
 0x163   :  { %v1001_v63 = vrot.slane %v1000_v56, 1  ;;  %v1034_v0 = vadd.f32 %v1033_v62, %v1032_v52 }
 0x165   :  { %v1002_v5 = vadd.f32 %v1001_v63, %v1000_v56  ;;  %v1035_v14 = vrot.slane %v1034_v0, 1 }
 0x167   :  { %v1003_v19 = vadd.f32 %v1002_v5, %v995_v22  ;;  %v1036_v20 = vadd.f32 %v1035_v14, %v1034_v0 }
 0x169   :  { %v1359_v27 = vpop.f32.mrb[8].mxu1  ;;  %v1037_v32 = vadd.f32 %v1036_v20, %v1028_v24  ;;  %v1060_v24 = vlaneseq }
 0x16a   :  { %v1360_v35 = vpop.f32.mrb[9].mxu1 }
 0x16b   :  { %v1361_v36 = vadd.f32 %v1360_v35, %v1359_v27  ;;  %v1061_v28 = vshrl.u32 %v1060_v24, 7 }
 0x16d   :  { %v838_v42 = vadd.f32 %v1361_v36, %v2362_v21  ;;  %v1062_v30 = vsub.s32 0, %v1061_v28 }
 0x177   :  { %v1394_v37 = vpop.f32.mrb[10].mxu0 }
 0x178   :  { %v1395_v40 = vpop.f32.mrb[11].mxu0 }
 0x179   :  { %v977_v41 = vpop.f32.mrb[10].mxu1  ;;  %v1396_v44 = vadd.f32 %v1395_v40, %v1394_v37 }
 0x17a   :  { %v1481_v46 = vpop.f32.mrb[11].mxu1 }
 0x17b   :  { %v908_v47 = vadd.f32 %v1396_v44, %v838_v42 }
 0x17d   :  { %v978_v49 = vadd.f32 %v977_v41, %v908_v47 }
 0x17f   :  { %v1004_v50 = vsel %vm113_vm1, %v978_v49, 0.0  ;;  %v1038_v53 = vmul.f32 %v978_v49, %v978_v49 }
 0x180   :  { %v1005_v54 = vrot.slane %v1004_v50, 4 }
 0x181   :  { %v1039_v55 = vsel %vm113_vm1, %v1038_v53, 0.0 }
 0x182   :  { %v1006_v57 = vadd.f32 %v1005_v54, %v1004_v50  ;;  %v1040_v58 = vrot.slane %v1039_v55, 4 }
 0x184   :  { %v1007_v59 = vrot.slane %v1006_v57, 2  ;;  %v1041_v60 = vadd.f32 %v1040_v58, %v1039_v55 }
 0x186   :  { %v1008_v61 = vadd.f32 %v1007_v59, %v1006_v57  ;;  %v1042_v1 = vrot.slane %v1041_v60, 2 }
 0x188   :  { %v1009_v2 = vrot.slane %v1008_v61, 1  ;;  %v1043_v4 = vadd.f32 %v1042_v1, %v1041_v60 }
 0x18a   :  { %v1010_v6 = vadd.f32 %v1009_v2, %v1008_v61  ;;  %v1044_v21 = vrot.slane %v1043_v4, 1 }
 0x18c   :  { %v1011_v9 = vadd.f32 %v1010_v6, %v1003_v19  ;;  %v1045_v10 = vadd.f32 %v1044_v21, %v1043_v4 }
 0x18e   :  { %v1046_v11 = vadd.f32 %v1045_v10, %v1037_v32  ;;  %v1048_v13 = vmul.f32 0.03125, %v1011_v9 }
 0x190   :  { %v1049_v15 = vmul.f32 0.03125, %v1046_v11  ;;  %v1050_v18 = vmul.f32 %v1048_v13, %v1048_v13 }
 0x192   :  { %v1051_v22 = vsub.f32 %v1049_v15, %v1050_v18 }
 0x194   :  { %v1052_v23 = vadd.f32 1e-05, %v1051_v22 }
 0x196   :  { %1789 = vrsqrt.f32 %v1052_v23 }
 0x1a0   :  { %v1790_v31 = vpop.eup %1789 }
 0x1a1   :  { %v1055_v3 = vmul.f32 %v1790_v31, %v1054_v29 }
 0x1a3   :  { %v1057_v8 = vmul.f32 %v1055_v3, %v1048_v13  ;;  %v1063_v12 = vrot.slane %v1055_v3, %v1062_v30 }
 0x1a5   :  { %v1065_v16 = vmul.f32 %v1063_v12, %v2365_v51  ;;  %v1066_v25 = vmul.f32 %v1063_v12, %v2373_v45  ;;  %v1068_v26 = vmul.f32 %v1063_v12, %v2381_v17  ;;  %v1058_v33 = vsub.f32 %v1056_v7, %v1057_v8 }
 0x1a6   :  { %v1069_v34 = vmul.f32 %v1063_v12, %v978_v49 }
 0x1a7   :  { %v1067_v38 = vmax.f32 %v1065_v16, %v1066_v25  ;;  %v1076_v48 = vrot.slane %v1058_v33, %v1062_v30 }
 0x1a8   :  { %v1070_v39 = vmax.f32 %v1068_v26, %v1069_v34 }
 0x1aa   :  { %v1071_v43 = vmax.f32 %v1067_v38, %v1070_v39 }
 0x1ac   :  { %v1078_v52 = vadd.f32 %v1076_v48, %v1071_v43 }
 0x1ae   :  { %v1079_v56 = vmax.f32 %v1078_v52, 0.0 }
 0x1b0   :  { %1080 = vst.msk [vmem:[%s2412_s8] sm:$0xff] %vm113_vm1, %v1079_v56 }

// kernel: convnet_s_forward.7
= control target key start
LH: loop header
LB: loop body
LE: loop exit
PB: predicated region body
PF: predicated region fallthrough
CT: control target
= control target key end

     0   :  { %v1941_v43 = vmov 1983009808   ;;  %v117_v45 = vlaneseq  ;;  %s2537_s0 = inlined_call_operand.vmem [shape: f32[2,576], index: 0, kind: input, shape index: {}]   ;;  %s2538_s1 = inlined_call_operand.vmem [shape: f32[2,576], index: 1, kind: input, shape index: {}]   ;;  %s2539_s2 = inlined_call_operand.vmem [shape: f32[2,576], index: 2, kind: input, shape index: {}]   ;;  %s2540_s3 = inlined_call_operand.vmem [shape: f32[2,576], index: 3, kind: input, shape index: {}]   ;;  %s2541_s4 = inlined_call_operand.vmem [shape: f32[576,64], index: 4, kind: input, shape index: {}]   ;;  %s2542_s5 = inlined_call_operand.vmem [shape: f32[1,64], index: 5, kind: input, shape index: {}]   ;;  %s2543_s6 = inlined_call_operand.vmem [shape: f32[1,64], index: 6, kind: input, shape index: {}]   ;;  %s2544_s7 = inlined_call_operand.vmem [shape: f32[1,64], index: 7, kind: input, shape index: {}]   ;;  %s2545_s8 = inlined_call_operand.hbm [shape: f32[2,64], index: 8, kind: output, shape index: {}]  }
   0x1   :  { %v46_v0 = vld [vmem:[%s2541_s4 + $0x80] sm:$0xff]  ;;  %v47_v1 = vld [vmem:[%s2541_s4 + $0x88] sm:$0xff]  ;;  %v48_v11 = vld [vmem:[%s2541_s4 + $0x90] sm:$0xff]  ;;  %v115_v44 = vunpack.c.l.s4 %v1941_v43 }
   0x2   :  { %v30_v2 = vld [vmem:[%s2541_s4] sm:$0xff]  ;;  %v2000_v3 = vpack.c.bf16 %v47_v1, %v46_v0  ;;  %v31_v4 = vld [vmem:[%s2541_s4 + $0x8] sm:$0xff]  ;;  %v49_v13 = vld [vmem:[%s2541_s4 + $0x98] sm:$0xff]  ;;  %v2155_v60 = vshrl.u32 %v117_v45, 7 }
   0x3   :  { %v78_v5 = vld [vmem:[%s2541_s4 + $0x180] sm:$0xff]  ;;  %v79_v6 = vld [vmem:[%s2541_s4 + $0x188] sm:$0xff]  ;;  %v2011_v7 = vpack.c.bf16 %v31_v4, %v30_v2  ;;  %v32_v14 = vld [vmem:[%s2541_s4 + $0x10] sm:$0xff]  ;;  %v2038_v16 = vpack.c.bf16 %v49_v13, %v48_v11  ;;  %v116_v59 = vunpack.c.0.s8 %v115_v44 }
   0x4   :  { %v2013_v8 = vpack.c.bf16 %v79_v6, %v78_v5  ;;  %v62_v9 = vld [vmem:[%s2541_s4 + $0x100] sm:$0xff]  ;;  %v63_v10 = vld [vmem:[%s2541_s4 + $0x108] sm:$0xff]  ;;  %1603 = vmatprep.subr.bf16.mxu0 %v2000_v3  ;;  %v33_v15 = vld [vmem:[%s2541_s4 + $0x18] sm:$0xff] }
   0x5   :  { %v2025_v12 = vpack.c.bf16 %v63_v10, %v62_v9  ;;  %1605 = vmatpush3.bf16.msra.mxu0 %v2011_v7  ;;  %v2040_v17 = vpack.c.bf16 %v33_v15, %v32_v14  ;;  %v80_v18 = vld [vmem:[%s2541_s4 + $0x190] sm:$0xff]  ;;  %v81_v19 = vld [vmem:[%s2541_s4 + $0x198] sm:$0xff]  ;;  %v50_v23 = vld [vmem:[%s2541_s4 + $0xa0] sm:$0xff]  ;;  %v2197_v14 = vsub.s32 %v116_v59, %v2155_v60 }
   0x6   :  { %1635 = vmatprep.subr.bf16.mxu1 %v2013_v8  ;;  %v64_v20 = vld [vmem:[%s2541_s4 + $0x110] sm:$0xff]  ;;  %v2052_v21 = vpack.c.bf16 %v81_v19, %v80_v18  ;;  %v65_v22 = vld [vmem:[%s2541_s4 + $0x118] sm:$0xff]  ;;  %v51_v24 = vld [vmem:[%s2541_s4 + $0xa8] sm:$0xff]  ;;  %1607 = vmatprep.subr.bf16.mxu0 %v2038_v16 }
   0x7   :  { %1637 = vmatpush3.bf16.msra.mxu1 %v2025_v12  ;;  %v2064_v25 = vpack.c.bf16 %v65_v22, %v64_v20  ;;  %v2066_v26 = vpack.c.bf16 %v51_v24, %v50_v23  ;;  %v34_v27 = vld [vmem:[%s2541_s4 + $0x20] sm:$0xff]  ;;  %v35_v28 = vld [vmem:[%s2541_s4 + $0x28] sm:$0xff]  ;;  %v52_v35 = vld [vmem:[%s2541_s4 + $0xb0] sm:$0xff] }
   0x8   :  { %v82_v29 = vld [vmem:[%s2541_s4 + $0x1a0] sm:$0xff]  ;;  %1639 = vmatprep.subr.bf16.mxu1 %v2052_v21  ;;  %v83_v30 = vld [vmem:[%s2541_s4 + $0x1a8] sm:$0xff]  ;;  %v2088_v33 = vpack.c.bf16 %v35_v28, %v34_v27  ;;  %v53_v36 = vld [vmem:[%s2541_s4 + $0xb8] sm:$0xff] }
   0x9   :  { %v66_v31 = vld [vmem:[%s2541_s4 + $0x120] sm:$0xff]  ;;  %v67_v32 = vld [vmem:[%s2541_s4 + $0x128] sm:$0xff]  ;;  %1609 = vmatpush3.bf16.msra.mxu0 %v2040_v17  ;;  %v2090_v34 = vpack.c.bf16 %v83_v30, %v82_v29  ;;  %v36_v37 = vld [vmem:[%s2541_s4 + $0x30] sm:$0xff]  ;;  %v2105_v39 = vpack.c.bf16 %v53_v36, %v52_v35 }
   0xa   :  { %1611 = vmatprep.subr.bf16.mxu0 %v2066_v26  ;;  %v2103_v38 = vpack.c.bf16 %v67_v32, %v66_v31  ;;  %v37_v40 = vld [vmem:[%s2541_s4 + $0x38] sm:$0xff]  ;;  %v84_v41 = vld [vmem:[%s2541_s4 + $0x1b0] sm:$0xff]  ;;  %v54_v49 = vld [vmem:[%s2541_s4 + $0xc0] sm:$0xff] }
   0xb   :  { %1641 = vmatpush3.bf16.msra.mxu1 %v2064_v25  ;;  %v85_v42 = vld [vmem:[%s2541_s4 + $0x1b8] sm:$0xff]  ;;  %v68_v47 = vld [vmem:[%s2541_s4 + $0x130] sm:$0xff]  ;;  %v55_v50 = vld [vmem:[%s2541_s4 + $0xc8] sm:$0xff]  ;;  %v2132_v51 = vpack.c.bf16 %v37_v40, %v36_v37 }
   0xc   :  { %1643 = vmatprep.subr.bf16.mxu1 %v2090_v34  ;;  %v2117_v46 = vpack.c.bf16 %v85_v42, %v84_v41  ;;  %v69_v48 = vld [vmem:[%s2541_s4 + $0x138] sm:$0xff]  ;;  %v86_v52 = vld [vmem:[%s2541_s4 + $0x1c0] sm:$0xff]  ;;  %v87_v53 = vld [vmem:[%s2541_s4 + $0x1c8] sm:$0xff]  ;;  %v2144_v55 = vpack.c.bf16 %v55_v50, %v54_v49 }
   0xd   :  { %1613 = vmatpush3.bf16.msra.mxu0 %v2088_v33  ;;  %v2142_v54 = vpack.c.bf16 %v69_v48, %v68_v47  ;;  %v38_v56 = vld [vmem:[%s2541_s4 + $0x40] sm:$0xff]  ;;  %v39_v57 = vld [vmem:[%s2541_s4 + $0x48] sm:$0xff]  ;;  %v2158_v61 = vpack.c.bf16 %v87_v53, %v86_v52  ;;  %v56_v63 = vld [vmem:[%s2541_s4 + $0xd0] sm:$0xff] }
   0xe   :  { %1615 = vmatprep.subr.bf16.mxu0 %v2105_v39  ;;  %v70_v58 = vld [vmem:[%s2541_s4 + $0x140] sm:$0xff]  ;;  %v71_v62 = vld [vmem:[%s2541_s4 + $0x148] sm:$0xff]  ;;  %v57_v0 = vld [vmem:[%s2541_s4 + $0xd8] sm:$0xff]  ;;  %v2176_v4 = vpack.c.bf16 %v39_v57, %v38_v56 }
   0xf   :  { %1645 = vmatpush3.bf16.msra.mxu1 %v2103_v38  ;;  %v88_v1 = vld [vmem:[%s2541_s4 + $0x1d0] sm:$0xff]  ;;  %v89_v2 = vld [vmem:[%s2541_s4 + $0x1d8] sm:$0xff]  ;;  %v2183_v6 = vpack.c.bf16 %v71_v62, %v70_v58  ;;  %v2185_v9 = vpack.c.bf16 %v57_v0, %v56_v63  ;;  %v58_v18 = vld [vmem:[%s2541_s4 + $0xe0] sm:$0xff] }
  0x10   :  { %1647 = vmatprep.subr.bf16.mxu1 %v2117_v46  ;;  %v40_v5 = vld [vmem:[%s2541_s4 + $0x50] sm:$0xff]  ;;  %v41_v10 = vld [vmem:[%s2541_s4 + $0x58] sm:$0xff]  ;;  %v2200_v15 = vpack.c.bf16 %v89_v2, %v88_v1  ;;  %v59_v19 = vld [vmem:[%s2541_s4 + $0xe8] sm:$0xff] }
  0x11   :  { %1617 = vmatpush3.bf16.msra.mxu0 %v2132_v51  ;;  %v72_v11 = vld [vmem:[%s2541_s4 + $0x150] sm:$0xff]  ;;  %v73_v13 = vld [vmem:[%s2541_s4 + $0x158] sm:$0xff]  ;;  %v90_v20 = vld [vmem:[%s2541_s4 + $0x1e0] sm:$0xff]  ;;  %v2215_v23 = vpack.c.bf16 %v41_v10, %v40_v5  ;;  %v2224_v28 = vpack.c.bf16 %v59_v19, %v58_v18 }
  0x12   :  { %1619 = vmatprep.subr.bf16.mxu0 %v2144_v55  ;;  %v91_v22 = vld [vmem:[%s2541_s4 + $0x1e8] sm:$0xff]  ;;  %v2217_v24 = vpack.c.bf16 %v73_v13, %v72_v11  ;;  %v103_v27 = vld [vmem:[%s2537_s0] sm:$0xff]  ;;  %v60_v40 = vld [vmem:[%s2541_s4 + $0xf0] sm:$0xff] }
  0x13   :  { %1649 = vmatpush3.bf16.msra.mxu1 %v2142_v54  ;;  %v42_v29 = vld [vmem:[%s2541_s4 + $0x60] sm:$0xff]  ;;  %v43_v30 = vld [vmem:[%s2541_s4 + $0x68] sm:$0xff]  ;;  %v120_v32 = vrot.slane %v103_v27, %v2197_v14  ;;  %v113_v35 = vcombine.high %v103_v27, %v103_v27  ;;  %v2237_v36 = vpack.c.bf16 %v91_v22, %v90_v20  ;;  %v61_v41 = vld [vmem:[%s2541_s4 + $0xf8] sm:$0xff] }
  0x14   :  { %1651 = vmatprep.subr.bf16.mxu1 %v2158_v61  ;;  %v74_v31 = vld [vmem:[%s2541_s4 + $0x160] sm:$0xff]  ;;  %v75_v37 = vld [vmem:[%s2541_s4 + $0x168] sm:$0xff]  ;;  %v92_v42 = vld [vmem:[%s2541_s4 + $0x1f0] sm:$0xff]  ;;  %v2256_v47 = vpack.c.bf16 %v43_v30, %v42_v29  ;;  %v2262_v49 = vpack.c.bf16 %v61_v41, %v60_v40 }
  0x15   :  { %1621 = vmatpush3.bf16.msra.mxu0 %v2176_v4  ;;  %v93_v43 = vld [vmem:[%s2541_s4 + $0x1f8] sm:$0xff]  ;;  %v128_v44 = vcombine.high %v120_v32, %v120_v32  ;;  %v127_v45 = vrot.slane %v113_v35, %v2197_v14  ;;  %v2260_v48 = vpack.c.bf16 %v75_v37, %v74_v31  ;;  %v44_v50 = vld [vmem:[%s2541_s4 + $0x70] sm:$0xff] }
  0x16   :  { %1623 = vmatprep.subr.bf16.mxu0 %v2185_v9  ;;  %v45_v52 = vld [vmem:[%s2541_s4 + $0x78] sm:$0xff]  ;;  %v2271_v56 = vpack.c.bf16 %v93_v43, %v92_v42  ;;  %v76_v57 = vld [vmem:[%s2541_s4 + $0x170] sm:$0xff] }
  0x17   :  { %1653 = vmatpush3.bf16.msra.mxu1 %v2183_v6  ;;  %v129_v53 = vcombine.high %v127_v45, %v127_v45  ;;  %208 = vmatprep.mubr.f32.mxu0 %v128_v44  ;;  %v77_v58 = vld [vmem:[%s2541_s4 + $0x178] sm:$0xff] }
  0x18   :  { %1655 = vmatprep.subr.bf16.mxu1 %v2200_v15 }
  0x19   :  { %1625 = vmatpush3.bf16.msra.mxu0 %v2215_v23 }
  0x1a   :  { %1627 = vmatprep.subr.bf16.mxu0 %v2224_v28 }
  0x1b   :  { %1657 = vmatpush3.bf16.msra.mxu1 %v2217_v24 }
  0x1c   :  { %1659 = vmatprep.subr.bf16.mxu1 %v2237_v36 }
  0x1d   :  { %13 = vsyncpa [#allocation3], 0  ;;  %278 = vmatprep.mubr.f32.mxu1 %v129_v53  ;;  %1629 = vmatpush3.bf16.msra.mxu0 %v2256_v47  ;;  %v2280_v59 = vpack.c.bf16 %v45_v52, %v44_v50  ;;  %v354_v62 = vld [vmem:[%s2538_s1] sm:$0xff]  ;;  %v2287_v63 = vpack.c.bf16 %v77_v58, %v76_v57  ;;  %v95_v1 = vld [vmem:[%s2541_s4 + $0x208] sm:$0xff]  ;;  %v1942_v10 = vmov 0.0|0.0   ;;  %vm1943_vm0 = vmmov 0  }
  0x1e   :  { %1631 = vmatprep.subr.bf16.mxu0 %v2262_v49  ;;  %v94_v0 = vld [vmem:[%s2541_s4 + $0x200] sm:$0xff]  ;;  %v365_v2 = vrot.slane %v354_v62, %v2197_v14  ;;  %v96_v11 = vld [vmem:[%s2541_s4 + $0x210] sm:$0xff]  ;;  %v97_v13 = vld [vmem:[%s2541_s4 + $0x218] sm:$0xff]  ;;  %v1944_v27 = vmov 0.0   ;;  %v358_v30 = vcombine.high %v354_v62, %v354_v62  ;;  %vm141_vm1 = vcmask 523264  }
  0x1f   :  { %1661 = vmatpush3.bf16.msra.mxu1 %v2260_v48  ;;  %v2298_v5 = vpack.c.bf16 %v95_v1, %v94_v0  ;;  %v2310_v19 = vpack.c.bf16 %v97_v13, %v96_v11  ;;  %v98_v20 = vld [vmem:[%s2541_s4 + $0x220] sm:$0xff]  ;;  %v99_v22 = vld [vmem:[%s2541_s4 + $0x228] sm:$0xff]  ;;  %v100_v31 = vld [vmem:[%s2541_s4 + $0x230] sm:$0xff]  ;;  %vm1086_vm2 = vcmask 517120  }
  0x20   :  { %1663 = vmatprep.subr.bf16.mxu1 %v2271_v56  ;;  %v373_v18 = vcombine.high %v365_v2, %v365_v2  ;;  %v2324_v29 = vpack.c.bf16 %v99_v22, %v98_v20  ;;  %v372_v37 = vrot.slane %v358_v30, %v2197_v14  ;;  %v1202_v40 = vld.sshfl [vmem:[%s2537_s0 + $0x8] sm:$0x3 pattern:$0x76325410]  ;;  %v598_v42 = vld [vmem:[%s2539_s2] sm:$0xff] }
  0x21   :  { %1633 = vmatpush3.bf16.msra.mxu0 %v2280_v59  ;;  %v602_v43 = vcombine.high %v598_v42, %v598_v42  ;;  %v609_v44 = vrot.slane %v598_v42, %v2197_v14  ;;  %v1204_v50 = vld.sshfl [vmem:[%s2538_s1 + $0x8] sm:$0x3 pattern:$0x76325410]  ;;  %v842_v57 = vld [vmem:[%s2540_s3] sm:$0xff] }
  0x22   :  { %1666 = vmatprep.subr.bf16.mxu0 %v1942_v10  ;;  %v374_v41 = vcombine.high %v372_v37, %v372_v37  ;;  %v853_v58 = vrot.slane %v842_v57, %v2197_v14  ;;  %v846_v0 = vcombine.high %v842_v57, %v842_v57 }
  0x23   :  { %1665 = vmatpush3.bf16.msra.mxu1 %v2287_v63  ;;  %v617_v52 = vcombine.high %v609_v44, %v609_v44 }
  0x24   :  { %1679 = vmatprep.subr.bf16.mxu1 %v2000_v3  ;;  %209 = vmatmul.mubr.f32.vlgmr.msra.gmra.mrb[0].mxu0 %v120_v32  ;;  %v101_v32 = vld [vmem:[%s2541_s4 + $0x238] sm:$0xff]  ;;  %v861_v62 = vcombine.high %v853_v58, %v853_v58 }
  0x25   :  { %1668 = vmatpush3.bf16.msra.mxu0 %v2298_v5  ;;  %1542 = vmatprep.mubr.msk.f32.mxu0 %vm1943_vm0, %v1944_v27  ;;  %v2336_v35 = vpack.c.bf16 %v101_v32, %v100_v31 }
  0x26   :  { %279 = vmatmul.mubr.f32.vlgmr.msra.gmra.mrb[0].mxu1 %v127_v45  ;;  %1669 = vmatprep.subr.bf16.mxu0 %v1942_v10  ;;  %v616_v45 = vrot.slane %v602_v43, %v2197_v14 }
  0x27   :  { %1681 = vmatpush3.bf16.msra.mxu1 %v2011_v7  ;;  %452 = vmatprep.mubr.f32.mxu1 %v373_v18 }
  0x28   :  { %1683 = vmatprep.subr.bf16.mxu1 %v2038_v16  ;;  %v618_v53 = vcombine.high %v616_v45, %v616_v45 }
  0x29   :  { %1671 = vmatpush3.bf16.msra.mxu0 %v2310_v19 }
  0x2a   :  { %1672 = vmatprep.subr.bf16.mxu0 %v1942_v10 }
  0x2b   :  { %1685 = vmatpush3.bf16.msra.mxu1 %v2040_v17 }
  0x2c   :  { %1687 = vmatprep.subr.bf16.mxu1 %v2066_v26 }
  0x2d   :  { %1674 = vmatpush3.bf16.msra.mxu0 %v2324_v29 }
  0x2e   :  { %1675 = vmatprep.subr.bf16.mxu0 %v1942_v10 }
  0x2f   :  { %1689 = vmatpush3.bf16.msra.mxu1 %v2088_v33 }
  0x30   :  { %1691 = vmatprep.subr.bf16.mxu1 %v2105_v39 }
  0x31   :  { %1677 = vmatpush3.bf16.msra.mxu0 %v2336_v35 }
  0x32   :  { %1711 = vmatprep.subr.bf16.mxu0 %v2013_v8 }
  0x33   :  { %1693 = vmatpush3.bf16.msra.mxu1 %v2132_v51 }
  0x34   :  { %1695 = vmatprep.subr.bf16.mxu1 %v2144_v55  ;;  %1543 = vmatmul.mubr.msk.f32.vlgmr.msra.gmra.mrb[2].mxu0 %vm141_vm1, %v1202_v40 }
  0x35   :  { %1713 = vmatpush3.bf16.msra.mxu0 %v2025_v12  ;;  %522 = vmatprep.mubr.f32.mxu0 %v374_v41 }
  0x36   :  { %1715 = vmatprep.subr.bf16.mxu0 %v2052_v21 }
  0x37   :  { %1697 = vmatpush3.bf16.msra.mxu1 %v2176_v4 }
  0x38   :  { %1699 = vmatprep.subr.bf16.mxu1 %v2185_v9 }
  0x39   :  { %1717 = vmatpush3.bf16.msra.mxu0 %v2064_v25 }
  0x3a   :  { %1719 = vmatprep.subr.bf16.mxu0 %v2090_v34 }
  0x3b   :  { %1701 = vmatpush3.bf16.msra.mxu1 %v2215_v23 }
  0x3c   :  { %1703 = vmatprep.subr.bf16.mxu1 %v2224_v28 }
  0x3d   :  { %1721 = vmatpush3.bf16.msra.mxu0 %v2103_v38 }
  0x3e   :  { %1723 = vmatprep.subr.bf16.mxu0 %v2117_v46 }
  0x3f   :  { %1705 = vmatpush3.bf16.msra.mxu1 %v2256_v47 }
  0x40   :  { %1707 = vmatprep.subr.bf16.mxu1 %v2262_v49 }
  0x41   :  { %1725 = vmatpush3.bf16.msra.mxu0 %v2142_v54 }
  0x42   :  { %1727 = vmatprep.subr.bf16.mxu0 %v2158_v61 }
  0x43   :  { %1709 = vmatpush3.bf16.msra.mxu1 %v2280_v59 }
  0x44   :  { %1742 = vmatprep.subr.bf16.mxu1 %v1942_v10 }
  0x45   :  { %1729 = vmatpush3.bf16.msra.mxu0 %v2183_v6 }
  0x46   :  { %453 = vmatmul.mubr.f32.vlgmr.msra.gmra.mrb[2].mxu1 %v365_v2  ;;  %1731 = vmatprep.subr.bf16.mxu0 %v2200_v15 }
  0x47   :  { %1744 = vmatpush3.bf16.msra.mxu1 %v2298_v5  ;;  %1561 = vmatprep.mubr.msk.f32.mxu1 %vm1943_vm0, %v1944_v27 }
  0x48   :  { %1745 = vmatprep.subr.bf16.mxu1 %v1942_v10 }
  0x49   :  { %1733 = vmatpush3.bf16.msra.mxu0 %v2217_v24 }
  0x4a   :  { %1735 = vmatprep.subr.bf16.mxu0 %v2237_v36 }
  0x4b   :  { %1747 = vmatpush3.bf16.msra.mxu1 %v2310_v19 }
  0x4c   :  { %1748 = vmatprep.subr.bf16.mxu1 %v1942_v10 }
  0x4d   :  { %1737 = vmatpush3.bf16.msra.mxu0 %v2260_v48 }
  0x4e   :  { %1739 = vmatprep.subr.bf16.mxu0 %v2271_v56 }
  0x4f   :  { %1750 = vmatpush3.bf16.msra.mxu1 %v2324_v29 }
  0x50   :  { %1751 = vmatprep.subr.bf16.mxu1 %v1942_v10 }
  0x51   :  { %1741 = vmatpush3.bf16.msra.mxu0 %v2287_v63 }
  0x52   :  { %1755 = vmatprep.subr.bf16.mxu0 %v2000_v3 }
  0x53   :  { %1753 = vmatpush3.bf16.msra.mxu1 %v2336_v35 }
  0x54   :  { %1787 = vmatprep.subr.bf16.mxu1 %v2013_v8  ;;  %523 = vmatmul.mubr.f32.vlgmr.msra.gmra.mrb[4].mxu0 %v372_v37 }
  0x55   :  { %1757 = vmatpush3.bf16.msra.mxu0 %v2011_v7  ;;  %696 = vmatprep.mubr.f32.mxu0 %v617_v52 }
  0x56   :  { %1562 = vmatmul.mubr.msk.f32.vlgmr.msra.gmra.mrb[4].mxu1 %vm141_vm1, %v1204_v50  ;;  %1759 = vmatprep.subr.bf16.mxu0 %v2038_v16 }
  0x57   :  { %1789 = vmatpush3.bf16.msra.mxu1 %v2025_v12  ;;  %766 = vmatprep.mubr.f32.mxu1 %v618_v53 }
  0x58   :  { %1791 = vmatprep.subr.bf16.mxu1 %v2052_v21 }
  0x59   :  { %1761 = vmatpush3.bf16.msra.mxu0 %v2040_v17 }
  0x5a   :  { %1763 = vmatprep.subr.bf16.mxu0 %v2066_v26 }
  0x5b   :  { %1793 = vmatpush3.bf16.msra.mxu1 %v2064_v25 }
  0x5c   :  { %1795 = vmatprep.subr.bf16.mxu1 %v2090_v34 }
  0x5d   :  { %1765 = vmatpush3.bf16.msra.mxu0 %v2088_v33 }
  0x5e   :  { %1767 = vmatprep.subr.bf16.mxu0 %v2105_v39 }
  0x5f   :  { %1797 = vmatpush3.bf16.msra.mxu1 %v2103_v38 }
  0x60   :  { %1799 = vmatprep.subr.bf16.mxu1 %v2117_v46 }
  0x61   :  { %1769 = vmatpush3.bf16.msra.mxu0 %v2132_v51 }
  0x62   :  { %1771 = vmatprep.subr.bf16.mxu0 %v2144_v55 }
  0x63   :  { %1801 = vmatpush3.bf16.msra.mxu1 %v2142_v54 }
  0x64   :  { %1803 = vmatprep.subr.bf16.mxu1 %v2158_v61 }
  0x65   :  { %1773 = vmatpush3.bf16.msra.mxu0 %v2176_v4 }
  0x66   :  { %1775 = vmatprep.subr.bf16.mxu0 %v2185_v9 }
  0x67   :  { %1805 = vmatpush3.bf16.msra.mxu1 %v2183_v6 }
  0x68   :  { %1807 = vmatprep.subr.bf16.mxu1 %v2200_v15 }
  0x69   :  { %1777 = vmatpush3.bf16.msra.mxu0 %v2215_v23 }
  0x6a   :  { %1779 = vmatprep.subr.bf16.mxu0 %v2224_v28 }
  0x6b   :  { %1809 = vmatpush3.bf16.msra.mxu1 %v2217_v24 }
  0x6c   :  { %1811 = vmatprep.subr.bf16.mxu1 %v2237_v36 }
  0x6d   :  { %1781 = vmatpush3.bf16.msra.mxu0 %v2256_v47 }
  0x6e   :  { %1783 = vmatprep.subr.bf16.mxu0 %v2262_v49 }
  0x6f   :  { %1813 = vmatpush3.bf16.msra.mxu1 %v2260_v48 }
  0x70   :  { %1815 = vmatprep.subr.bf16.mxu1 %v2271_v56 }
  0x71   :  { %1785 = vmatpush3.bf16.msra.mxu0 %v2280_v59 }
  0x72   :  { %1818 = vmatprep.subr.bf16.mxu0 %v1942_v10 }
  0x73   :  { %1817 = vmatpush3.bf16.msra.mxu1 %v2287_v63 }
  0x74   :  { %1831 = vmatprep.subr.bf16.mxu1 %v2000_v3  ;;  %697 = vmatmul.mubr.f32.vlgmr.msra.gmra.mrb[6].mxu0 %v609_v44  ;;  %v860_v3 = vrot.slane %v846_v0, %v2197_v14 }
  0x75   :  { %1820 = vmatpush3.bf16.msra.mxu0 %v2298_v5  ;;  %1580 = vmatprep.mubr.msk.f32.mxu0 %vm1943_vm0, %v1944_v27 }
  0x76   :  { %767 = vmatmul.mubr.f32.vlgmr.msra.gmra.mrb[6].mxu1 %v616_v45  ;;  %1821 = vmatprep.subr.bf16.mxu0 %v1942_v10 }
  0x77   :  { %1833 = vmatpush3.bf16.msra.mxu1 %v2011_v7  ;;  %940 = vmatprep.mubr.f32.mxu1 %v861_v62  ;;  %v1206_v7 = vld.sshfl [vmem:[%s2539_s2 + $0x8] sm:$0x3 pattern:$0x76325410] }
  0x78   :  { %1835 = vmatprep.subr.bf16.mxu1 %v2038_v16  ;;  %v862_v16 = vcombine.high %v860_v3, %v860_v3 }
  0x79   :  { %1823 = vmatpush3.bf16.msra.mxu0 %v2310_v19 }
  0x7a   :  { %1824 = vmatprep.subr.bf16.mxu0 %v1942_v10 }
  0x7b   :  { %1837 = vmatpush3.bf16.msra.mxu1 %v2040_v17  ;;  %v2491_v17 = vld [vmem:[%s2542_s5] ss:$0 sm:$0xff] }
  0x7c   :  { %1839 = vmatprep.subr.bf16.mxu1 %v2066_v26 }
  0x7d   :  { %1826 = vmatpush3.bf16.msra.mxu0 %v2324_v29 }
  0x7e   :  { %1827 = vmatprep.subr.bf16.mxu0 %v1942_v10 }
  0x7f   :  { %1841 = vmatpush3.bf16.msra.mxu1 %v2088_v33 }
  0x80   :  { %1843 = vmatprep.subr.bf16.mxu1 %v2105_v39 }
  0x81   :  { %1829 = vmatpush3.bf16.msra.mxu0 %v2336_v35 }
  0x82   :  { %1863 = vmatprep.subr.bf16.mxu0 %v2013_v8  ;;  %v1208_v8 = vld.sshfl [vmem:[%s2540_s3 + $0x8] sm:$0x3 pattern:$0x76325410] }
  0x83   :  { %1845 = vmatpush3.bf16.msra.mxu1 %v2132_v51 }
  0x84   :  { %1847 = vmatprep.subr.bf16.mxu1 %v2144_v55  ;;  %1581 = vmatmul.mubr.msk.f32.vlgmr.msra.gmra.mrb[8].mxu0 %vm141_vm1, %v1206_v7 }
  0x85   :  { %1865 = vmatpush3.bf16.msra.mxu0 %v2025_v12  ;;  %1010 = vmatprep.mubr.f32.mxu0 %v862_v16 }
  0x86   :  { %1867 = vmatprep.subr.bf16.mxu0 %v2052_v21 }
  0x87   :  { %1849 = vmatpush3.bf16.msra.mxu1 %v2176_v4 }
  0x88   :  { %1851 = vmatprep.subr.bf16.mxu1 %v2185_v9 }
  0x89   :  { %1869 = vmatpush3.bf16.msra.mxu0 %v2064_v25 }
  0x8a   :  { %1871 = vmatprep.subr.bf16.mxu0 %v2090_v34 }
  0x8b   :  { %1853 = vmatpush3.bf16.msra.mxu1 %v2215_v23 }
  0x8c   :  { %1855 = vmatprep.subr.bf16.mxu1 %v2224_v28 }
  0x8d   :  { %1873 = vmatpush3.bf16.msra.mxu0 %v2103_v38 }
  0x8e   :  { %1875 = vmatprep.subr.bf16.mxu0 %v2117_v46 }
  0x8f   :  { %1857 = vmatpush3.bf16.msra.mxu1 %v2256_v47 }
  0x90   :  { %1859 = vmatprep.subr.bf16.mxu1 %v2262_v49 }
  0x91   :  { %1877 = vmatpush3.bf16.msra.mxu0 %v2142_v54 }
  0x92   :  { %1879 = vmatprep.subr.bf16.mxu0 %v2158_v61 }
  0x93   :  { %1861 = vmatpush3.bf16.msra.mxu1 %v2280_v59 }
  0x94   :  { %1894 = vmatprep.subr.bf16.mxu1 %v1942_v10 }
  0x95   :  { %1881 = vmatpush3.bf16.msra.mxu0 %v2183_v6 }
  0x96   :  { %941 = vmatmul.mubr.f32.vlgmr.msra.gmra.mrb[8].mxu1 %v853_v58  ;;  %1883 = vmatprep.subr.bf16.mxu0 %v2200_v15 }
  0x97   :  { %1896 = vmatpush3.bf16.msra.mxu1 %v2298_v5  ;;  %1599 = vmatprep.mubr.msk.f32.mxu1 %vm1943_vm0, %v1944_v27 }
  0x98   :  { %1897 = vmatprep.subr.bf16.mxu1 %v1942_v10 }
  0x99   :  { %1885 = vmatpush3.bf16.msra.mxu0 %v2217_v24 }
  0x9a   :  { %1887 = vmatprep.subr.bf16.mxu0 %v2237_v36 }
  0x9b   :  { %1899 = vmatpush3.bf16.msra.mxu1 %v2310_v19 }
  0x9c   :  { %1900 = vmatprep.subr.bf16.mxu1 %v1942_v10 }
  0x9d   :  { %1889 = vmatpush3.bf16.msra.mxu0 %v2260_v48 }
  0x9e   :  { %1891 = vmatprep.subr.bf16.mxu0 %v2271_v56 }
  0x9f   :  { %1902 = vmatpush3.bf16.msra.mxu1 %v2324_v29 }
  0xa0   :  { %1903 = vmatprep.subr.bf16.mxu1 %v1942_v10 }
  0xa1   :  { %1893 = vmatpush3.bf16.msra.mxu0 %v2287_v63 }
  0xa3   :  { %1905 = vmatpush3.bf16.msra.mxu1 %v2336_v35 }
  0xa4   :  { %1011 = vmatmul.mubr.f32.vlgmr.msra.gmra.mrb[10].mxu0 %v860_v3 }
  0xa6   :  { %1600 = vmatmul.mubr.msk.f32.vlgmr.msra.gmra.mrb[10].mxu1 %vm141_vm1, %v1208_v8 }
  0xf7   :  { %v1242_v12 = vpop.f32.mrb[0].mxu0 }
  0xf8   :  { %v1243_v21 = vpop.f32.mrb[1].mxu0 }
  0xf9   :  { %v1277_v25 = vpop.f32.mrb[0].mxu1  ;;  %v1244_v26 = vadd.f32 %v1243_v21, %v1242_v12 }
  0xfa   :  { %v1278_v33 = vpop.f32.mrb[1].mxu1 }
  0xfb   :  { %v1279_v34 = vadd.f32 %v1278_v33, %v1277_v25  ;;  %v211_v38 = vadd.f32 %v1244_v26, %v2491_v17 }
  0xfd   :  { %v281_v39 = vadd.f32 %v1279_v34, %v211_v38 }
 0x107   :  { %v350_v46 = vpop.f32.mrb[2].mxu0 }
 0x108   :  { %v2494_v51 = vadd.f32 %v350_v46, %v281_v39  ;;  %v1544_v54 = vpop.f32.mrb[3].mxu0 }
 0x10a   :  { %v1118_v6 = vmul.f32 %v2494_v51, %v2494_v51  ;;  %v1087_v9 = vsel %vm1086_vm2, %v2494_v51, 0.0 }
 0x10b   :  { %v1088_v15 = vrot.slane %v1087_v9, 4 }
 0x10c   :  { %v1119_v14 = vsel %vm1086_vm2, %v1118_v6, 0.0 }
 0x10d   :  { %v1120_v24 = vrot.slane %v1119_v14, 4  ;;  %v1089_v56 = vadd.f32 %v1088_v15, %v1087_v9 }
 0x10f   :  { %v1121_v63 = vadd.f32 %v1120_v24, %v1119_v14  ;;  %v1090_v2 = vrot.slane %v1089_v56, 2 }
 0x111   :  { %v1122_v11 = vrot.slane %v1121_v63, 2  ;;  %v1091_v19 = vadd.f32 %v1090_v2, %v1089_v56 }
 0x113   :  { %v1123_v27 = vadd.f32 %v1122_v11, %v1121_v63  ;;  %v1092_v31 = vrot.slane %v1091_v19, 1 }
 0x115   :  { %v1124_v37 = vrot.slane %v1123_v27, 1  ;;  %v1093_v42 = vadd.f32 %v1092_v31, %v1091_v19 }
 0x117   :  { %v1125_v45 = vadd.f32 %v1124_v37, %v1123_v27 }
 0x119   :  { %v1321_v55 = vpop.f32.mrb[2].mxu1 }
 0x11a   :  { %v1322_v61 = vpop.f32.mrb[3].mxu1 }
 0x11b   :  { %v1323_v4 = vadd.f32 %v1322_v61, %v1321_v55 }
 0x11d   :  { %v455_v47 = vadd.f32 %v1323_v4, %v2491_v17 }
 0x127   :  { %v1356_v23 = vpop.f32.mrb[4].mxu0 }
 0x128   :  { %v1357_v28 = vpop.f32.mrb[5].mxu0 }
 0x129   :  { %v594_v36 = vpop.f32.mrb[4].mxu1  ;;  %v1358_v48 = vadd.f32 %v1357_v28, %v1356_v23 }
 0x12a   :  { %v1563_v49 = vpop.f32.mrb[5].mxu1 }
 0x12b   :  { %v525_v59 = vadd.f32 %v1358_v48, %v455_v47 }
 0x12d   :  { %v2502_v1 = vadd.f32 %v594_v36, %v525_v59 }
 0x12f   :  { %v1094_v5 = vsel %vm1086_vm2, %v2502_v1, 0.0  ;;  %v1126_v10 = vmul.f32 %v2502_v1, %v2502_v1 }
 0x130   :  { %v1095_v13 = vrot.slane %v1094_v5, 4 }
 0x131   :  { %v1127_v18 = vsel %vm1086_vm2, %v1126_v10, 0.0 }
 0x132   :  { %v1096_v20 = vadd.f32 %v1095_v13, %v1094_v5  ;;  %v1128_v22 = vrot.slane %v1127_v18, 4 }
 0x134   :  { %v1097_v29 = vrot.slane %v1096_v20, 2  ;;  %v1129_v30 = vadd.f32 %v1128_v22, %v1127_v18 }
 0x136   :  { %v1098_v32 = vadd.f32 %v1097_v29, %v1096_v20  ;;  %v1130_v35 = vrot.slane %v1129_v30, 2 }
 0x138   :  { %v1099_v40 = vrot.slane %v1098_v32, 1  ;;  %v1131_v41 = vadd.f32 %v1130_v35, %v1129_v30 }
 0x13a   :  { %v1100_v43 = vadd.f32 %v1099_v40, %v1098_v32  ;;  %v1132_v44 = vrot.slane %v1131_v41, 1 }
 0x13c   :  { %v1101_v50 = vadd.f32 %v1100_v43, %v1093_v42  ;;  %v1133_v52 = vadd.f32 %v1132_v44, %v1131_v41 }
 0x13e   :  { %v1134_v53 = vadd.f32 %v1133_v52, %v1125_v45 }
 0x147   :  { %v1400_v57 = vpop.f32.mrb[6].mxu0 }
 0x148   :  { %v1401_v58 = vpop.f32.mrb[7].mxu0 }
 0x149   :  { %v1435_v62 = vpop.f32.mrb[6].mxu1  ;;  %v1402_v0 = vadd.f32 %v1401_v58, %v1400_v57  ;;  %v1160_v57 = vld [vmem:[%s2543_s6] sm:$0x1]  ;;  %v1168_v58 = vsub.s32 0, %v2155_v60  ;;  %s1945_s6 = smov [#allocation2]  }
 0x14a   :  { %v1436_v3 = vpop.f32.mrb[7].mxu1  ;;  %s1193_s11 = sshll.u32 %s1945_s6, 4  ;;  %s1194_s11 = int_to_ptr.vmem [resolvable:$true] %s1193_s11 }
 0x14b   :  { %v1437_v7 = vadd.f32 %v1436_v3, %v1435_v62  ;;  %v699_v16 = vadd.f32 %v1402_v0, %v2491_v17  ;;  %p1922_p1 = scmp.lt.s32.totalorder %s1194_s11, %s1194_s11 }
 0x14d   :  { %v769_v8 = vadd.f32 %v1437_v7, %v699_v16  ;;  %v1162_v7 = vld [vmem:[%s2544_s7] sm:$0x1]  ;;  %s1917_s7 = scalar_lea.vmem %s1194_s11, 32 }
 0x14e   :  { %p1918_p0 = scmp.ne.s32.totalorder %s1194_s11, %s1917_s7  ;;  %p1923_p2 = scmp.lt.s32.totalorder %s1917_s7, %s1917_s7 }
 0x150   :  { %p1924_p3 = por %p1923_p2, %p1922_p1 }
 0x152   :  { %p1925_p4 = pnand %p1924_p3, %p1918_p0 }
 0x157   :  { %v838_v12 = vpop.f32.mrb[8].mxu0 }
 0x158   :  { %v839_v21 = vadd.f32 %v838_v12, %v769_v8  ;;  %v1582_v25 = vpop.f32.mrb[9].mxu0 }
 0x15a   :  { %v1102_v26 = vsel %vm1086_vm2, %v839_v21, 0.0  ;;  %v1135_v33 = vmul.f32 %v839_v21, %v839_v21 }
 0x15b   :  { %v1103_v34 = vrot.slane %v1102_v26, 4 }
 0x15c   :  { %v1136_v38 = vsel %vm1086_vm2, %v1135_v33, 0.0 }
 0x15d   :  { %v1104_v39 = vadd.f32 %v1103_v34, %v1102_v26  ;;  %v1137_v46 = vrot.slane %v1136_v38, 4 }
 0x15f   :  { %v1105_v54 = vrot.slane %v1104_v39, 2  ;;  %v1138_v55 = vadd.f32 %v1137_v46, %v1136_v38 }
 0x161   :  { %v1106_v61 = vadd.f32 %v1105_v54, %v1104_v39  ;;  %v1139_v4 = vrot.slane %v1138_v55, 2 }
 0x163   :  { %v1107_v6 = vrot.slane %v1106_v61, 1  ;;  %v1140_v9 = vadd.f32 %v1139_v4, %v1138_v55 }
 0x165   :  { %v1108_v14 = vadd.f32 %v1107_v6, %v1106_v61  ;;  %v1141_v15 = vrot.slane %v1140_v9, 1 }
 0x167   :  { %v1109_v23 = vadd.f32 %v1108_v14, %v1101_v50  ;;  %v1142_v24 = vadd.f32 %v1141_v15, %v1140_v9 }
 0x169   :  { %v1479_v28 = vpop.f32.mrb[8].mxu1  ;;  %v1143_v36 = vadd.f32 %v1142_v24, %v1134_v53 }
 0x16a   :  { %v1480_v47 = vpop.f32.mrb[9].mxu1 }
 0x16b   :  { %v1481_v48 = vadd.f32 %v1480_v47, %v1479_v28 }
 0x16d   :  { %v943_v63 = vadd.f32 %v1481_v48, %v2491_v17 }
 0x177   :  { %v1514_v49 = vpop.f32.mrb[10].mxu0 }
 0x178   :  { %v1515_v56 = vpop.f32.mrb[11].mxu0 }
 0x179   :  { %v1082_v59 = vpop.f32.mrb[10].mxu1  ;;  %v1516_v2 = vadd.f32 %v1515_v56, %v1514_v49 }
 0x17a   :  { %v1601_v5 = vpop.f32.mrb[11].mxu1 }
 0x17b   :  { %v1013_v10 = vadd.f32 %v1516_v2, %v943_v63 }
 0x17d   :  { %v1083_v11 = vadd.f32 %v1082_v59, %v1013_v10 }
 0x17f   :  { %v1110_v13 = vsel %vm1086_vm2, %v1083_v11, 0.0  ;;  %v1144_v18 = vmul.f32 %v1083_v11, %v1083_v11 }
 0x180   :  { %v1111_v19 = vrot.slane %v1110_v13, 4 }
 0x181   :  { %v1145_v20 = vsel %vm1086_vm2, %v1144_v18, 0.0 }
 0x182   :  { %v1112_v22 = vadd.f32 %v1111_v19, %v1110_v13  ;;  %v1146_v27 = vrot.slane %v1145_v20, 4 }
 0x184   :  { %v1113_v29 = vrot.slane %v1112_v22, 2  ;;  %v1147_v30 = vadd.f32 %v1146_v27, %v1145_v20 }
 0x186   :  { %v1114_v31 = vadd.f32 %v1113_v29, %v1112_v22  ;;  %v1148_v32 = vrot.slane %v1147_v30, 2 }
 0x188   :  { %v1115_v35 = vrot.slane %v1114_v31, 1  ;;  %v1149_v37 = vadd.f32 %v1148_v32, %v1147_v30 }
 0x18a   :  { %v1116_v40 = vadd.f32 %v1115_v35, %v1114_v31  ;;  %v1150_v17 = vrot.slane %v1149_v37, 1 }
 0x18c   :  { %v1117_v41 = vadd.f32 %v1116_v40, %v1109_v23  ;;  %v1151_v42 = vadd.f32 %v1150_v17, %v1149_v37 }
 0x18e   :  { %v1152_v43 = vadd.f32 %v1151_v42, %v1143_v36  ;;  %v1154_v44 = vmul.f32 0.125, %v1117_v41 }
 0x190   :  { %v1155_v45 = vmul.f32 0.125, %v1152_v43  ;;  %v1156_v50 = vmul.f32 %v1154_v44, %v1154_v44 }
 0x192   :  { %v1157_v52 = vsub.f32 %v1155_v45, %v1156_v50 }
 0x194   :  { %v1158_v53 = vadd.f32 1e-05, %v1157_v52 }
 0x196   :  { %1915 = vrsqrt.f32 %v1158_v53 }
 0x1a0   :  { %v1916_v62 = vpop.eup %1915 }
 0x1a1   :  { %v1161_v0 = vmul.f32 %v1916_v62, %v1160_v57 }
 0x1a3   :  { %v1169_v3 = vrot.slane %v1161_v0, %v1168_v58  ;;  %v1163_v16 = vmul.f32 %v1161_v0, %v1154_v44 }
 0x1a5   :  { %v1174_v8 = vmul.f32 %v1169_v3, %v839_v21  ;;  %v1175_v12 = vmul.f32 %v1169_v3, %v1083_v11  ;;  %v1171_v25 = vmul.f32 %v1169_v3, %v2494_v51  ;;  %v1164_v26 = vsub.f32 %v1162_v7, %v1163_v16 }
 0x1a6   :  { %v1172_v33 = vmul.f32 %v1169_v3, %v2502_v1 }
 0x1a7   :  { %v1176_v34 = vmax.f32 %v1174_v8, %v1175_v12  ;;  %v1182_v46 = vrot.slane %v1164_v26, %v1168_v58 }
 0x1a8   :  { %v1173_v38 = vmax.f32 %v1171_v25, %v1172_v33 }
 0x1aa   :  { %v1177_v39 = vmax.f32 %v1173_v38, %v1176_v34 }
 0x1ac   :  { %v1184_v60 = vadd.f32 %v1182_v46, %v1177_v39 }
 0x1ae   :  { %v1185_v54 = vmax.f32 %v1184_v60, 0.0 }
 0x1b0   :  { %1186 = vst.msk [vmem:[#allocation2] sm:$0x3] %vm1086_vm2, %v1185_v54 }
 0x1b1   :  { %1928 = shalt.err (!%p1925_p4)
}
 0x1b2   :  { %s1929_s14 = scalar_lea.hbm %s2545_s8, 32 }
 0x1b3   :  { %p1930_p5 = scmp.ne.s32.totalorder %s2545_s8, %s1929_s14  ;;  %p1933_p6 = scmp.lt.u32.totalorder %s1929_s14, %s2545_s8 }
 0x1b5   :  { %p1935_p7 = pnand %p1933_p6, %p1930_p5 }
 0x1b7   :  { %1938 = shalt.err (!%p1935_p7)
}
 0x1b8   :  { %1196 = dma.vmem_to_hbm [thread:$0]  %s1194_s11, 32, %s2545_s8, [#allocation3]  }
 0x1b9   :  { %1939 = dma.done.wait [#allocation3], 32  }
 0x1ba   :  { %1940 = vsyncadd [#allocation3], 4294967264 }
 0x1bb   :  { %1200 = vsyncpa [#allocation3], 1 }

</bundles_post_ra>
